<compile_context>
chip_gen: v6e
topology: v6e:2x2x1
jax: 0.10.0
libtpu: 0.0.40
codegen_flags: <defaults>
</compile_context>

<pallas_src>
import math
import functools

import jax
import jax.numpy as jnp
from jax.experimental import pallas as pl
from jax.experimental.pallas import tpu as pltpu


def _round_up(n, m):
    return ((n + m - 1) // m) * m


def _strip_vmem_bytes(th, W, cin_p, cmid_p, cout_p, in_isz, out_isz):
    """Rough per-grid-step VMEM footprint for a TH-row strip."""
    x_blk = 2 * (th + 4) * (W + 2) * cin_p * in_isz            # double-buffered input strips
    w_blk = 9 * (cin_p * cmid_p + cmid_p * cout_p) * in_isz    # single-buffered weights
    b_blk = (cmid_p + cout_p) * 4
    o_blk = 2 * th * W * cout_p * out_isz                      # double-buffered output strips
    hs = (th + 2) * (W + 16) * cmid_p * in_isz                 # intermediate scratch
    acc = (th + 2) * W * cmid_p * 4 + th * W * cout_p * 4      # f32 matmul accumulators
    return x_blk + w_blk + b_blk + o_blk + hs + acc


def _pick_row_tile(H, W, cin_p, cmid_p, cout_p, in_isz, out_isz, budget):
    """Largest divisor of H whose strip footprint fits the VMEM budget.

    Prefers >=2 strips (when H allows) so small batches still give the v7x
    megacore something to shard.
    """
    divisors = [d for d in range(H, 0, -1) if H % d == 0]
    min_strips = 2 if H >= 8 else 1
    for th in divisors:
        if H // th < min_strips:
            continue
        if _strip_vmem_bytes(th, W, cin_p, cmid_p, cout_p, in_isz, out_isz) <= budget:
            return th
    return divisors[-1]


def _double_conv_kernel(x_ref, w1_ref, b1_ref, w2_ref, b2_ref, o_ref, hs_ref,
                        *, TH, W, slope):
    """One (batch, row-strip) step: two fused 3x3 EqualConv2d + bias + LeakyReLU.

    x_ref : [TH+4, W+2, Cin_p]   input strip (2-row halo, 1-col zero halo each side)
    w1_ref: [9, Cin_p, Cmid_p]   tap-major weights, equalized-lr scale pre-folded
    b1_ref: [1, Cmid_p]          f32
    w2_ref: [9, Cmid_p, Cout_p]
    b2_ref: [1, Cout_p]          f32
    o_ref : [TH, W, Cout_p]
    hs_ref: [TH+2, W+16, Cmid_p] intermediate strip; h data in cols [8, 8+W),
                                 conv2's horizontal zero padding at cols 7 and W+8.
    """
    t = pl.program_id(1)
    cmid = w1_ref.shape[2]
    cout = w2_ref.shape[2]
    H0 = 8  # sublane-aligned column where the h data starts in hs_ref

    def conv3x3(src_ref, w_ref, rows, col0):
        # 3x3 conv as 9 plain [M,K]@[K,N] MXU matmuls, f32 accumulation.
        # Accumulator starts from the first tap's dot (no zeros + add).
        # TODO(synk): generate the dw shifts with pltpu.roll (XLU) and, for tiny
        # channel counts, pack the 9 taps into the MXU K dim (im2col) instead of
        # zero-padding each tap's K to 128.
        k = src_ref.shape[-1]
        acc = None
        for dh in range(3):
            for dw in range(3):
                patch = src_ref[dh:dh + rows, col0 + dw:col0 + dw + W, :]
                contrib = jnp.dot(patch.reshape(rows * W, k),
                                  w_ref[dh * 3 + dw],
                                  preferred_element_type=jnp.float32)
                acc = contrib if acc is None else acc + contrib
        return acc  # [rows*W, N] f32

    # ---- conv1 over the TH+2 intermediate rows the conv2 strip needs --------
    h = conv3x3(x_ref, w1_ref, TH + 2, 0) + b1_ref[...]
    h = jnp.where(h >= 0, h, slope * h)
    hs_ref[:, H0:H0 + W, :] = h.reshape(TH + 2, W, cmid).astype(hs_ref.dtype)

    # conv2's horizontal zero padding: rewrite the two 8-column bands every step
    # (small aligned stores; keeps the kernel free of cross-step scratch state).
    zcol = jnp.zeros((TH + 2, 8, cmid), hs_ref.dtype)
    hs_ref[:, 0:8, :] = zcol
    hs_ref[:, H0 + W:H0 + W + 8, :] = zcol

    # conv2's vertical zero padding at the image top / bottom strips only.
    zrow = jnp.zeros((1, hs_ref.shape[1], cmid), hs_ref.dtype)

    @pl.when(t == 0)
    def _():
        hs_ref[0:1, :, :] = zrow

    @pl.when(t == pl.num_programs(1) - 1)
    def _():
        hs_ref[TH + 1:TH + 2, :, :] = zrow

    # ---- conv2 + bias + LeakyReLU, store the TH x W output strip ------------
    out = conv3x3(hs_ref, w2_ref, TH, H0 - 1) + b2_ref[...]
    out = jnp.where(out >= 0, out, slope * out)
    o_ref[...] = out.reshape(TH, W, cout).astype(o_ref.dtype)


def double_conv(x_nchw, w1, b1, w2, b2, *, negative_slope=0.2,
                compute_dtype=jnp.bfloat16, row_tile=None,
                vmem_budget_bytes=24 * 1024 * 1024, lane=128):
    """Fused DoubleConv forward (norm in {'none','bias'}, noise='none',
    sampling='none', mid_input=None).

    x_nchw: [B, Cin, H, W]; w1: [Cmid, Cin, 3, 3]; w2: [Cout, Cmid, 3, 3];
    b1: [Cmid]; b2: [Cout].  Returns [B, Cout, H, W] in x's dtype.

    compute_dtype: MXU operand dtype (default bf16); accumulation and the
    bias/LeakyReLU epilogue are always f32.
    """
    B, Cin, H, W = x_nchw.shape
    Cmid, wc_in, kh, kw = w1.shape
    Cout = w2.shape[0]
    assert (kh, kw) == (3, 3) and wc_in == Cin and w2.shape[1:] == (Cmid, 3, 3)
    assert b1.shape == (Cmid,) and b2.shape == (Cout,)

    cdt = jnp.dtype(compute_dtype)
    out_dtype = x_nchw.dtype
    scale1 = 1.0 / math.sqrt(Cin * 9)      # EqualConv2d: 1 / sqrt(in_ch * k^2)
    scale2 = 1.0 / math.sqrt(Cmid * 9)

    cin_p = _round_up(Cin, lane)
    cmid_p = _round_up(Cmid, lane)
    cout_p = _round_up(Cout, lane)

    in_isz = cdt.itemsize
    out_isz = jnp.dtype(out_dtype).itemsize
    if row_tile is None:
        TH = _pick_row_tile(H, W, cin_p, cmid_p, cout_p, in_isz, out_isz,
                            vmem_budget_bytes)
    else:
        TH = int(row_tile)
    assert H % TH == 0, (H, TH)  # TODO(synk): ragged last strip
    n_t = H // TH

    # NCHW -> NHWC, +2-row / +1-col zero halo, lane-pad channels, MXU dtype.
    x = jnp.transpose(x_nchw, (0, 2, 3, 1))
    x = jnp.pad(x, ((0, 0), (2, 2), (1, 1), (0, cin_p - Cin))).astype(cdt)
    # Overlapping row strips (2-row halo each side = the 5x5 receptive field of
    # two stacked 3x3 convs); 4/TH extra rows of duplication, fused by XLA with
    # the transpose/pad above.
    # TODO(synk): express the overlap with pl.Element / manual DMA instead of
    # materializing strips, and keep activations NHWC between DoubleConv calls
    # to drop the wrapper transposes entirely.
    x_strips = jnp.stack([x[:, t * TH:t * TH + TH + 4] for t in range(n_t)],
                         axis=1)

    # (O, I, 3, 3) -> tap-major (9, I_p, O_p) so each tap is a plain [M,K]@[K,N]
    # MXU matmul.  The equalized-lr scale is folded in here, in f32, before any
    # low-precision cast.
    def prep_w(w, scale, i_p, o_p):
        o, i = w.shape[0], w.shape[1]
        wt = jnp.transpose(w, (2, 3, 1, 0)).reshape(9, i, o).astype(jnp.float32)
        wt = wt * jnp.float32(scale)
        return jnp.pad(wt, ((0, 0), (0, i_p - i), (0, o_p - o))).astype(cdt)

    w1p = prep_w(w1, scale1, cin_p, cmid_p)
    w2p = prep_w(w2, scale2, cmid_p, cout_p)
    b1p = jnp.pad(b1.astype(jnp.float32), (0, cmid_p - Cmid)).reshape(1, cmid_p)
    b2p = jnp.pad(b2.astype(jnp.float32), (0, cout_p - Cout)).reshape(1, cout_p)

    kernel = functools.partial(_double_conv_kernel, TH=TH, W=W,
                               slope=negative_slope)

    flops = 2 * B * n_t * 9 * W * ((TH + 2) * cin_p * cmid_p
                                   + TH * cmid_p * cout_p)
    bytes_accessed = ((x_strips.size + w1p.size + w2p.size) * in_isz
                      + (b1p.size + b2p.size) * 4
                      + B * H * W * cout_p * out_isz)
    cost = pl.CostEstimate(flops=flops, transcendentals=0,
                           bytes_accessed=bytes_accessed)

    # Explicit scoped-VMEM limit: 2x the estimated block footprint, clamped to
    # [32 MiB, 64 MiB] so it is valid on v5e/v6e (128 MiB physical) and v7x
    # (64 MiB physical).  TH was picked against vmem_budget_bytes above.
    vmem_limit = int(min(64 * 1024 * 1024,
                         max(32 * 1024 * 1024,
                             2 * _strip_vmem_bytes(TH, W, cin_p, cmid_p, cout_p,
                                                   in_isz, out_isz))))

    weight_mode = pl.Buffered(1)  # grid-invariant inputs: fetch once, 1 buffer

    out = pl.pallas_call(
        kernel,
        out_shape=jax.ShapeDtypeStruct((B, H, W, cout_p), out_dtype),
        grid=(B, n_t),
        in_specs=[
            pl.BlockSpec((pl.Squeezed(), pl.Squeezed(), TH + 4, W + 2, cin_p),
                         lambda b, t: (b, t, 0, 0, 0)),
            pl.BlockSpec((9, cin_p, cmid_p), lambda b, t: (0, 0, 0),
                         pipeline_mode=weight_mode),
            pl.BlockSpec((1, cmid_p), lambda b, t: (0, 0),
                         pipeline_mode=weight_mode),
            pl.BlockSpec((9, cmid_p, cout_p), lambda b, t: (0, 0, 0),
                         pipeline_mode=weight_mode),
            pl.BlockSpec((1, cout_p), lambda b, t: (0, 0),
                         pipeline_mode=weight_mode),
        ],
        out_specs=pl.BlockSpec((pl.Squeezed(), TH, W, cout_p),
                               lambda b, t: (b, t, 0, 0)),
        scratch_shapes=[pltpu.VMEM((TH + 2, W + 16, cmid_p), cdt)],
        compiler_params=pltpu.CompilerParams(
            dimension_semantics=("parallel", "parallel"),
            vmem_limit_bytes=vmem_limit),
        cost_estimate=cost,
    )(x_strips, w1p, b1p, w2p, b2p)

    # Drop channel padding, back to NCHW (PyTorch convention).
    # TODO(synk): keep NHWC (and real-Cout lanes) between stacked DoubleConvs
    # to avoid this extra HBM pass around an otherwise mem-bound kernel.
    return jnp.transpose(out[..., :Cout], (0, 3, 1, 2))


def double_conv_ref(x_nchw, w1, b1, w2, b2, *, negative_slope=0.2):
    """Pure-JAX reference matching DoubleConv (norm='bias', noise/sampling none)."""
    def equal_conv_layer(x, w, b):
        scale = 1.0 / math.sqrt(w.shape[1] * w.shape[2] * w.shape[3])
        y = jax.lax.conv_general_dilated(
            x, w * scale, window_strides=(1, 1), padding="SAME",
            dimension_numbers=("NCHW", "OIHW", "NCHW"),
            precision=jax.lax.Precision.HIGHEST)
        y = y + b.reshape(1, -1, 1, 1)
        return jnp.where(y >= 0, y, negative_slope * y)

    return equal_conv_layer(equal_conv_layer(x_nchw, w1, b1), w2, b2)


if __name__ == "__main__":
    # Shapes consistent with DoubleConv(in_channels=4, out_channels=8) on a
    # 16x16 feature map, batch=2.
    B, Cin, Cout, H, W = 2, 4, 8, 16, 16

    key = jax.random.PRNGKey(0)
    kx, k1, k2, kb1, kb2 = jax.random.split(key, 5)
    x = jax.random.normal(kx, (B, Cin, H, W), dtype=jnp.float32)
    # EqualConv2d weights: torch.randn(out, in, k, k).  norm='bias' biases are
    # learnable (zero-init); use small nonzero values to exercise the bias add.
    w1 = jax.random.normal(k1, (Cout, Cin, 3, 3), dtype=jnp.float32)
    w2 = jax.random.normal(k2, (Cout, Cout, 3, 3), dtype=jnp.float32)
    b1 = 0.1 * jax.random.normal(kb1, (Cout,), dtype=jnp.float32)
    b2 = 0.1 * jax.random.normal(kb2, (Cout,), dtype=jnp.float32)

    ref = double_conv_ref(x, w1, b1, w2, b2)

    # Default path: bf16 MXU operands, f32 accumulation / epilogue, TH=8 (2 strips).
    out_bf16 = jax.block_until_ready(double_conv(x, w1, b1, w2, b2))
    assert out_bf16.shape == (B, Cout, H, W), out_bf16.shape
    assert jnp.allclose(out_bf16, ref, atol=5e-2, rtol=5e-2), \
        float(jnp.max(jnp.abs(out_bf16 - ref)))

    # Smaller row tiles (exercises interior strips that hit neither border branch).
    out_t4 = jax.block_until_ready(double_conv(x, w1, b1, w2, b2, row_tile=4))
    assert jnp.allclose(out_t4, ref, atol=5e-2, rtol=5e-2), \
        float(jnp.max(jnp.abs(out_t4 - ref)))

    # f32 MXU operands (tighter agreement; default TPU matmul precision).
    out_f32 = jax.block_until_ready(
        double_conv(x, w1, b1, w2, b2, compute_dtype=jnp.float32))
    assert jnp.allclose(out_f32, ref, atol=2e-2, rtol=2e-2), \
        float(jnp.max(jnp.abs(out_f32 - ref)))

    print("KERNEL_OK")
</pallas_src>

<mosaic_0001>
module attributes {stable_mosaic.version = 11 : i64} {
  func.func @_double_conv_kernel(%arg0: i32, %arg1: i32, %arg2: memref<1x1x12x18x128xbf16, #tpu.memory_space<vmem>>, %arg3: memref<9x128x128xbf16, #tpu.memory_space<vmem>>, %arg4: memref<1x128xf32, #tpu.memory_space<vmem>>, %arg5: memref<9x128x128xbf16, #tpu.memory_space<vmem>>, %arg6: memref<1x128xf32, #tpu.memory_space<vmem>>, %arg7: memref<1x8x16x128xf32, #tpu.memory_space<vmem>>, %arg8: memref<10x32x128xbf16, #tpu.memory_space<vmem>>) attributes {dimension_semantics = [#tpu.dimension_semantics<parallel>, #tpu.dimension_semantics<parallel>], iteration_bounds = array<i64: 2, 2>, scalar_prefetch = 0 : i64, scratch_operands = 1 : i64, tpu.core_type = #tpu.core_type<tc>, window_params = [{transform_indices = @transform_0, window_bounds = array<i64: 1, 1, 12, 18, 128>}, {pipeline_mode = #tpu.pipeline_mode<synchronous>, transform_indices = @transform_1, window_bounds = array<i64: 9, 128, 128>}, {pipeline_mode = #tpu.pipeline_mode<synchronous>, transform_indices = @transform_2, window_bounds = array<i64: 1, 128>}, {pipeline_mode = #tpu.pipeline_mode<synchronous>, transform_indices = @transform_3, window_bounds = array<i64: 9, 128, 128>}, {pipeline_mode = #tpu.pipeline_mode<synchronous>, transform_indices = @transform_4, window_bounds = array<i64: 1, 128>}, {transform_indices = @transform_5, window_bounds = array<i64: 1, 8, 16, 128>}]} {
    %c0 = arith.constant 0 : index
    %c0_0 = arith.constant 0 : index
    %c0_1 = arith.constant 0 : index
    %c0_2 = arith.constant 0 : index
    %c0_3 = arith.constant 0 : index
    %0 = vector.load %arg2[%c0, %c0_0, %c0_1, %c0_2, %c0_3] : memref<1x1x12x18x128xbf16, #tpu.memory_space<vmem>>, vector<1x1x10x16x128xbf16>
    %1 = vector.shape_cast %0 : vector<1x1x10x16x128xbf16> to vector<10x16x128xbf16>
    %2 = vector.shape_cast %1 : vector<10x16x128xbf16> to vector<160x128xbf16>
    %c0_4 = arith.constant 0 : index
    %c0_5 = arith.constant 0 : index
    %c0_6 = arith.constant 0 : index
    %3 = vector.load %arg3[%c0_4, %c0_5, %c0_6] : memref<9x128x128xbf16, #tpu.memory_space<vmem>>, vector<1x128x128xbf16>
    %4 = vector.shape_cast %3 : vector<1x128x128xbf16> to vector<128x128xbf16>
    %cst = arith.constant dense<0.000000e+00> : vector<160x128xf32>
    %5 = tpu.matmul %2, %4, %cst {dimension_numbers = #tpu.dot_dimension_numbers<[1], [0], [0], [1], [0, 0, 1, 1], [], []>} : vector<160x128xbf16>, vector<128x128xbf16>, vector<160x128xf32> -> vector<160x128xf32>
    %c0_7 = arith.constant 0 : index
    %c0_8 = arith.constant 0 : index
    %c0_9 = arith.constant 0 : index
    %c1 = arith.constant 1 : index
    %c0_10 = arith.constant 0 : index
    %6 = vector.load %arg2[%c0_7, %c0_8, %c0_9, %c1, %c0_10] : memref<1x1x12x18x128xbf16, #tpu.memory_space<vmem>>, vector<1x1x10x16x128xbf16>
    %7 = vector.shape_cast %6 : vector<1x1x10x16x128xbf16> to vector<10x16x128xbf16>
    %8 = vector.shape_cast %7 : vector<10x16x128xbf16> to vector<160x128xbf16>
    %c1_11 = arith.constant 1 : index
    %c0_12 = arith.constant 0 : index
    %c0_13 = arith.constant 0 : index
    %9 = vector.load %arg3[%c1_11, %c0_12, %c0_13] : memref<9x128x128xbf16, #tpu.memory_space<vmem>>, vector<1x128x128xbf16>
    %10 = vector.shape_cast %9 : vector<1x128x128xbf16> to vector<128x128xbf16>
    %cst_14 = arith.constant dense<0.000000e+00> : vector<160x128xf32>
    %11 = tpu.matmul %8, %10, %cst_14 {dimension_numbers = #tpu.dot_dimension_numbers<[1], [0], [0], [1], [0, 0, 1, 1], [], []>} : vector<160x128xbf16>, vector<128x128xbf16>, vector<160x128xf32> -> vector<160x128xf32>
    %12 = arith.addf %5, %11 : vector<160x128xf32>
    %c0_15 = arith.constant 0 : index
    %c0_16 = arith.constant 0 : index
    %c0_17 = arith.constant 0 : index
    %c2 = arith.constant 2 : index
    %c0_18 = arith.constant 0 : index
    %13 = vector.load %arg2[%c0_15, %c0_16, %c0_17, %c2, %c0_18] : memref<1x1x12x18x128xbf16, #tpu.memory_space<vmem>>, vector<1x1x10x16x128xbf16>
    %14 = vector.shape_cast %13 : vector<1x1x10x16x128xbf16> to vector<10x16x128xbf16>
    %15 = vector.shape_cast %14 : vector<10x16x128xbf16> to vector<160x128xbf16>
    %c2_19 = arith.constant 2 : index
    %c0_20 = arith.constant 0 : index
    %c0_21 = arith.constant 0 : index
    %16 = vector.load %arg3[%c2_19, %c0_20, %c0_21] : memref<9x128x128xbf16, #tpu.memory_space<vmem>>, vector<1x128x128xbf16>
    %17 = vector.shape_cast %16 : vector<1x128x128xbf16> to vector<128x128xbf16>
    %cst_22 = arith.constant dense<0.000000e+00> : vector<160x128xf32>
    %18 = tpu.matmul %15, %17, %cst_22 {dimension_numbers = #tpu.dot_dimension_numbers<[1], [0], [0], [1], [0, 0, 1, 1], [], []>} : vector<160x128xbf16>, vector<128x128xbf16>, vector<160x128xf32> -> vector<160x128xf32>
    %19 = arith.addf %12, %18 : vector<160x128xf32>
    %c0_23 = arith.constant 0 : index
    %c0_24 = arith.constant 0 : index
    %c1_25 = arith.constant 1 : index
    %c0_26 = arith.constant 0 : index
    %c0_27 = arith.constant 0 : index
    %20 = vector.load %arg2[%c0_23, %c0_24, %c1_25, %c0_26, %c0_27] : memref<1x1x12x18x128xbf16, #tpu.memory_space<vmem>>, vector<1x1x10x16x128xbf16>
    %21 = vector.shape_cast %20 : vector<1x1x10x16x128xbf16> to vector<10x16x128xbf16>
    %22 = vector.shape_cast %21 : vector<10x16x128xbf16> to vector<160x128xbf16>
    %c3 = arith.constant 3 : index
    %c0_28 = arith.constant 0 : index
    %c0_29 = arith.constant 0 : index
    %23 = vector.load %arg3[%c3, %c0_28, %c0_29] : memref<9x128x128xbf16, #tpu.memory_space<vmem>>, vector<1x128x128xbf16>
    %24 = vector.shape_cast %23 : vector<1x128x128xbf16> to vector<128x128xbf16>
    %cst_30 = arith.constant dense<0.000000e+00> : vector<160x128xf32>
    %25 = tpu.matmul %22, %24, %cst_30 {dimension_numbers = #tpu.dot_dimension_numbers<[1], [0], [0], [1], [0, 0, 1, 1], [], []>} : vector<160x128xbf16>, vector<128x128xbf16>, vector<160x128xf32> -> vector<160x128xf32>
    %26 = arith.addf %19, %25 : vector<160x128xf32>
    %c0_31 = arith.constant 0 : index
    %c0_32 = arith.constant 0 : index
    %c1_33 = arith.constant 1 : index
    %c1_34 = arith.constant 1 : index
    %c0_35 = arith.constant 0 : index
    %27 = vector.load %arg2[%c0_31, %c0_32, %c1_33, %c1_34, %c0_35] : memref<1x1x12x18x128xbf16, #tpu.memory_space<vmem>>, vector<1x1x10x16x128xbf16>
    %28 = vector.shape_cast %27 : vector<1x1x10x16x128xbf16> to vector<10x16x128xbf16>
    %29 = vector.shape_cast %28 : vector<10x16x128xbf16> to vector<160x128xbf16>
    %c4 = arith.constant 4 : index
    %c0_36 = arith.constant 0 : index
    %c0_37 = arith.constant 0 : index
    %30 = vector.load %arg3[%c4, %c0_36, %c0_37] : memref<9x128x128xbf16, #tpu.memory_space<vmem>>, vector<1x128x128xbf16>
    %31 = vector.shape_cast %30 : vector<1x128x128xbf16> to vector<128x128xbf16>
    %cst_38 = arith.constant dense<0.000000e+00> : vector<160x128xf32>
    %32 = tpu.matmul %29, %31, %cst_38 {dimension_numbers = #tpu.dot_dimension_numbers<[1], [0], [0], [1], [0, 0, 1, 1], [], []>} : vector<160x128xbf16>, vector<128x128xbf16>, vector<160x128xf32> -> vector<160x128xf32>
    %33 = arith.addf %26, %32 : vector<160x128xf32>
    %c0_39 = arith.constant 0 : index
    %c0_40 = arith.constant 0 : index
    %c1_41 = arith.constant 1 : index
    %c2_42 = arith.constant 2 : index
    %c0_43 = arith.constant 0 : index
    %34 = vector.load %arg2[%c0_39, %c0_40, %c1_41, %c2_42, %c0_43] : memref<1x1x12x18x128xbf16, #tpu.memory_space<vmem>>, vector<1x1x10x16x128xbf16>
    %35 = vector.shape_cast %34 : vector<1x1x10x16x128xbf16> to vector<10x16x128xbf16>
    %36 = vector.shape_cast %35 : vector<10x16x128xbf16> to vector<160x128xbf16>
    %c5 = arith.constant 5 : index
    %c0_44 = arith.constant 0 : index
    %c0_45 = arith.constant 0 : index
    %37 = vector.load %arg3[%c5, %c0_44, %c0_45] : memref<9x128x128xbf16, #tpu.memory_space<vmem>>, vector<1x128x128xbf16>
    %38 = vector.shape_cast %37 : vector<1x128x128xbf16> to vector<128x128xbf16>
    %cst_46 = arith.constant dense<0.000000e+00> : vector<160x128xf32>
    %39 = tpu.matmul %36, %38, %cst_46 {dimension_numbers = #tpu.dot_dimension_numbers<[1], [0], [0], [1], [0, 0, 1, 1], [], []>} : vector<160x128xbf16>, vector<128x128xbf16>, vector<160x128xf32> -> vector<160x128xf32>
    %40 = arith.addf %33, %39 : vector<160x128xf32>
    %c0_47 = arith.constant 0 : index
    %c0_48 = arith.constant 0 : index
    %c2_49 = arith.constant 2 : index
    %c0_50 = arith.constant 0 : index
    %c0_51 = arith.constant 0 : index
    %41 = vector.load %arg2[%c0_47, %c0_48, %c2_49, %c0_50, %c0_51] : memref<1x1x12x18x128xbf16, #tpu.memory_space<vmem>>, vector<1x1x10x16x128xbf16>
    %42 = vector.shape_cast %41 : vector<1x1x10x16x128xbf16> to vector<10x16x128xbf16>
    %43 = vector.shape_cast %42 : vector<10x16x128xbf16> to vector<160x128xbf16>
    %c6 = arith.constant 6 : index
    %c0_52 = arith.constant 0 : index
    %c0_53 = arith.constant 0 : index
    %44 = vector.load %arg3[%c6, %c0_52, %c0_53] : memref<9x128x128xbf16, #tpu.memory_space<vmem>>, vector<1x128x128xbf16>
    %45 = vector.shape_cast %44 : vector<1x128x128xbf16> to vector<128x128xbf16>
    %cst_54 = arith.constant dense<0.000000e+00> : vector<160x128xf32>
    %46 = tpu.matmul %43, %45, %cst_54 {dimension_numbers = #tpu.dot_dimension_numbers<[1], [0], [0], [1], [0, 0, 1, 1], [], []>} : vector<160x128xbf16>, vector<128x128xbf16>, vector<160x128xf32> -> vector<160x128xf32>
    %47 = arith.addf %40, %46 : vector<160x128xf32>
    %c0_55 = arith.constant 0 : index
    %c0_56 = arith.constant 0 : index
    %c2_57 = arith.constant 2 : index
    %c1_58 = arith.constant 1 : index
    %c0_59 = arith.constant 0 : index
    %48 = vector.load %arg2[%c0_55, %c0_56, %c2_57, %c1_58, %c0_59] : memref<1x1x12x18x128xbf16, #tpu.memory_space<vmem>>, vector<1x1x10x16x128xbf16>
    %49 = vector.shape_cast %48 : vector<1x1x10x16x128xbf16> to vector<10x16x128xbf16>
    %50 = vector.shape_cast %49 : vector<10x16x128xbf16> to vector<160x128xbf16>
    %c7 = arith.constant 7 : index
    %c0_60 = arith.constant 0 : index
    %c0_61 = arith.constant 0 : index
    %51 = vector.load %arg3[%c7, %c0_60, %c0_61] : memref<9x128x128xbf16, #tpu.memory_space<vmem>>, vector<1x128x128xbf16>
    %52 = vector.shape_cast %51 : vector<1x128x128xbf16> to vector<128x128xbf16>
    %cst_62 = arith.constant dense<0.000000e+00> : vector<160x128xf32>
    %53 = tpu.matmul %50, %52, %cst_62 {dimension_numbers = #tpu.dot_dimension_numbers<[1], [0], [0], [1], [0, 0, 1, 1], [], []>} : vector<160x128xbf16>, vector<128x128xbf16>, vector<160x128xf32> -> vector<160x128xf32>
    %54 = arith.addf %47, %53 : vector<160x128xf32>
    %c0_63 = arith.constant 0 : index
    %c0_64 = arith.constant 0 : index
    %c2_65 = arith.constant 2 : index
    %c2_66 = arith.constant 2 : index
    %c0_67 = arith.constant 0 : index
    %55 = vector.load %arg2[%c0_63, %c0_64, %c2_65, %c2_66, %c0_67] : memref<1x1x12x18x128xbf16, #tpu.memory_space<vmem>>, vector<1x1x10x16x128xbf16>
    %56 = vector.shape_cast %55 : vector<1x1x10x16x128xbf16> to vector<10x16x128xbf16>
    %57 = vector.shape_cast %56 : vector<10x16x128xbf16> to vector<160x128xbf16>
    %c8 = arith.constant 8 : index
    %c0_68 = arith.constant 0 : index
    %c0_69 = arith.constant 0 : index
    %58 = vector.load %arg3[%c8, %c0_68, %c0_69] : memref<9x128x128xbf16, #tpu.memory_space<vmem>>, vector<1x128x128xbf16>
    %59 = vector.shape_cast %58 : vector<1x128x128xbf16> to vector<128x128xbf16>
    %cst_70 = arith.constant dense<0.000000e+00> : vector<160x128xf32>
    %60 = tpu.matmul %57, %59, %cst_70 {dimension_numbers = #tpu.dot_dimension_numbers<[1], [0], [0], [1], [0, 0, 1, 1], [], []>} : vector<160x128xbf16>, vector<128x128xbf16>, vector<160x128xf32> -> vector<160x128xf32>
    %61 = arith.addf %54, %60 : vector<160x128xf32>
    %c0_71 = arith.constant 0 : index
    %c0_72 = arith.constant 0 : index
    %62 = vector.load %arg4[%c0_71, %c0_72] : memref<1x128xf32, #tpu.memory_space<vmem>>, vector<1x128xf32>
    %63 = vector.broadcast %62 : vector<1x128xf32> to vector<160x128xf32>
    %64 = arith.addf %61, %63 : vector<160x128xf32>
    %cst_73 = arith.constant 0.000000e+00 : f32
    %65 = vector.broadcast %cst_73 : f32 to vector<160x128xf32>
    %66 = arith.cmpf oge, %64, %65 : vector<160x128xf32>
    %cst_74 = arith.constant 2.000000e-01 : f32
    %67 = vector.broadcast %cst_74 : f32 to vector<160x128xf32>
    %68 = arith.mulf %67, %64 : vector<160x128xf32>
    %69 = arith.select %66, %64, %68 : vector<160x128xi1>, vector<160x128xf32>
    %70 = vector.shape_cast %69 : vector<160x128xf32> to vector<10x16x128xf32>
    %71 = arith.truncf %70 : vector<10x16x128xf32> to vector<10x16x128xbf16>
    %c0_75 = arith.constant 0 : index
    %c8_76 = arith.constant 8 : index
    %c0_77 = arith.constant 0 : index
    %72 = vector.load %arg8[%c0_75, %c8_76, %c0_77] : memref<10x32x128xbf16, #tpu.memory_space<vmem>>, vector<10x16x128xbf16>
    tpu.vector_store %arg8[%c0_75, %c8_76, %c0_77], %71 {strides = array<i32>} : memref<10x32x128xbf16, #tpu.memory_space<vmem>>, vector<10x16x128xbf16>,
    %cst_78 = arith.constant 0.000000e+00 : bf16
    %73 = vector.broadcast %cst_78 : bf16 to vector<10x8x128xbf16>
    %c0_79 = arith.constant 0 : index
    %c0_80 = arith.constant 0 : index
    %c0_81 = arith.constant 0 : index
    %74 = vector.load %arg8[%c0_79, %c0_80, %c0_81] : memref<10x32x128xbf16, #tpu.memory_space<vmem>>, vector<10x8x128xbf16>
    tpu.vector_store %arg8[%c0_79, %c0_80, %c0_81], %73 {strides = array<i32>} : memref<10x32x128xbf16, #tpu.memory_space<vmem>>, vector<10x8x128xbf16>,
    %c0_82 = arith.constant 0 : index
    %c24 = arith.constant 24 : index
    %c0_83 = arith.constant 0 : index
    %75 = vector.load %arg8[%c0_82, %c24, %c0_83] : memref<10x32x128xbf16, #tpu.memory_space<vmem>>, vector<10x8x128xbf16>
    tpu.vector_store %arg8[%c0_82, %c24, %c0_83], %73 {strides = array<i32>} : memref<10x32x128xbf16, #tpu.memory_space<vmem>>, vector<10x8x128xbf16>,
    %cst_84 = arith.constant 0.000000e+00 : bf16
    %76 = vector.broadcast %cst_84 : bf16 to vector<1x32x128xbf16>
    %c0_i32 = arith.constant 0 : i32
    %77 = arith.cmpi eq, %arg1, %c0_i32 : i32
    %78 = arith.extui %77 : i1 to i32
    %c0_i32_85 = arith.constant 0 : i32
    %79 = arith.cmpi ne, %78, %c0_i32_85 : i32
    scf.if %79 {
      %c0_157 = arith.constant 0 : index
      %c0_158 = arith.constant 0 : index
      %c0_159 = arith.constant 0 : index
      %148 = vector.load %arg8[%c0_157, %c0_158, %c0_159] : memref<10x32x128xbf16, #tpu.memory_space<vmem>>, vector<1x32x128xbf16>
      tpu.vector_store %arg8[%c0_157, %c0_158, %c0_159], %76 {strides = array<i32>} : memref<10x32x128xbf16, #tpu.memory_space<vmem>>, vector<1x32x128xbf16>,
    } else {
    }
    %c1_i32 = arith.constant 1 : i32
    %80 = arith.cmpi eq, %arg1, %c1_i32 : i32
    %81 = arith.extui %80 : i1 to i32
    %c0_i32_86 = arith.constant 0 : i32
    %82 = arith.cmpi ne, %81, %c0_i32_86 : i32
    scf.if %82 {
      %c9_157 = arith.constant 9 : index
      %c0_158 = arith.constant 0 : index
      %c0_159 = arith.constant 0 : index
      %148 = vector.load %arg8[%c9_157, %c0_158, %c0_159] : memref<10x32x128xbf16, #tpu.memory_space<vmem>>, vector<1x32x128xbf16>
      tpu.vector_store %arg8[%c9_157, %c0_158, %c0_159], %76 {strides = array<i32>} : memref<10x32x128xbf16, #tpu.memory_space<vmem>>, vector<1x32x128xbf16>,
    } else {
    }
    %c0_87 = arith.constant 0 : index
    %c7_88 = arith.constant 7 : index
    %c0_89 = arith.constant 0 : index
    %83 = vector.load %arg8[%c0_87, %c7_88, %c0_89] : memref<10x32x128xbf16, #tpu.memory_space<vmem>>, vector<8x16x128xbf16>
    %84 = vector.shape_cast %83 : vector<8x16x128xbf16> to vector<128x128xbf16>
    %c0_90 = arith.constant 0 : index
    %c0_91 = arith.constant 0 : index
    %c0_92 = arith.constant 0 : index
    %85 = vector.load %arg5[%c0_90, %c0_91, %c0_92] : memref<9x128x128xbf16, #tpu.memory_space<vmem>>, vector<1x128x128xbf16>
    %86 = vector.shape_cast %85 : vector<1x128x128xbf16> to vector<128x128xbf16>
    %cst_93 = arith.constant dense<0.000000e+00> : vector<128x128xf32>
    %87 = tpu.matmul %84, %86, %cst_93 {dimension_numbers = #tpu.dot_dimension_numbers<[1], [0], [0], [1], [0, 0, 1, 1], [], []>} : vector<128x128xbf16>, vector<128x128xbf16>, vector<128x128xf32> -> vector<128x128xf32>
    %c0_94 = arith.constant 0 : index
    %c8_95 = arith.constant 8 : index
    %c0_96 = arith.constant 0 : index
    %88 = vector.load %arg8[%c0_94, %c8_95, %c0_96] : memref<10x32x128xbf16, #tpu.memory_space<vmem>>, vector<8x16x128xbf16>
    %89 = vector.shape_cast %88 : vector<8x16x128xbf16> to vector<128x128xbf16>
    %c1_97 = arith.constant 1 : index
    %c0_98 = arith.constant 0 : index
    %c0_99 = arith.constant 0 : index
    %90 = vector.load %arg5[%c1_97, %c0_98, %c0_99] : memref<9x128x128xbf16, #tpu.memory_space<vmem>>, vector<1x128x128xbf16>
    %91 = vector.shape_cast %90 : vector<1x128x128xbf16> to vector<128x128xbf16>
    %cst_100 = arith.constant dense<0.000000e+00> : vector<128x128xf32>
    %92 = tpu.matmul %89, %91, %cst_100 {dimension_numbers = #tpu.dot_dimension_numbers<[1], [0], [0], [1], [0, 0, 1, 1], [], []>} : vector<128x128xbf16>, vector<128x128xbf16>, vector<128x128xf32> -> vector<128x128xf32>
    %93 = arith.addf %87, %92 : vector<128x128xf32>
    %c0_101 = arith.constant 0 : index
    %c9 = arith.constant 9 : index
    %c0_102 = arith.constant 0 : index
    %94 = vector.load %arg8[%c0_101, %c9, %c0_102] : memref<10x32x128xbf16, #tpu.memory_space<vmem>>, vector<8x16x128xbf16>
    %95 = vector.shape_cast %94 : vector<8x16x128xbf16> to vector<128x128xbf16>
    %c2_103 = arith.constant 2 : index
    %c0_104 = arith.constant 0 : index
    %c0_105 = arith.constant 0 : index
    %96 = vector.load %arg5[%c2_103, %c0_104, %c0_105] : memref<9x128x128xbf16, #tpu.memory_space<vmem>>, vector<1x128x128xbf16>
    %97 = vector.shape_cast %96 : vector<1x128x128xbf16> to vector<128x128xbf16>
    %cst_106 = arith.constant dense<0.000000e+00> : vector<128x128xf32>
    %98 = tpu.matmul %95, %97, %cst_106 {dimension_numbers = #tpu.dot_dimension_numbers<[1], [0], [0], [1], [0, 0, 1, 1], [], []>} : vector<128x128xbf16>, vector<128x128xbf16>, vector<128x128xf32> -> vector<128x128xf32>
    %99 = arith.addf %93, %98 : vector<128x128xf32>
    %c1_107 = arith.constant 1 : index
    %c7_108 = arith.constant 7 : index
    %c0_109 = arith.constant 0 : index
    %100 = vector.load %arg8[%c1_107, %c7_108, %c0_109] : memref<10x32x128xbf16, #tpu.memory_space<vmem>>, vector<8x16x128xbf16>
    %101 = vector.shape_cast %100 : vector<8x16x128xbf16> to vector<128x128xbf16>
    %c3_110 = arith.constant 3 : index
    %c0_111 = arith.constant 0 : index
    %c0_112 = arith.constant 0 : index
    %102 = vector.load %arg5[%c3_110, %c0_111, %c0_112] : memref<9x128x128xbf16, #tpu.memory_space<vmem>>, vector<1x128x128xbf16>
    %103 = vector.shape_cast %102 : vector<1x128x128xbf16> to vector<128x128xbf16>
    %cst_113 = arith.constant dense<0.000000e+00> : vector<128x128xf32>
    %104 = tpu.matmul %101, %103, %cst_113 {dimension_numbers = #tpu.dot_dimension_numbers<[1], [0], [0], [1], [0, 0, 1, 1], [], []>} : vector<128x128xbf16>, vector<128x128xbf16>, vector<128x128xf32> -> vector<128x128xf32>
    %105 = arith.addf %99, %104 : vector<128x128xf32>
    %c1_114 = arith.constant 1 : index
    %c8_115 = arith.constant 8 : index
    %c0_116 = arith.constant 0 : index
    %106 = vector.load %arg8[%c1_114, %c8_115, %c0_116] : memref<10x32x128xbf16, #tpu.memory_space<vmem>>, vector<8x16x128xbf16>
    %107 = vector.shape_cast %106 : vector<8x16x128xbf16> to vector<128x128xbf16>
    %c4_117 = arith.constant 4 : index
    %c0_118 = arith.constant 0 : index
    %c0_119 = arith.constant 0 : index
    %108 = vector.load %arg5[%c4_117, %c0_118, %c0_119] : memref<9x128x128xbf16, #tpu.memory_space<vmem>>, vector<1x128x128xbf16>
    %109 = vector.shape_cast %108 : vector<1x128x128xbf16> to vector<128x128xbf16>
    %cst_120 = arith.constant dense<0.000000e+00> : vector<128x128xf32>
    %110 = tpu.matmul %107, %109, %cst_120 {dimension_numbers = #tpu.dot_dimension_numbers<[1], [0], [0], [1], [0, 0, 1, 1], [], []>} : vector<128x128xbf16>, vector<128x128xbf16>, vector<128x128xf32> -> vector<128x128xf32>
    %111 = arith.addf %105, %110 : vector<128x128xf32>
    %c1_121 = arith.constant 1 : index
    %c9_122 = arith.constant 9 : index
    %c0_123 = arith.constant 0 : index
    %112 = vector.load %arg8[%c1_121, %c9_122, %c0_123] : memref<10x32x128xbf16, #tpu.memory_space<vmem>>, vector<8x16x128xbf16>
    %113 = vector.shape_cast %112 : vector<8x16x128xbf16> to vector<128x128xbf16>
    %c5_124 = arith.constant 5 : index
    %c0_125 = arith.constant 0 : index
    %c0_126 = arith.constant 0 : index
    %114 = vector.load %arg5[%c5_124, %c0_125, %c0_126] : memref<9x128x128xbf16, #tpu.memory_space<vmem>>, vector<1x128x128xbf16>
    %115 = vector.shape_cast %114 : vector<1x128x128xbf16> to vector<128x128xbf16>
    %cst_127 = arith.constant dense<0.000000e+00> : vector<128x128xf32>
    %116 = tpu.matmul %113, %115, %cst_127 {dimension_numbers = #tpu.dot_dimension_numbers<[1], [0], [0], [1], [0, 0, 1, 1], [], []>} : vector<128x128xbf16>, vector<128x128xbf16>, vector<128x128xf32> -> vector<128x128xf32>
    %117 = arith.addf %111, %116 : vector<128x128xf32>
    %c2_128 = arith.constant 2 : index
    %c7_129 = arith.constant 7 : index
    %c0_130 = arith.constant 0 : index
    %118 = vector.load %arg8[%c2_128, %c7_129, %c0_130] : memref<10x32x128xbf16, #tpu.memory_space<vmem>>, vector<8x16x128xbf16>
    %119 = vector.shape_cast %118 : vector<8x16x128xbf16> to vector<128x128xbf16>
    %c6_131 = arith.constant 6 : index
    %c0_132 = arith.constant 0 : index
    %c0_133 = arith.constant 0 : index
    %120 = vector.load %arg5[%c6_131, %c0_132, %c0_133] : memref<9x128x128xbf16, #tpu.memory_space<vmem>>, vector<1x128x128xbf16>
    %121 = vector.shape_cast %120 : vector<1x128x128xbf16> to vector<128x128xbf16>
    %cst_134 = arith.constant dense<0.000000e+00> : vector<128x128xf32>
    %122 = tpu.matmul %119, %121, %cst_134 {dimension_numbers = #tpu.dot_dimension_numbers<[1], [0], [0], [1], [0, 0, 1, 1], [], []>} : vector<128x128xbf16>, vector<128x128xbf16>, vector<128x128xf32> -> vector<128x128xf32>
    %123 = arith.addf %117, %122 : vector<128x128xf32>
    %c2_135 = arith.constant 2 : index
    %c8_136 = arith.constant 8 : index
    %c0_137 = arith.constant 0 : index
    %124 = vector.load %arg8[%c2_135, %c8_136, %c0_137] : memref<10x32x128xbf16, #tpu.memory_space<vmem>>, vector<8x16x128xbf16>
    %125 = vector.shape_cast %124 : vector<8x16x128xbf16> to vector<128x128xbf16>
    %c7_138 = arith.constant 7 : index
    %c0_139 = arith.constant 0 : index
    %c0_140 = arith.constant 0 : index
    %126 = vector.load %arg5[%c7_138, %c0_139, %c0_140] : memref<9x128x128xbf16, #tpu.memory_space<vmem>>, vector<1x128x128xbf16>
    %127 = vector.shape_cast %126 : vector<1x128x128xbf16> to vector<128x128xbf16>
    %cst_141 = arith.constant dense<0.000000e+00> : vector<128x128xf32>
    %128 = tpu.matmul %125, %127, %cst_141 {dimension_numbers = #tpu.dot_dimension_numbers<[1], [0], [0], [1], [0, 0, 1, 1], [], []>} : vector<128x128xbf16>, vector<128x128xbf16>, vector<128x128xf32> -> vector<128x128xf32>
    %129 = arith.addf %123, %128 : vector<128x128xf32>
    %c2_142 = arith.constant 2 : index
    %c9_143 = arith.constant 9 : index
    %c0_144 = arith.constant 0 : index
    %130 = vector.load %arg8[%c2_142, %c9_143, %c0_144] : memref<10x32x128xbf16, #tpu.memory_space<vmem>>, vector<8x16x128xbf16>
    %131 = vector.shape_cast %130 : vector<8x16x128xbf16> to vector<128x128xbf16>
    %c8_145 = arith.constant 8 : index
    %c0_146 = arith.constant 0 : index
    %c0_147 = arith.constant 0 : index
    %132 = vector.load %arg5[%c8_145, %c0_146, %c0_147] : memref<9x128x128xbf16, #tpu.memory_space<vmem>>, vector<1x128x128xbf16>
    %133 = vector.shape_cast %132 : vector<1x128x128xbf16> to vector<128x128xbf16>
    %cst_148 = arith.constant dense<0.000000e+00> : vector<128x128xf32>
    %134 = tpu.matmul %131, %133, %cst_148 {dimension_numbers = #tpu.dot_dimension_numbers<[1], [0], [0], [1], [0, 0, 1, 1], [], []>} : vector<128x128xbf16>, vector<128x128xbf16>, vector<128x128xf32> -> vector<128x128xf32>
    %135 = arith.addf %129, %134 : vector<128x128xf32>
    %c0_149 = arith.constant 0 : index
    %c0_150 = arith.constant 0 : index
    %136 = vector.load %arg6[%c0_149, %c0_150] : memref<1x128xf32, #tpu.memory_space<vmem>>, vector<1x128xf32>
    %137 = vector.broadcast %136 : vector<1x128xf32> to vector<128x128xf32>
    %138 = arith.addf %135, %137 : vector<128x128xf32>
    %cst_151 = arith.constant 0.000000e+00 : f32
    %139 = vector.broadcast %cst_151 : f32 to vector<128x128xf32>
    %140 = arith.cmpf oge, %138, %139 : vector<128x128xf32>
    %cst_152 = arith.constant 2.000000e-01 : f32
    %141 = vector.broadcast %cst_152 : f32 to vector<128x128xf32>
    %142 = arith.mulf %141, %138 : vector<128x128xf32>
    %143 = arith.select %140, %138, %142 : vector<128x128xi1>, vector<128x128xf32>
    %144 = vector.shape_cast %143 : vector<128x128xf32> to vector<8x16x128xf32>
    %c0_153 = arith.constant 0 : index
    %c0_154 = arith.constant 0 : index
    %c0_155 = arith.constant 0 : index
    %c0_156 = arith.constant 0 : index
    %145 = vector.load %arg7[%c0_153, %c0_154, %c0_155, %c0_156] : memref<1x8x16x128xf32, #tpu.memory_space<vmem>>, vector<1x8x16x128xf32>
    %146 = vector.shape_cast %145 : vector<1x8x16x128xf32> to vector<8x16x128xf32>
    %147 = vector.shape_cast %144 : vector<8x16x128xf32> to vector<1x8x16x128xf32>
    tpu.vector_store %arg7[%c0_153, %c0_154, %c0_155, %c0_156], %147 {strides = array<i32>} : memref<1x8x16x128xf32, #tpu.memory_space<vmem>>, vector<1x8x16x128xf32>,
    return
  }
  func.func @transform_0(%arg0: i32, %arg1: i32) -> (i32, i32, i32, i32, i32) {
    %c0_i32 = arith.constant 0 : i32
    %c0_i32_0 = arith.constant 0 : i32
    %c0_i32_1 = arith.constant 0 : i32
    %c0_i32_2 = arith.constant 0 : i32
    return %arg0, %arg1, %c0_i32, %c0_i32_0, %c0_i32_1 : i32, i32, i32, i32, i32
  }
  func.func @transform_1(%arg0: i32, %arg1: i32) -> (i32, i32, i32) {
    %c0_i32 = arith.constant 0 : i32
    %c0_i32_0 = arith.constant 0 : i32
    %c0_i32_1 = arith.constant 0 : i32
    %c0_i32_2 = arith.constant 0 : i32
    return %c0_i32, %c0_i32_0, %c0_i32_1 : i32, i32, i32
  }
  func.func @transform_2(%arg0: i32, %arg1: i32) -> (i32, i32) {
    %c0_i32 = arith.constant 0 : i32
    %c0_i32_0 = arith.constant 0 : i32
    %c0_i32_1 = arith.constant 0 : i32
    return %c0_i32, %c0_i32_0 : i32, i32
  }
  func.func @transform_3(%arg0: i32, %arg1: i32) -> (i32, i32, i32) {
    %c0_i32 = arith.constant 0 : i32
    %c0_i32_0 = arith.constant 0 : i32
    %c0_i32_1 = arith.constant 0 : i32
    %c0_i32_2 = arith.constant 0 : i32
    return %c0_i32, %c0_i32_0, %c0_i32_1 : i32, i32, i32
  }
  func.func @transform_4(%arg0: i32, %arg1: i32) -> (i32, i32) {
    %c0_i32 = arith.constant 0 : i32
    %c0_i32_0 = arith.constant 0 : i32
    %c0_i32_1 = arith.constant 0 : i32
    return %c0_i32, %c0_i32_0 : i32, i32
  }
  func.func @transform_5(%arg0: i32, %arg1: i32) -> (i32, i32, i32, i32) {
    %c0_i32 = arith.constant 0 : i32
    %c0_i32_0 = arith.constant 0 : i32
    %c0_i32_1 = arith.constant 0 : i32
    return %arg0, %arg1, %c0_i32, %c0_i32_0 : i32, i32, i32, i32
  }
}

</mosaic_0001>

<bundles_post_ra>
// kernel: tpu_custom_call.1
= control target key start
LH: loop header
LB: loop body
LE: loop exit
PB: predicated region body
PF: predicated region fallthrough
CT: control target
= control target key end

     0   :  { %s11489_s0 = inlined_call_operand.vmem [shape: bf16[2,2,12,18,128], index: 0, kind: input, shape index: {}]   ;;  %s11490_s1 = inlined_call_operand.vmem [shape: bf16[9,128,128], index: 1, kind: input, shape index: {}]   ;;  %s11491_s2 = inlined_call_operand.vmem [shape: f32[1,128], index: 2, kind: input, shape index: {}]   ;;  %s11492_s3 = inlined_call_operand.hbm [shape: bf16[9,128,128], index: 3, kind: input, shape index: {}]   ;;  %s11493_s4 = inlined_call_operand.vmem [shape: f32[1,128], index: 4, kind: input, shape index: {}]   ;;  %s11494_s5 = inlined_call_operand.hbm [shape: f32[2,16,16,128], index: 5, kind: output, shape index: {}]  }
   0x1   :  { %11498 = sst [smem:[#allocation30_spill]] %s11492_s3 }
   0x2   :  { %10 = vsyncpa [#allocation4], 0 }
   0x3   :  { %11 = vsyncpa [#allocation5], 0 }
   0x4   :  { %13 = vsyncpa [#allocation5 + $0x1], 0  ;;  %s9229_s18 = smov 0   ;;  %s9231_s19 = smov 0  }
   0x5   :  { %s9233_s20 = smov 0   ;;  %s9235_s21 = smov 0  }
   0x6   :  { %s9237_s22 = smov 0   ;;  %s9239_s23 = smov 0  }
   0x7   :  { %s9241_s24 = smov 0   ;;  %s9243_s25 = smov 0  }
   0x8 LB: > { %s7190_s26 = sadd.s32 4294967295, %s9188_s25   ;;  %s7191_s27 = sadd.s32 4294967294, %s9188_s25   ;;  %s9188_s25 = sphi %s9243_s25, %s19_s25   ;;  %s9184_s24 = sphi %s9241_s24, %s11598_s24   ;;  %s9180_s23 = sphi %s9239_s23, %s11597_s23   ;;  %s9176_s22 = sphi %s9237_s22, %s11596_s22   ;;  %s9172_s21 = sphi %s9235_s21, %s11595_s21   ;;  %s9168_s20 = sphi %s9233_s20, %s11594_s20   ;;  %s9164_s19 = sphi %s9231_s19, %s11593_s19   ;;  %s9160_s18 = sphi %s9229_s18, %s11592_s18  }
   0x9   : > { %s28_s28 = sadd.s32 1, %s9180_s23  ;;  %s31_s29 = sadd.s32 1, %s9184_s24 }
   0xa   : > { %p29_p0 = scmp.ge.s32.totalorder %s28_s28, 2  ;;  %s152_s30 = sadd.s32 1, %s9168_s20 }
   0xb   : > { %p162_p1 = scmp.ne.s32.totalorder %s9168_s20, %s9164_s19  ;;  %p163_p2 = scmp.eq.s32.totalorder %s7190_s26, 3 }
   0xc   : > { %s11600_s28 = smov (%p29_p0, %s28_s28), 0  ;;  %s11602_s29 = smov (!%p29_p0, %s31_s29), %s9184_s24 }
   0xd   : > { %s148_s6 = ssub.s32 %s9180_s23, %s11600_s28  ;;  %p9281_p3 = por %p163_p2, %p162_p1 }
   0xe   : > { %p33_p4 = scmp.ge.s32.totalorder %s11602_s29, 2  ;;  %p168_p5 = scmp.ne.s32.totalorder %s9164_s19, %s9160_s18 }
   0xf   : > { %p169_p6 = scmp.eq.s32.totalorder %s7191_s27, 3  ;;  %p7192_p7 = scmp.ge.s32.totalorder %s9188_s25, 1 }
  0x10   : > { %s11604_s29 = smov (%p33_p4, %s11602_s29), 0  ;;  %p176_p9 = scmp.lt.s32.totalorder %s9188_s25, 5 }
  0x11   : > { %p9290_p8 = por %p169_p6, %p168_p5  ;;  %s147_s9 = ssub.s32 %s9184_s24, %s11604_s29 }
  0x12   : > { %s149_s10 = sor.u32 %s148_s6, %s147_s9  ;;  %p9297_p10 = pnand %p7192_p7, %p176_p9 }
  0x13   : > { %p150_p11 = scmp.eq.s32.totalorder %s149_s10, 0  ;;  %p9301_p12 = scmp.eq.s32.totalorder %s7190_s26, 0 }
  0x14   : > { %p8785_p13 = pneg %p9297_p10  ;;  %s9190_s14 = smov [#allocation3]  }
  0x15   : > { %s9308_s13 = scalar_select %p150_p11, %s9168_s20, %s152_s30  }
  0x16   : > { %s194_s15 = sshll.u32 %s9190_s14, 4  ;;  %p9312_p0 = pnand %p9301_p12, %p8785_p13  ;;  %s195_s15 = int_to_ptr.vmem [resolvable:$true] %s194_s15 }
  0x17   : > { %s9077_s17 = scalar_lea.vmem %s195_s15, 9216  ;;  %p9085_p6 = scmp.lt.s32.totalorder %s195_s15, %s195_s15 }
  0x18   : > { %p9068_p1 = pneg %p9312_p0  ;;  %p9078_p2 = scmp.ne.s32.totalorder %s195_s15, %s9077_s17 }
  0x19   : > { %p9086_p7 = scmp.lt.s32.totalorder %s9077_s17, %s9077_s17 }
  0x1a   : > { %p9080_p4 = pnand %p9078_p2, %p9068_p1 }
  0x1b   : > { %p9087_p9 = por %p9086_p7, %p9085_p6 }
  0x1c   : > { %p9081_p5 = pneg %p9080_p4 }
  0x1e   : > { %p9088_p11 = pnand %p9087_p9, %p9081_p5 }
  0x20   : > { %9091 = shalt.err (!%p9088_p11)
}
  0x21   : > { %s9191_s26 = smov 64   ;;  %s9192_s27 = smov 4  }
  0x22   : > { %s11504_s3 = sld [smem:[#allocation30_spill]] }
  0x24   : > { %225 = sbr.rel (%p9297_p10) target bundleno = 923 (0x39b), region = 40 }
  0x28   : > { %8788 = dma.hbm_to_vmem [thread:$0]  (!%p9312_p0), %s11504_s3, 9216, %s195_s15, [#allocation4], %s9191_s26, %s9191_s26, %s9192_s27  }
  0x29   : > { %9151 = dma.done.wait (%p9301_p12), [#allocation4], 9216  }
  0x2a   : > { %9153 = vsyncadd (%p9301_p12), [#allocation4], 4294958080  ;;  %s11495_s9 = sand.u32 1, %s9164_s19   ;;  %v9193_v0 = vmov 0   ;;  %p257_p10 = scmp.lt.s32.totalorder %s9176_s22, 1  ;;  %v8868_v1 = vld [vmem:[%s11490_s1 + $0x78] sm:$0xff]  }
  0x2b   : > { %3794 = vst [vmem:[#allocation2] sm:$0xf] %v9193_v0  ;;  %3795 = vst [vmem:[#allocation2 + $0x10] sm:$0xf] %v9193_v0  ;;  %s9332_s10 = sshll.u32 %s11495_s9, 7  ;;  %p259_p12 = scmp.lt.s32.totalorder %s9172_s21, 1  ;;  %8165 = vmatprep.subr.bf16.mxu0 %v8868_v1 }
  0x2c   : > { %3796 = vst [vmem:[#allocation2 + $0x20] sm:$0xf] %v9193_v0  ;;  %3797 = vst [vmem:[#allocation2 + $0x30] sm:$0xf] %v9193_v0  ;;  %s258_s11 = scalar_select %p257_p10, %s9176_s22, 1  ;;  %v8869_v2 = vld [vmem:[%s11490_s1 + $0x38] sm:$0xff]   ;;  %8166 = vmatpush3.bf16.msra.mxu0 %v8868_v1 }
  0x2d   : > { %3798 = vst [vmem:[#allocation2 + $0x40] sm:$0xf] %v9193_v0  ;;  %3799 = vst [vmem:[#allocation2 + $0x50] sm:$0xf] %v9193_v0  ;;  %s260_s12 = scalar_select %p259_p12, %s9172_s21, 1  ;;  %v8870_v3 = vld [vmem:[%s11490_s1 + $0x70] sm:$0xff]   ;;  %8201 = vmatprep.subr.bf16.mxu1 %v8869_v2 }
  0x2e   : > { %3800 = vst [vmem:[#allocation2 + $0x60] sm:$0xf] %v9193_v0  ;;  %3801 = vst [vmem:[#allocation2 + $0x70] sm:$0xf] %v9193_v0  ;;  %s8778_s30 = smul.u32 72, %s258_s11  ;;  %v8871_v4 = vld [vmem:[%s11490_s1 + $0x30] sm:$0xff]   ;;  %8202 = vmatpush3.bf16.msra.mxu1 %v8869_v2  ;;  %8167 = vmatprep.subr.bf16.mxu0 %v8870_v3 }
  0x2f   : > { %3802 = vst [vmem:[#allocation2 + $0x80] sm:$0xf] %v9193_v0  ;;  %3803 = vst [vmem:[#allocation2 + $0x90] sm:$0xf] %v9193_v0  ;;  %s8777_s3 = smul.u32 36, %s260_s12  ;;  %v8872_v5 = vld [vmem:[%s11490_s1 + $0x68] sm:$0xff]   ;;  %8203 = vmatprep.subr.bf16.mxu1 %v8871_v4 }
  0x30   : > { %3804 = vst [vmem:[#allocation2 + $0xc] sm:$0xf] %v9193_v0  ;;  %3805 = vst [vmem:[#allocation2 + $0x1c] sm:$0xf] %v9193_v0  ;;  %v8873_v6 = vld [vmem:[%s11490_s1 + $0x28] sm:$0xff]   ;;  %8168 = vmatpush3.bf16.msra.mxu0 %v8870_v3  ;;  %v8874_v7 = vld [vmem:[%s11490_s1 + $0x60] sm:$0xff]  }
  0x31   : > { %3806 = vst [vmem:[#allocation2 + $0x2c] sm:$0xf] %v9193_v0  ;;  %3807 = vst [vmem:[#allocation2 + $0x3c] sm:$0xf] %v9193_v0  ;;  %s263_s11 = sadd.s32 %s8778_s30, %s8777_s3  ;;  %8169 = vmatprep.subr.bf16.mxu0 %v8872_v5  ;;  %v8875_v8 = vld [vmem:[%s11490_s1 + $0x20] sm:$0xff]   ;;  %v8876_v9 = vld [vmem:[%s11490_s1 + $0x58] sm:$0xff]  }
  0x32   : > { %3808 = vst [vmem:[#allocation2 + $0x4c] sm:$0xf] %v9193_v0  ;;  %3809 = vst [vmem:[#allocation2 + $0x5c] sm:$0xf] %v9193_v0  ;;  %8204 = vmatpush3.bf16.msra.mxu1 %v8871_v4  ;;  %s7198_s6 = sshll.u32 %s263_s11, 2  ;;  %v8877_v10 = vld [vmem:[%s11490_s1 + $0x18] sm:$0xff]  }
  0x33   : > { %3810 = vst [vmem:[#allocation2 + $0x6c] sm:$0xf] %v9193_v0  ;;  %3811 = vst [vmem:[#allocation2 + $0x7c] sm:$0xf] %v9193_v0  ;;  %8205 = vmatprep.subr.bf16.mxu1 %v8873_v6  ;;  %vm314_vm0 = vsmask.f32 3328  ;;  %s9371_s26 = scalar_lea.vmem %s11489_s0, %s7198_s6 }
  0x34   : > { %3812 = vst [vmem:[#allocation2 + $0x8c] sm:$0xf] %v9193_v0  ;;  %3813 = vst [vmem:[#allocation2 + $0x9c] sm:$0xf] %v9193_v0  ;;  %8170 = vmatpush3.bf16.msra.mxu0 %v8872_v5  ;;  %vm315_vm1 = vsmask.f32 7440 }
  0x35   : > { %8171 = vmatprep.subr.bf16.mxu0 %v8874_v7  ;;  %v8878_v11 = vld [vmem:[%s11490_s1 + $0x50] sm:$0xff]   ;;  %v268_v13 = vld [vmem:[%s9371_s26] sm:$0xf]  ;;  %v9381_v14 = vld [vmem:[%s9371_s26 + $0x4] sm:$0xf]  ;;  %v11505_v40 = vmov 0 }
  0x36   : > { %8206 = vmatpush3.bf16.msra.mxu1 %v8873_v6  ;;  %v8879_v12 = vld [vmem:[%s11490_s1 + $0x10] sm:$0xff]   ;;  %v9384_v15 = vld [vmem:[%s9371_s26 + $0x8] sm:$0x1]  ;;  %v318_v16 = vshrl.u32 %v268_v13, 16  ;;  %v321_v17 = vshll.u32 %v268_v13, 16  ;;  %v327_v18 = vshll.u32 %v9381_v14, 16  ;;  %v7233_v23 = vcombine.low %v268_v13, %v9381_v14  ;;  %vm9415_vm2 = vmor %vm314_vm0, %vm315_vm1 }
  0x37   : > { %8207 = vmatprep.subr.bf16.mxu1 %v8875_v8  ;;  %v331_v19 = vshrl.u32 %v9381_v14, 16  ;;  %v9389_v20 = vld [vmem:[%s9371_s26 + $0xc] sm:$0xf]  ;;  %v337_v22 = vshll.u32 %v9384_v15, 16  ;;  %v9397_v24 = vld [vmem:[%s9371_s26 + $0x10] sm:$0xf] }
  0x38   : > { %8172 = vmatpush3.bf16.msra.mxu0 %v8874_v7  ;;  %v8880_v21 = vld [vmem:[%s11490_s1 + $0x48] sm:$0xff]   ;;  %v9400_v25 = vld [vmem:[%s9371_s26 + $0x14] sm:$0x1]  ;;  %v320_v26 = vrot.slane %v318_v16, 4  ;;  %v323_v27 = vrot.slane %v321_v17, 5  ;;  %v329_v28 = vrot.slane %v327_v18, 5  ;;  %8217 = vmatprep.mubr.bf16.mxu1 %v7233_v23  ;;  %v7234_v7 = vcombine.low %v9389_v20, %v9397_v24 }
  0x39   : > { %8173 = vmatprep.subr.bf16.mxu0 %v8876_v9  ;;  %v333_v29 = vrot.slane %v331_v19, 4  ;;  %v339_v30 = vrot.slane %v337_v22, 5  ;;  %v342_v31 = vshrl.u32 %v9389_v20, 16  ;;  %v345_v32 = vshll.u32 %v9389_v20, 16  ;;  %v8881_v34 = vld [vmem:[%s11490_s1 + $0x8] sm:$0xff]   ;;  %v8882_v39 = vld [vmem:[%s11490_s1 + $0x40] sm:$0xff]  }
  0x3a   : > { %8208 = vmatpush3.bf16.msra.mxu1 %v8875_v8  ;;  %v351_v33 = vshll.u32 %v9397_v24, 16  ;;  %v324_v35 = vor.u32 %v323_v27, %v320_v26  ;;  %v355_v37 = vshrl.u32 %v9397_v24, 16  ;;  %v361_v38 = vshll.u32 %v9400_v25, 16  ;;  %v9420_v48 = vld [vmem:[%s9371_s26 + $0x18] sm:$0xf]  ;;  %v8883_v54 = vld [vmem:[%s11490_s1] sm:$0xff]  }
  0x3b   : > { %8209 = vmatprep.subr.bf16.mxu1 %v8877_v10  ;;  %v334_v36 = vor.u32 %v333_v29, %v329_v28  ;;  %v11506_v40 = vsel %vm9415_vm2, 4294967295, %v11505_v40  ;;  %v344_v41 = vrot.slane %v342_v31, 4  ;;  %v347_v42 = vrot.slane %v345_v32, 5  ;;  %v9423_v50 = vld [vmem:[%s9371_s26 + $0x1c] sm:$0xf]  ;;  %s10661_s6 = scalar_lea.vmem [#allocation6], %s9332_s10 }
  0x3c   : > { %8174 = vmatpush3.bf16.msra.mxu0 %v8876_v9  ;;  %11507 = vst [vmem:[#allocation9_spill] sm:$0xff] %v11506_v40  ;;  %v353_v43 = vrot.slane %v351_v33, 5  ;;  %v325_v44 = vrot.slane %v324_v35, 4  ;;  %v357_v46 = vrot.slane %v355_v37, 4  ;;  %v363_v47 = vrot.slane %v361_v38, 5  ;;  %v8886_v8 = vld [vmem:[%s11490_s1 + $0xb8] sm:$0xff]  }
  0x3d   : > { %8175 = vmatprep.subr.bf16.mxu0 %v8878_v11  ;;  %v335_v45 = vrot.slane %v334_v36, 4  ;;  %v348_v49 = vor.u32 %v347_v42, %v344_v41  ;;  %v9426_v51 = vld [vmem:[%s9371_s26 + $0x20] sm:$0x1]  ;;  %v366_v52 = vshrl.u32 %v9420_v48, 16  ;;  %v369_v53 = vshll.u32 %v9420_v48, 16  ;;  %v8891_v17 = vld [vmem:[%s11490_s1 + $0xf8] sm:$0xff]  }
  0x3e   : > { %8210 = vmatpush3.bf16.msra.mxu1 %v8877_v10  ;;  %v330_v55 = vsel %vm9415_vm2, %v325_v44, %v329_v28  ;;  %v358_v57 = vor.u32 %v357_v46, %v353_v43  ;;  %v375_v58 = vshll.u32 %v9423_v50, 16  ;;  %v9439_v59 = vld [vmem:[%s9371_s26 + $0x24] sm:$0xf]  ;;  %v9442_v60 = vld [vmem:[%s9371_s26 + $0x28] sm:$0xf]  ;;  %v379_v4 = vshrl.u32 %v9423_v50, 16 }
  0x3f   : > { %8211 = vmatprep.subr.bf16.mxu1 %v8879_v12  ;;  %v340_v56 = vsel %vm9415_vm2, %v335_v45, %v339_v30  ;;  %v349_v62 = vrot.slane %v348_v49, 4  ;;  %v368_v63 = vrot.slane %v366_v52, 4  ;;  %v371_v0 = vrot.slane %v369_v53, 5  ;;  %v9445_v1 = vld [vmem:[%s9371_s26 + $0x2c] sm:$0x1]  ;;  %v8887_v28 = vld [vmem:[%s11490_s1 + $0xb0] sm:$0xff]  }
  0x40   : > { %8176 = vmatpush3.bf16.msra.mxu0 %v8878_v11  ;;  %v7215_v61 = vcombine.low %v330_v55, %v340_v56  ;;  %v359_v2 = vrot.slane %v358_v57, 4  ;;  %v377_v3 = vrot.slane %v375_v58, 5  ;;  %v385_v5 = vshll.u32 %v9426_v51, 16  ;;  %v9476_v33 = vld [vmem:[%s9371_s26 + $0x30] sm:$0xf]  ;;  %p7660_p13 = scmp.ne.s32.totalorder %s9172_s21, 0 }
  0x41   : > { %8177 = vmatprep.subr.bf16.mxu0 %v8880_v21  ;;  %v354_v6 = vsel %vm9415_vm2, %v349_v62, %v353_v43  ;;  %v372_v9 = vor.u32 %v371_v0, %v368_v63  ;;  %v390_v10 = vshrl.u32 %v9439_v59, 16  ;;  %v393_v16 = vshll.u32 %v9439_v59, 16  ;;  %v9485_v41 = vld [vmem:[%s9371_s26 + $0x38] sm:$0x1]  ;;  %v9495_v52 = vld [vmem:[%s9371_s26 + $0x3c] sm:$0xf] }
  0x42   : > { %8212 = vmatpush3.bf16.msra.mxu1 %v8879_v12  ;;  %8181 = vmatprep.mubr.bf16.mxu0 %v7215_v61  ;;  %v364_v11 = vsel %vm9415_vm2, %v359_v2, %v363_v47  ;;  %v381_v12 = vrot.slane %v379_v4, 4  ;;  %v387_v13 = vrot.slane %v385_v5, 5  ;;  %v403_v26 = vshrl.u32 %v9442_v60, 16  ;;  %v9501_v58 = vld [vmem:[%s9371_s26 + $0x40] sm:$0xf] }
  0x43   : > { %8213 = vmatprep.subr.bf16.mxu1 %v8881_v34  ;;  %v7216_v18 = vcombine.low %v354_v6, %v364_v11  ;;  %v373_v19 = vrot.slane %v372_v9, 4  ;;  %v392_v20 = vrot.slane %v390_v10, 4  ;;  %v395_v23 = vrot.slane %v393_v16, 5  ;;  %v9506_v2 = vld [vmem:[%s9371_s26 + $0x44] sm:$0x1] }
  0x44   : > { %8178 = vmatpush3.bf16.msra.mxu0 %v8880_v21  ;;  %v399_v21 = vshll.u32 %v9442_v60, 16  ;;  %v382_v22 = vor.u32 %v381_v12, %v377_v3  ;;  %v409_v27 = vshll.u32 %v9445_v1, 16  ;;  %v7235_v30 = vcombine.low %v9420_v48, %v9423_v50  ;;  %v8894_v6 = vld [vmem:[%s11490_s1 + $0xa0] sm:$0xff]  }
  0x45   : > { %8179 = vmatprep.subr.bf16.mxu0 %v8882_v39  ;;  %v378_v29 = vsel %vm9415_vm2, %v373_v19, %v377_v3  ;;  %v7236_v32 = vcombine.low %v9439_v59, %v9442_v60  ;;  %v396_v36 = vor.u32 %v395_v23, %v392_v20  ;;  %v405_v37 = vrot.slane %v403_v26, 4  ;;  %v8896_v3 = vld [vmem:[%s11490_s1 + $0xe8] sm:$0xff]   ;;  %v8898_v19 = vld [vmem:[%s11490_s1 + $0xe0] sm:$0xff]  }
  0x46   : > { %8214 = vmatpush3.bf16.msra.mxu1 %v8881_v34  ;;  %v401_v31 = vrot.slane %v399_v21, 5  ;;  %v9479_v34 = vld [vmem:[%s9371_s26 + $0x34] sm:$0xf]  ;;  %v383_v35 = vrot.slane %v382_v22, 4  ;;  %v411_v38 = vrot.slane %v409_v27, 5  ;;  %v414_v42 = vshrl.u32 %v9476_v33, 16 }
  0x47   : > { %8215 = vmatprep.subr.bf16.mxu1 %v8883_v54  ;;  %v417_v43 = vshll.u32 %v9476_v33, 16  ;;  %v423_v44 = vshll.u32 %v9479_v34, 16  ;;  %v427_v45 = vshrl.u32 %v9479_v34, 16  ;;  %v397_v47 = vrot.slane %v396_v36, 4 }
  0x48   : > { %8180 = vmatpush3.bf16.msra.mxu0 %v8882_v39  ;;  %v8892_v39 = vld [vmem:[%s11490_s1 + $0xf0] sm:$0xff]   ;;  %v388_v46 = vsel %vm9415_vm2, %v383_v35, %v387_v13  ;;  %v406_v48 = vor.u32 %v405_v37, %v401_v31  ;;  %v433_v49 = vshll.u32 %v9485_v41, 16  ;;  %v416_v55 = vrot.slane %v414_v42, 4  ;;  %v9552_v42 = vld [vmem:[%s9371_s26 + $0x58] sm:$0xf] }
  0x49   : > { %8237 = vmatprep.subr.bf16.mxu0 %v8886_v8  ;;  %v7217_v53 = vcombine.low %v378_v29, %v388_v46  ;;  %v419_v56 = vrot.slane %v417_v43, 5  ;;  %v425_v57 = vrot.slane %v423_v44, 5  ;;  %v402_v61 = vsel %vm9415_vm2, %v397_v47, %v401_v31  ;;  %v8897_v29 = vld [vmem:[%s11490_s1 + $0x98] sm:$0xff]   ;;  %v9537_v31 = vld [vmem:[%s9371_s26 + $0x4c] sm:$0xf] }
  0x4a   : > { %8216 = vmatpush3.bf16.msra.mxu1 %v8883_v54  ;;  %v8890_v54 = vld [vmem:[%s11490_s1 + $0xa8] sm:$0xff]   ;;  %v407_v62 = vrot.slane %v406_v48, 4  ;;  %v429_v63 = vrot.slane %v427_v45, 4  ;;  %v435_v0 = vrot.slane %v433_v49, 5  ;;  %v7237_v5 = vcombine.low %v9476_v33, %v9479_v34  ;;  %v9540_v33 = vld [vmem:[%s9371_s26 + $0x50] sm:$0x1] }
  0x4b   : > { %8273 = vmatprep.subr.bf16.mxu1 %v8891_v17  ;;  %8182 = vmatmul.mubr.bf16.vlgmr.msra.gmra.mxu0 %v7216_v18  ;;  %v420_v4 = vor.u32 %v419_v56, %v416_v55  ;;  %v447_v11 = vshll.u32 %v9501_v58, 16  ;;  %v451_v12 = vshrl.u32 %v9501_v58, 16  ;;  %v457_v23 = vshll.u32 %v9506_v2, 16  ;;  %v8902_v46 = vld [vmem:[%s11490_s1 + $0xd8] sm:$0xff]  }
  0x4c   : > { %8238 = vmatpush3.bf16.msra.mxu0 %v8886_v8  ;;  %8185 = vmatprep.mubr.bf16.mxu0 %v7217_v53  ;;  %v441_v8 = vshll.u32 %v9495_v52, 16  ;;  %v412_v9 = vsel %vm9415_vm2, %v407_v62, %v411_v38  ;;  %v430_v10 = vor.u32 %v429_v63, %v425_v57  ;;  %v471_v59 = vshll.u32 %v9537_v31, 16 }
  0x4d   : > { %8218 = vmatmul.mubr.bf16.vlgmr.msra.gmra.mxu1 %v7234_v7  ;;  %8239 = vmatprep.subr.bf16.mxu0 %v8887_v28  ;;  %v438_v7 = vshrl.u32 %v9495_v52, 16  ;;  %v7218_v13 = vcombine.low %v402_v61, %v412_v9  ;;  %v421_v16 = vrot.slane %v420_v4, 4  ;;  %v449_v21 = vrot.slane %v447_v11, 5 }
  0x4e   : > { %8221 = vmatprep.mubr.bf16.mxu1 %v7235_v30  ;;  %8274 = vmatpush3.bf16.msra.mxu1 %v8891_v17  ;;  %v443_v18 = vrot.slane %v441_v8, 5  ;;  %v431_v20 = vrot.slane %v430_v10, 4  ;;  %v453_v22 = vrot.slane %v451_v12, 4  ;;  %v9534_v30 = vld [vmem:[%s9371_s26 + $0x48] sm:$0xf]  ;;  %v459_v37 = vrot.slane %v457_v23, 5 }
  0x4f   : > { %8275 = vmatprep.subr.bf16.mxu1 %v8892_v39  ;;  %v440_v17 = vrot.slane %v438_v7, 4  ;;  %v426_v26 = vsel %vm9415_vm2, %v421_v16, %v425_v57  ;;  %v462_v38 = vshrl.u32 %v9534_v30, 16  ;;  %v465_v45 = vshll.u32 %v9534_v30, 16 }
  0x50   : > { %8240 = vmatpush3.bf16.msra.mxu0 %v8887_v28  ;;  %v7238_v28 = vcombine.low %v9495_v52, %v9501_v58  ;;  %v436_v35 = vsel %vm9415_vm2, %v431_v20, %v435_v0  ;;  %v454_v36 = vor.u32 %v453_v22, %v449_v21  ;;  %v475_v49 = vshrl.u32 %v9537_v31, 16  ;;  %v8901_v0 = vld [vmem:[%s11490_s1 + $0x90] sm:$0xff]   ;;  %v284_v22 = vld [vmem:[%s9371_s26 + $0x60] sm:$0xf] }
  0x51   : > { %8241 = vmatprep.subr.bf16.mxu0 %v8890_v54  ;;  %v444_v27 = vor.u32 %v443_v18, %v440_v17  ;;  %v7219_v43 = vcombine.low %v426_v26, %v436_v35  ;;  %v464_v48 = vrot.slane %v462_v38, 4  ;;  %v481_v52 = vshll.u32 %v9540_v33, 16  ;;  %v8903_v17 = vld [vmem:[%s11490_s1 + $0x88] sm:$0xff]   ;;  %v8904_v18 = vld [vmem:[%s11490_s1 + $0xd0] sm:$0xff]  }
  0x52   : > { %8276 = vmatpush3.bf16.msra.mxu1 %v8892_v39  ;;  %v9549_v39 = vld [vmem:[%s9371_s26 + $0x54] sm:$0xf]  ;;  %v455_v47 = vrot.slane %v454_v36, 4  ;;  %v473_v55 = vrot.slane %v471_v59, 5  ;;  %v7239_v56 = vcombine.low %v9534_v30, %v9537_v31  ;;  %v477_v61 = vrot.slane %v475_v49, 4 }
  0x53   : > { %8186 = vmatmul.mubr.bf16.gmra.mxu0 %v7218_v13  ;;  %8277 = vmatprep.subr.bf16.mxu1 %v8896_v3  ;;  %v445_v44 = vrot.slane %v444_v27, 4  ;;  %v483_v62 = vrot.slane %v481_v52, 5  ;;  %v486_v63 = vshrl.u32 %v9549_v39, 16  ;;  %v495_v7 = vshll.u32 %v9552_v42, 16  ;;  %v9591_v30 = vld [vmem:[%s9371_s26 + $0x64] sm:$0xf] }
  0x54   : > { %8242 = vmatpush3.bf16.msra.mxu0 %v8890_v54  ;;  %8189 = vmatprep.mubr.bf16.mxu0 %v7219_v43  ;;  %v467_v54 = vrot.slane %v465_v45, 5  ;;  %v460_v57 = vsel %vm9415_vm2, %v455_v47, %v459_v37  ;;  %v478_v8 = vor.u32 %v477_v61, %v473_v55  ;;  %v7240_v16 = vcombine.low %v9549_v39, %v9552_v42  ;;  %v9594_v35 = vld [vmem:[%s9371_s26 + $0x68] sm:$0x1]  ;;  %v9601_v43 = vld [vmem:[%s9371_s26 + $0x6c] sm:$0xf] }
  0x55   : > { %8222 = vmatmul.mubr.bf16.gmra.mxu1 %v7236_v32  ;;  %8243 = vmatprep.subr.bf16.mxu0 %v8894_v6  ;;  %v9557_v32 = vld [vmem:[%s9371_s26 + $0x5c] sm:$0x1]  ;;  %v450_v53 = vsel %vm9415_vm2, %v445_v44, %v449_v21  ;;  %v488_v9 = vrot.slane %v486_v63, 4  ;;  %v497_v13 = vrot.slane %v495_v7, 5  ;;  %vm1026_vm3 = vcmask 1042432   ;;  %v8907_v52 = vld [vmem:[%s11490_s1 + $0xc8] sm:$0xff]  }
  0x56   : > { %8225 = vmatprep.mubr.bf16.mxu1 %v7237_v5  ;;  %8278 = vmatpush3.bf16.msra.mxu1 %v8896_v3  ;;  %v7220_v3 = vcombine.low %v450_v53, %v460_v57  ;;  %v468_v4 = vor.u32 %v467_v54, %v464_v48  ;;  %v489_v5 = vshll.u32 %v9549_v39, 16  ;;  %v505_v10 = vshll.u32 %v9557_v32, 16  ;;  %v9604_v44 = vld [vmem:[%s9371_s26 + $0x70] sm:$0xf]  ;;  %v9607_v49 = vld [vmem:[%s9371_s26 + $0x74] sm:$0x1] }
  0x57   : > { %8279 = vmatprep.subr.bf16.mxu1 %v8898_v19  ;;  %vm1027_vm4 = vcmask 1046532   ;;  %v1031_v23 = vrot.slane %v9381_v14, 5  ;;  %v519_v38 = vshll.u32 %v9591_v30, 16  ;;  %v523_v39 = vshrl.u32 %v9591_v30, 16  ;;  %v8908_v63 = vld [vmem:[%s11490_s1 + $0x80] sm:$0xff]  }
  0x58   : > { %8244 = vmatpush3.bf16.msra.mxu0 %v8894_v6  ;;  %v499_v6 = vshrl.u32 %v9552_v42, 16  ;;  %v469_v11 = vrot.slane %v468_v4, 4  ;;  %v491_v12 = vrot.slane %v489_v5, 5  ;;  %v507_v21 = vrot.slane %v505_v10, 5  ;;  %v8909_v10 = vld [vmem:[%s11490_s1 + $0xc0] sm:$0xff]   ;;  %vm9642_vm5 = vmor %vm1026_vm3, %vm1027_vm4 }
  0x59   : > { %8245 = vmatprep.subr.bf16.mxu0 %v8897_v29  ;;  %v521_v53 = vrot.slane %v519_v38, 5  ;;  %v525_v54 = vrot.slane %v523_v39, 4  ;;  %v7241_v61 = vcombine.low %v284_v22, %v9591_v30  ;;  %v537_v5 = vshll.u32 %v9601_v43, 16 }
  0x5a   : > { %8280 = vmatpush3.bf16.msra.mxu1 %v8898_v19  ;;  %v479_v19 = vrot.slane %v478_v8, 4  ;;  %v501_v20 = vrot.slane %v499_v6, 4  ;;  %v474_v26 = vsel %vm9415_vm2, %v469_v11, %v473_v55  ;;  %v492_v27 = vor.u32 %v491_v12, %v488_v9 }
  0x5b   : > { %8190 = vmatmul.mubr.bf16.gmra.mxu0 %v7220_v3  ;;  %8281 = vmatprep.subr.bf16.mxu1 %v8902_v46  ;;  %v529_v55 = vshll.u32 %v9594_v35, 16  ;;  %v526_v3 = vor.u32 %v525_v54, %v521_v53  ;;  %v543_v6 = vshll.u32 %v9604_v44, 16  ;;  %v539_v12 = vrot.slane %v537_v5, 5  ;;  %v8912_v5 = vld [vmem:[%s9371_s26 + $0x18] sm:$0xff]  }
  0x5c   : > { %8246 = vmatpush3.bf16.msra.mxu0 %v8897_v29  ;;  %v513_v29 = vshll.u32 %v284_v22, 16  ;;  %v484_v36 = vsel %vm9415_vm2, %v479_v19, %v483_v62  ;;  %v502_v37 = vor.u32 %v501_v20, %v497_v13  ;;  %v493_v59 = vrot.slane %v492_v27, 4  ;;  %v996_v19 = vld [vmem:[%s9371_s26] sm:$0xe] }
  0x5d   : > { %8226 = vmatmul.mubr.bf16.gmra.mxu1 %v7238_v28  ;;  %8247 = vmatprep.subr.bf16.mxu0 %v8901_v0  ;;  %v510_v28 = vshrl.u32 %v284_v22, 16  ;;  %v7221_v45 = vcombine.low %v474_v26, %v484_v36  ;;  %v534_v62 = vshrl.u32 %v9601_v43, 16  ;;  %v531_v4 = vrot.slane %v529_v55, 5 }
  0x5e   : > { %8229 = vmatprep.mubr.bf16.mxu1 %v7239_v56  ;;  %8282 = vmatpush3.bf16.msra.mxu1 %v8902_v46  ;;  %v515_v48 = vrot.slane %v513_v29, 5  ;;  %v503_v46 = vrot.slane %v502_v37, 4  ;;  %v498_v56 = vsel %vm9415_vm2, %v493_v59, %v497_v13  ;;  %v527_v11 = vrot.slane %v526_v3, 4  ;;  %v997_v29 = vld [vmem:[%s9371_s26 + $0xc] sm:$0xe] }
  0x5f   : > { %8283 = vmatprep.subr.bf16.mxu1 %v8904_v18  ;;  %v512_v47 = vrot.slane %v510_v28, 4  ;;  %8193 = vmatprep.mubr.bf16.mxu0 %v7221_v45  ;;  %v536_v9 = vrot.slane %v534_v62, 4  ;;  %v547_v13 = vshrl.u32 %v9604_v44, 16  ;;  %v1034_v20 = vrot.slane %v9384_v15, 5 }
  0x60   : > { %8248 = vmatpush3.bf16.msra.mxu0 %v8901_v0  ;;  %v508_v0 = vsel %vm9415_vm2, %v503_v46, %v507_v21  ;;  %v545_v22 = vrot.slane %v543_v6, 5  ;;  %v7251_v26 = vrot.slane %v996_v19, 9  ;;  %v1033_v38 = vrot.slane %v1031_v23, 4  ;;  %v8911_v46 = vld [vmem:[%s9371_s26 + $0xc] sm:$0xff]  }
  0x61   : > { %8249 = vmatprep.subr.bf16.mxu0 %v8903_v17  ;;  %v516_v57 = vor.u32 %v515_v48, %v512_v47  ;;  %v7222_v7 = vcombine.low %v498_v56, %v508_v0  ;;  %v540_v27 = vor.u32 %v539_v12, %v536_v9  ;;  %v549_v28 = vrot.slane %v547_v13, 4  ;;  %v8918_v12 = vld [vmem:[%s11490_s1 + $0x170] sm:$0xff]  }
  0x62   : > { %8284 = vmatpush3.bf16.msra.mxu1 %v8904_v18  ;;  %v553_v18 = vshll.u32 %v9607_v49, 16  ;;  %v7242_v59 = vcombine.low %v9601_v43, %v9604_v44  ;;  %v1038_v47 = vrot.slane %v9397_v24, 5  ;;  %v1032_v48 = vsel %vm9642_vm5, %v7251_v26, %v1031_v23  ;;  %v999_v23 = vld [vmem:[%s9371_s26 + $0x24] sm:$0xe]  ;;  %v1000_v13 = vld [vmem:[%s9371_s26 + $0x30] sm:$0xe] }
  0x63   : > { %v517_v8 = vrot.slane %v516_v57, 4  ;;  %8285 = vmatprep.subr.bf16.mxu1 %v8907_v52  ;;  %8194 = vmatmul.mubr.bf16.gmra.mxu0 %v7222_v7  ;;  %v541_v39 = vrot.slane %v540_v27, 4  ;;  %v550_v45 = vor.u32 %v549_v28, %v545_v22  ;;  %v1045_v54 = vrot.slane %v9423_v50, 5  ;;  %v8913_v19 = vld [vmem:[%s11490_s1 + $0x130] sm:$0xff]   ;;  %v8916_v28 = vld [vmem:[%s11490_s1 + $0x128] sm:$0xff]  }
  0x64   : > { %8250 = vmatpush3.bf16.msra.mxu0 %v8903_v17  ;;  %v532_v17 = vsel %vm9415_vm2, %v527_v11, %v531_v4  ;;  %v555_v37 = vrot.slane %v553_v18, 5  ;;  %v1041_v43 = vrot.slane %v9400_v25, 5  ;;  %v7252_v14 = vrot.slane %v997_v29, 9  ;;  %v8915_v27 = vld [vmem:[%s9371_s26 + $0x30] sm:$0xff]  }
  0x65   : > { %8230 = vmatmul.mubr.bf16.gmra.mxu1 %v7240_v16  ;;  %v522_v21 = vsel %vm9415_vm2, %v517_v8, %v521_v53  ;;  %v9636_v16 = vld [vmem:[%s11490_s1 + $0x138] sm:$0xff]   ;;  %8251 = vmatprep.subr.bf16.mxu0 %v8908_v63  ;;  %v546_v24 = vsel %vm9415_vm2, %v541_v39, %v545_v22  ;;  %v551_v55 = vrot.slane %v550_v45, 4  ;;  %v1048_v56 = vrot.slane %v9426_v51, 5  ;;  %v1002_v39 = vld [vmem:[%s9371_s26 + $0x48] sm:$0xe] }
  0x66   : > { %8233 = vmatprep.mubr.bf16.mxu1 %v7241_v61  ;;  %8286 = vmatpush3.bf16.msra.mxu1 %v8907_v52  ;;  %v7223_v36 = vcombine.low %v522_v21, %v532_v17  ;;  %v1035_v52 = vsel %vm9642_vm5, %v1033_v38, %v1034_v20  ;;  %v998_v53 = vld [vmem:[%s9371_s26 + $0x18] sm:$0xe]  ;;  %v1040_v62 = vrot.slane %v1038_v47, 4  ;;  %v1047_v25 = vrot.slane %v1045_v54, 4  ;;  %v1001_v20 = vld [vmem:[%s9371_s26 + $0x3c] sm:$0xe] }
  0x67   : > { %8287 = vmatprep.subr.bf16.mxu1 %v8909_v10  ;;  %v556_v57 = vsel %vm9415_vm2, %v551_v55, %v555_v37  ;;  %v7277_v61 = vcombine.low %v1032_v48, %v1035_v52  ;;  %v1052_v0 = vrot.slane %v9442_v60, 5  ;;  %v8917_v51 = vld [vmem:[%s11490_s1 + $0x178] sm:$0xff]   ;;  %v1039_v3 = vsel %vm9642_vm5, %v7252_v14, %v1038_v47  ;;  %v1003_v48 = vld [vmem:[%s9371_s26 + $0x54] sm:$0xe] }
  0x68   : > { %8252 = vmatpush3.bf16.msra.mxu0 %v8908_v63  ;;  %8197 = vmatprep.mubr.bf16.mxu0 %v7223_v36  ;;  %v7253_v63 = vrot.slane %v998_v53, 9  ;;  %v7224_v50 = vcombine.low %v546_v24, %v556_v57  ;;  %v1042_v4 = vsel %vm9642_vm5, %v1040_v62, %v1041_v43  ;;  %v7254_v7 = vrot.slane %v999_v23, 9  ;;  %v8920_v36 = vld [vmem:[%s9371_s26 + $0x3c] sm:$0xff]  }
  0x69   : > { %8309 = vmatprep.subr.bf16.mxu0 %v9636_v16  ;;  %v1055_v8 = vrot.slane %v9445_v1, 5  ;;  %v1049_v9 = vsel %vm9642_vm5, %v1047_v25, %v1048_v56  ;;  %v1054_v6 = vrot.slane %v1052_v0, 4  ;;  %v1059_v11 = vrot.slane %v9479_v34, 5  ;;  %v8919_v43 = vld [vmem:[%s11490_s1 + $0x120] sm:$0xff]   ;;  %v8921_v56 = vld [vmem:[%s9371_s26 + $0x48] sm:$0xff]   ;;  %v8928_v23 = vld [vmem:[%s11490_s1 + $0x158] sm:$0xff]  }
  0x6a   : > { %8288 = vmatpush3.bf16.msra.mxu1 %v8909_v10  ;;  %v1046_v60 = vsel %vm9642_vm5, %v7253_v63, %v1045_v54  ;;  %v8914_v10 = vld [vmem:[%s9371_s26 + $0x24] sm:$0xff]   ;;  %v1066_v18 = vrot.slane %v9501_v58, 5  ;;  %v7278_v1 = vcombine.low %v1039_v3, %v1042_v4  ;;  %v1062_v22 = vrot.slane %v9485_v41, 5  ;;  %v1004_v57 = vld [vmem:[%s9371_s26 + $0x60] sm:$0xe] }
  0x6b   : > { %8198 = vmatmul.mubr.bf16.gmra.mxu0 %v7224_v50  ;;  %8345 = vmatprep.subr.bf16.mxu1 %v8917_v51  ;;  %v7279_v21 = vcombine.low %v1046_v60, %v1049_v9  ;;  %v1073_v34 = vrot.slane %v9537_v31, 5  ;;  %v7255_v26 = vrot.slane %v1000_v13, 9  ;;  %v1061_v17 = vrot.slane %v1059_v11, 4  ;;  %v8922_v58 = vld [vmem:[%s11490_s1 + $0x168] sm:$0xff]   ;;  %v8925_v50 = vld [vmem:[%s9371_s26 + $0x54] sm:$0xff]  }
  0x6c   : > { %8253 = vmatprep.mubr.bf16.mxu0 %v7277_v61  ;;  %v7256_v29 = vrot.slane %v1001_v20, 9  ;;  %v1068_v41 = vrot.slane %v1066_v18, 4  ;;  %v1069_v31 = vrot.slane %v9506_v2, 5  ;;  %v1053_v37 = vsel %vm9642_vm5, %v7254_v7, %v1052_v0  ;;  %v8923_v61 = vld [vmem:[%s11490_s1 + $0x118] sm:$0xff]   ;;  %v7349_v13 = vld [vmem:[%s9371_s26 + $0xc] sm:$0xf] }
  0x6d   : > { %8234 = vmatmul.mubr.bf16.gmra.mxu1 %v7242_v59  ;;  %v1056_v38 = vsel %vm9642_vm5, %v1054_v6, %v1055_v8  ;;  %v1075_v45 = vrot.slane %v1073_v34, 4  ;;  %v1076_v59 = vrot.slane %v9540_v33, 5  ;;  %v1060_v47 = vsel %vm9642_vm5, %v7255_v26, %v1059_v11  ;;  %v8926_v6 = vld [vmem:[%s11490_s1 + $0x110] sm:$0xff]  }
  0x6e   : > { %8289 = vmatprep.mubr.bf16.mxu1 %v8911_v46  ;;  %v1063_v2 = vsel %vm9642_vm5, %v1061_v17, %v1062_v22  ;;  %v1080_v52 = vrot.slane %v9552_v42, 5  ;;  %v7280_v46 = vcombine.low %v1053_v37, %v1056_v38  ;;  %v7257_v53 = vrot.slane %v1002_v39, 9  ;;  %v8927_v22 = vld [vmem:[%s9371_s26 + $0x60] sm:$0xff]   ;;  %v7353_v37 = vld [vmem:[%s9371_s26 + $0x1c] sm:$0xf] }
  0x6f   : > { %v1087_v33 = vrot.slane %v9591_v30, 5  ;;  %v7281_v54 = vcombine.low %v1060_v47, %v1063_v2  ;;  %v1083_v24 = vrot.slane %v9557_v32, 5  ;;  %v7258_v42 = vrot.slane %v1003_v48, 9  ;;  %v9805_v38 = vld [vmem:[%s9371_s26 + $0x20] sm:$0x1]  ;;  %v8931_v2 = vld [vmem:[%s9371_s26 + $0x6c] sm:$0xff]  }
  0x70   : > { %v1082_v55 = vrot.slane %v1080_v52, 4  ;;  %v1067_v14 = vsel %vm9642_vm5, %v7256_v29, %v1066_v18  ;;  %v1070_v30 = vsel %vm9642_vm5, %v1068_v41, %v1069_v31  ;;  %v1094_v32 = vrot.slane %v9604_v44, 5  ;;  %v9779_v18 = vld [vmem:[%s9371_s26 + $0x10] sm:$0xf] }
  0x71   : > { %v1074_v62 = vsel %vm9642_vm5, %v7257_v53, %v1073_v34  ;;  %v1077_v63 = vsel %vm9642_vm5, %v1075_v45, %v1076_v59  ;;  %v1089_v25 = vrot.slane %v1087_v33, 4  ;;  %v1090_v0 = vrot.slane %v9594_v35, 5  ;;  %v8933_v34 = vld [vmem:[%s11490_s1 + $0x148] sm:$0xff]   ;;  %v8935_v53 = vld [vmem:[%s11490_s1 + $0x140] sm:$0xff]  }
  0x72   : > { %v7259_v44 = vrot.slane %v1004_v57, 9  ;;  %v1096_v4 = vrot.slane %v1094_v32, 4  ;;  %v7282_v7 = vcombine.low %v1067_v14, %v1070_v30  ;;  %v7283_v8 = vcombine.low %v1074_v62, %v1077_v63  ;;  %v8934_v63 = vld [vmem:[%s11490_s1 + $0x100] sm:$0xff]  }
  0x73   : > { %8254 = vmatmul.mubr.bf16.vlgmr.msra.gmra.mxu0 %v7278_v1  ;;  %v9749_v60 = vsel %vm9642_vm5, %v7258_v42, %v1080_v52  ;;  %v9753_v35 = vsel %vm9642_vm5, %v1082_v55, %v1083_v24  ;;  %v9760_v9 = vsel %vm9642_vm5, %v1089_v25, %v1090_v0  ;;  %v9782_v1 = vld [vmem:[%s9371_s26 + $0x14] sm:$0x1]  ;;  %v1650_v20 = vshll.u32 %v7349_v13, 16  ;;  %v7413_v24 = vld [vmem:[%s9371_s26 + $0xc] sm:$0xe] }
  0x74   : > { %8310 = vmatpush3.bf16.msra.mxu0 %v9636_v16  ;;  %8257 = vmatprep.mubr.bf16.mxu0 %v7279_v21  ;;  %v8924_v16 = vld [vmem:[%s11490_s1 + $0x160] sm:$0xff]   ;;  %v7284_v21 = vcombine.low %v9749_v60, %v9753_v35  ;;  %v1656_v26 = vshll.u32 %v9779_v18, 16  ;;  %v1660_v17 = vshrl.u32 %v9779_v18, 16  ;;  %v1680_v52 = vshll.u32 %v7353_v37, 16  ;;  %v9831_v60 = vld [vmem:[%s11490_s1 + $0x1f8] sm:$0xff]  }
  0x75   : > { %8290 = vmatmul.mubr.bf16.vlgmr.msra.gmra.mxu1 %v8912_v5  ;;  %8311 = vmatprep.subr.bf16.mxu0 %v8913_v19  ;;  %v1097_v5 = vrot.slane %v9607_v49, 5  ;;  %v8930_v49 = vld [vmem:[%s11490_s1 + $0x150] sm:$0xff]   ;;  %v2166_v42 = vrot.slane %v9779_v18, 5  ;;  %v9844_v18 = vld [vmem:[%s9371_s26 + $0x2c] sm:$0x1] }
  0x76   : > { %8293 = vmatprep.mubr.bf16.mxu1 %v8914_v10  ;;  %8346 = vmatpush3.bf16.msra.mxu1 %v8917_v51  ;;  %v1005_v51 = vld [vmem:[%s9371_s26 + $0x6c] sm:$0xe]  ;;  %v9767_v10 = vsel %vm9642_vm5, %v7259_v44, %v1087_v33  ;;  %v1658_v39 = vrot.slane %v1656_v26, 5  ;;  %v1662_v45 = vrot.slane %v1660_v17, 4  ;;  %v1682_v30 = vrot.slane %v1680_v52, 5  ;;  %v8932_v44 = vld [vmem:[%s9371_s26 + $0x78] sm:$0xff]  }
  0x77   : > { %8347 = vmatprep.subr.bf16.mxu1 %v8918_v12  ;;  %v7260_v3 = vrot.slane %v1005_v51, 9  ;;  %v7285_v29 = vcombine.low %v9767_v10, %v9760_v9  ;;  %v2168_v62 = vrot.slane %v2166_v42, 4  ;;  %v2169_v51 = vrot.slane %v9782_v1, 5 }
  0x78   : > { %8312 = vmatpush3.bf16.msra.mxu0 %v8913_v19  ;;  %v1647_v19 = vshrl.u32 %v7349_v13, 16  ;;  %v1663_v33 = vor.u32 %v1662_v45, %v1658_v39  ;;  %v9841_v13 = vld [vmem:[%s9371_s26 + $0x28] sm:$0xf] }
  0x79   : > { %8313 = vmatprep.subr.bf16.mxu0 %v8916_v28  ;;  %v9771_v11 = vsel %vm9642_vm5, %v7260_v3, %v1094_v32  ;;  %v2170_v10 = vsel %vm9642_vm5, %v2168_v62, %v2169_v51 }
  0x7a   : > { %8348 = vmatpush3.bf16.msra.mxu1 %v8918_v12  ;;  %v9775_v12 = vsel %vm9642_vm5, %v1096_v4, %v1097_v5  ;;  %v1649_v31 = vrot.slane %v1647_v19, 4  ;;  %v1664_v57 = vrot.slane %v1663_v33, 4 }
  0x7b   : > { %8349 = vmatprep.subr.bf16.mxu1 %v8922_v58  ;;  %8258 = vmatmul.mubr.bf16.gmra.mxu0 %v7280_v46  ;;  %v7286_v41 = vcombine.low %v9771_v11, %v9775_v12  ;;  %v1684_v46 = vshrl.u32 %v7353_v37, 16  ;;  %v2183_v11 = vrot.slane %v9844_v18, 5 }
  0x7c   : > { %8314 = vmatpush3.bf16.msra.mxu0 %v8916_v28  ;;  %8261 = vmatprep.mubr.bf16.mxu0 %v7281_v54  ;;  %v9797_v28 = vld [vmem:[%s11490_s1 + $0x108] sm:$0xff]  }
  0x7d   : > { %8294 = vmatmul.mubr.bf16.gmra.mxu1 %v8915_v27  ;;  %8315 = vmatprep.subr.bf16.mxu0 %v8919_v43  ;;  %v1666_v27 = vshll.u32 %v9782_v1, 16 }
  0x7e   : > { %8297 = vmatprep.mubr.bf16.mxu1 %v8920_v36  ;;  %8350 = vmatpush3.bf16.msra.mxu1 %v8922_v58  ;;  %v7352_v58 = vld [vmem:[%s9371_s26 + $0x18] sm:$0xf]  ;;  %v1652_v36 = vrot.slane %v1650_v20, 5 }
  0x7f   : > { %8351 = vmatprep.subr.bf16.mxu1 %v8924_v16  ;;  %v1668_v59 = vrot.slane %v1666_v27, 5  ;;  %v1671_v47 = vshrl.u32 %v7352_v58, 16  ;;  %v1674_v48 = vshll.u32 %v7352_v58, 16 }
  0x80   : > { %8316 = vmatpush3.bf16.msra.mxu0 %v8919_v43  ;;  %v1690_v43 = vshll.u32 %v9805_v38, 16 }
  0x81   : > { %8317 = vmatprep.subr.bf16.mxu0 %v8923_v61  ;;  %v1673_v54 = vrot.slane %v1671_v47, 4  ;;  %v1676_v14 = vrot.slane %v1674_v48, 5  ;;  %v1669_v3 = vsel %vm9415_vm2, %v1664_v57, %v1668_v59  ;;  %v1714_v47 = vshll.u32 %v9844_v18, 16 }
  0x82   : > { %8352 = vmatpush3.bf16.msra.mxu1 %v8924_v16  ;;  %v1653_v16 = vor.u32 %v1652_v36, %v1649_v31  ;;  %v1692_v32 = vrot.slane %v1690_v43, 5  ;;  %v1704_v36 = vshll.u32 %v9841_v13, 16 }
  0x83   : > { %8353 = vmatprep.subr.bf16.mxu1 %v8928_v23  ;;  %8262 = vmatmul.mubr.bf16.gmra.mxu0 %v7282_v7  ;;  %v1677_v25 = vor.u32 %v1676_v14, %v1673_v54  ;;  %v2173_v7 = vrot.slane %v7353_v37, 5  ;;  %v1708_v37 = vshrl.u32 %v9841_v13, 16  ;;  %v7416_v14 = vld [vmem:[%s9371_s26 + $0x30] sm:$0xe] }
  0x84   : > { %8318 = vmatpush3.bf16.msra.mxu0 %v8923_v61  ;;  %8265 = vmatprep.mubr.bf16.mxu0 %v7283_v8  ;;  %v1654_v55 = vrot.slane %v1653_v16, 4  ;;  %v7423_v61 = vrot.slane %v7413_v24, 9  ;;  %v7355_v8 = vld [vmem:[%s9371_s26 + $0x24] sm:$0xf]  ;;  %v7426_v12 = vrot.slane %v7416_v14, 9 }
  0x85   : > { %8298 = vmatmul.mubr.bf16.gmra.mxu1 %v8921_v56  ;;  %8319 = vmatprep.subr.bf16.mxu0 %v8926_v6  ;;  %v1686_v56 = vrot.slane %v1684_v46, 4  ;;  %v2175_v20 = vrot.slane %v2173_v7, 4  ;;  %v1695_v27 = vshrl.u32 %v7355_v8, 16  ;;  %v1698_v58 = vshll.u32 %v7355_v8, 16 }
  0x86   : > { %8301 = vmatprep.mubr.bf16.mxu1 %v8925_v50  ;;  %8354 = vmatpush3.bf16.msra.mxu1 %v8928_v23  ;;  %v7414_v23 = vld [vmem:[%s9371_s26 + $0x18] sm:$0xe]  ;;  %v1659_v50 = vsel %vm9415_vm2, %v1654_v55, %v1658_v39  ;;  %v2167_v4 = vsel %vm9642_vm5, %v7423_v61, %v2166_v42  ;;  %v1710_v16 = vrot.slane %v1708_v37, 4  ;;  %v7417_v37 = vld [vmem:[%s9371_s26 + $0x3c] sm:$0xe] }
  0x87   : > { %8355 = vmatprep.subr.bf16.mxu1 %v8930_v49  ;;  %v1687_v0 = vor.u32 %v1686_v56, %v1682_v30  ;;  %v7424_v5 = vrot.slane %v7414_v23, 9  ;;  %v7395_v35 = vcombine.low %v1659_v50, %v1669_v3  ;;  %v7449_v1 = vcombine.low %v2167_v4, %v2170_v10  ;;  %v7361_v50 = vld [vmem:[%s9371_s26 + $0x3c] sm:$0xf]  ;;  %v8940_v4 = vld [vmem:[%s11490_s1 + $0x1f0] sm:$0xff]  }
  0x88   : > { %8320 = vmatpush3.bf16.msra.mxu0 %v8926_v6  ;;  %v9836_v6 = vld [vmem:[%s11490_s1 + $0x1b8] sm:$0xff]   ;;  %v1697_v45 = vrot.slane %v1695_v27, 4  ;;  %v1700_v59 = vrot.slane %v1698_v58, 5  ;;  %v1743_v18 = vshrl.u32 %v7361_v50, 16  ;;  %v9918_v27 = vld [vmem:[%s9371_s26 + $0x50] sm:$0x1] }
  0x89   : > { %8321 = vmatprep.subr.bf16.mxu0 %v9797_v28  ;;  %v1688_v9 = vrot.slane %v1687_v0, 4  ;;  %v9849_v19 = vsel %vm9642_vm5, %v7424_v5, %v2173_v7  ;;  %v9894_v5 = vld [vmem:[%s9371_s26 + $0x40] sm:$0xf] }
  0x8a   : > { %8356 = vmatpush3.bf16.msra.mxu1 %v8930_v49  ;;  %v1678_v49 = vrot.slane %v1677_v25, 4  ;;  %v1701_v46 = vor.u32 %v1700_v59, %v1697_v45 }
  0x8b   : > { %8357 = vmatprep.subr.bf16.mxu1 %v8933_v34  ;;  %8266 = vmatmul.mubr.bf16.gmra.mxu0 %v7284_v21  ;;  %v2176_v21 = vrot.slane %v9805_v38, 5  ;;  %v1693_v17 = vsel %vm9415_vm2, %v1688_v9, %v1692_v32  ;;  %v7415_v38 = vld [vmem:[%s9371_s26 + $0x24] sm:$0xe]  ;;  %v9899_v9 = vld [vmem:[%s9371_s26 + $0x44] sm:$0x1] }
  0x8c   : > { %8269 = vmatprep.mubr.bf16.mxu0 %v7285_v29  ;;  %8322 = vmatpush3.bf16.msra.mxu0 %v9797_v28  ;;  %v1683_v26 = vsel %vm9415_vm2, %v1678_v49, %v1682_v30  ;;  %v9861_v28 = vld [vmem:[%s9371_s26 + $0x38] sm:$0x1]  ;;  %v1702_v30 = vrot.slane %v1701_v46, 4  ;;  %v7425_v57 = vrot.slane %v7415_v38, 9  ;;  %v8942_v38 = vld [vmem:[%s11490_s1 + $0x1e8] sm:$0xff]   ;;  %v1762_v45 = vshll.u32 %v9899_v9, 16 }
  0x8d   : > { %8302 = vmatmul.mubr.bf16.gmra.mxu1 %v8927_v22  ;;  %v7358_v22 = vld [vmem:[%s9371_s26 + $0x30] sm:$0xf]  ;;  %8323 = vmatprep.subr.bf16.mxu0 %v8934_v63  ;;  %v9863_v29 = vcombine.low %v1683_v26, %v1693_v17  ;;  %v2177_v31 = vsel %vm9642_vm5, %v2175_v20, %v2176_v21  ;;  %v1738_v55 = vshll.u32 %v9861_v28, 16  ;;  %v2190_v49 = vrot.slane %v9861_v28, 5  ;;  %v9907_v20 = vld [vmem:[%s9371_s26 + $0x4c] sm:$0xf] }
  0x8e   : > { %8305 = vmatprep.mubr.bf16.mxu1 %v8931_v2  ;;  %8358 = vmatpush3.bf16.msra.mxu1 %v8933_v34  ;;  %v9854_v34 = vld [vmem:[%s9371_s26 + $0x34] sm:$0xf]  ;;  %v7450_v39 = vcombine.low %v9849_v19, %v2177_v31  ;;  %v1706_v2 = vrot.slane %v1704_v36, 5  ;;  %v1719_v48 = vshrl.u32 %v7358_v22, 16  ;;  %v1722_v52 = vshll.u32 %v7358_v22, 16 }
  0x8f   : > { %8359 = vmatprep.subr.bf16.mxu1 %v8935_v53  ;;  %v1728_v33 = vshll.u32 %v9854_v34, 16  ;;  %v1732_v54 = vshrl.u32 %v9854_v34, 16  ;;  %v1740_v62 = vrot.slane %v1738_v55, 5  ;;  %v7364_v19 = vld [vmem:[%s9371_s26 + $0x48] sm:$0xf]  ;;  %v8937_v21 = vld [vmem:[%s11490_s1 + $0x1b0] sm:$0xff]  }
  0x90   : > { %8324 = vmatpush3.bf16.msra.mxu0 %v8934_v63  ;;  %v1711_v43 = vor.u32 %v1710_v16, %v1706_v2  ;;  %v1721_v24 = vrot.slane %v1719_v48, 4  ;;  %v1724_v42 = vrot.slane %v1722_v52, 5  ;;  %v2180_v63 = vrot.slane %v9841_v13, 5 }
  0x91   : > { %8381 = vmatprep.subr.bf16.mxu0 %v9836_v6  ;;  %v1730_v56 = vrot.slane %v1728_v33, 5  ;;  %v1734_v23 = vrot.slane %v1732_v54, 4  ;;  %v1707_v25 = vsel %vm9415_vm2, %v1702_v30, %v1706_v2  ;;  %v1745_v28 = vrot.slane %v1743_v18, 4 }
  0x92   : > { %8360 = vmatpush3.bf16.msra.mxu1 %v8935_v53  ;;  %v1716_v53 = vrot.slane %v1714_v47, 5  ;;  %v1712_v32 = vrot.slane %v1711_v43, 4  ;;  %v1725_v61 = vor.u32 %v1724_v42, %v1721_v24  ;;  %v2182_v3 = vrot.slane %v2180_v63, 4  ;;  %v8944_v42 = vld [vmem:[%s11490_s1 + $0x1e0] sm:$0xff]  }
  0x93   : > { %8417 = vmatprep.subr.bf16.mxu1 %v9831_v60  ;;  %8270 = vmatmul.mubr.bf16.gmra.mxu0 %v7286_v41  ;;  %v1735_v0 = vor.u32 %v1734_v23, %v1730_v56  ;;  %v1752_v36 = vshll.u32 %v9894_v5, 16  ;;  %v1767_v59 = vshrl.u32 %v7364_v19, 16  ;;  %v1770_v48 = vshll.u32 %v7364_v19, 16  ;;  %v7418_v23 = vld [vmem:[%s9371_s26 + $0x48] sm:$0xe] }
  0x94   : > { %8325 = vmatprep.mubr.bf16.mxu0 %v7395_v35  ;;  %v1717_v41 = vsel %vm9415_vm2, %v1712_v32, %v1716_v53  ;;  %v1726_v51 = vrot.slane %v1725_v61, 4  ;;  %v2187_v35 = vrot.slane %v9854_v34, 5  ;;  %v2184_v13 = vsel %vm9642_vm5, %v2182_v3, %v2183_v11 }
  0x95   : > { %8306 = vmatmul.mubr.bf16.gmra.mxu1 %v8932_v44  ;;  %v2181_v44 = vsel %vm9642_vm5, %v7425_v57, %v2180_v63  ;;  %v7397_v7 = vcombine.low %v1707_v25, %v1717_v41  ;;  %v1736_v8 = vrot.slane %v1735_v0, 4  ;;  %v1754_v16 = vrot.slane %v1752_v36, 5  ;;  %v7367_v63 = vld [vmem:[%s9371_s26 + $0x54] sm:$0xf]  ;;  %v8941_v25 = vld [vmem:[%s11490_s1 + $0x1a0] sm:$0xff]  }
  0x96   : > { %8361 = vmatprep.mubr.bf16.mxu1 %v7449_v1  ;;  %v1731_v10 = vsel %vm9415_vm2, %v1726_v51, %v1730_v56  ;;  %v1746_v1 = vshll.u32 %v7361_v50, 16  ;;  %v7451_v34 = vcombine.low %v2181_v44, %v2184_v13  ;;  %v2188_v26 = vsel %vm9642_vm5, %v7426_v12, %v2187_v35  ;;  %v9952_v41 = vld [vmem:[%s9371_s26 + $0x58] sm:$0xf]  ;;  %v9955_v51 = vld [vmem:[%s9371_s26 + $0x5c] sm:$0x1] }
  0x97   : > { %v1741_v22 = vsel %vm9415_vm2, %v1736_v8, %v1740_v62  ;;  %v2189_v17 = vrot.slane %v2187_v35, 4  ;;  %v1764_v46 = vrot.slane %v1762_v45, 5  ;;  %v1769_v53 = vrot.slane %v1767_v59, 4  ;;  %v8946_v8 = vld [vmem:[%s11490_s1 + $0x1d8] sm:$0xff]  }
  0x98   : > { %v7398_v58 = vcombine.low %v1731_v10, %v1741_v22  ;;  %v1748_v31 = vrot.slane %v1746_v1, 5  ;;  %v1776_v33 = vshll.u32 %v9907_v20, 16  ;;  %v1772_v43 = vrot.slane %v1770_v48, 5 }
  0x99   : > { %v1786_v24 = vshll.u32 %v9918_v27, 16  ;;  %v7427_v30 = vrot.slane %v7417_v37, 9  ;;  %v2194_v56 = vrot.slane %v9894_v5, 5  ;;  %v2197_v12 = vrot.slane %v9899_v9, 5 }
  0x9a   : > { %v1749_v2 = vor.u32 %v1748_v31, %v1745_v28  ;;  %v1778_v14 = vrot.slane %v1776_v33, 5  ;;  %v1773_v32 = vor.u32 %v1772_v43, %v1769_v53  ;;  %v2204_v9 = vrot.slane %v9918_v27, 5  ;;  %v9978_v27 = vld [vmem:[%s9371_s26 + $0x68] sm:$0x1]  ;;  %v8945_v33 = vld [vmem:[%s11490_s1 + $0x190] sm:$0xff]  }
  0x9b   : > { %8326 = vmatmul.mubr.bf16.vlgmr.msra.gmra.mxu0 %v9863_v29  ;;  %v8938_v29 = vld [vmem:[%s11490_s1 + $0x1a8] sm:$0xff]   ;;  %v1788_v62 = vrot.slane %v1786_v24, 5  ;;  %v2195_v0 = vsel %vm9642_vm5, %v7427_v30, %v2194_v56  ;;  %v2196_v11 = vrot.slane %v2194_v56, 4  ;;  %v1791_v10 = vshrl.u32 %v7367_v63, 16 }
  0x9c   : > { %8382 = vmatpush3.bf16.msra.mxu0 %v9836_v6  ;;  %8329 = vmatprep.mubr.bf16.mxu0 %v7397_v7  ;;  %v1750_v54 = vrot.slane %v1749_v2, 4  ;;  %v1780_v6 = vshrl.u32 %v9907_v20, 16  ;;  %v1774_v44 = vrot.slane %v1773_v32, 4  ;;  %v7370_v7 = vld [vmem:[%s9371_s26 + $0x60] sm:$0xf]  ;;  %v1800_v31 = vshll.u32 %v9952_v41, 16 }
  0x9d   : > { %8362 = vmatmul.mubr.bf16.vlgmr.msra.gmra.mxu1 %v7450_v39  ;;  %v2191_v39 = vsel %vm9642_vm5, %v2189_v17, %v2190_v49  ;;  %8383 = vmatprep.subr.bf16.mxu0 %v8937_v21  ;;  %v2198_v49 = vsel %vm9642_vm5, %v2196_v11, %v2197_v12  ;;  %v1794_v17 = vshll.u32 %v7367_v63, 16  ;;  %v1804_v36 = vshrl.u32 %v9952_v41, 16  ;;  %v8947_v11 = vld [vmem:[%s11490_s1 + $0x188] sm:$0xff]  }
  0x9e   : > { %8418 = vmatpush3.bf16.msra.mxu1 %v9831_v60  ;;  %8365 = vmatprep.mubr.bf16.mxu1 %v7451_v34  ;;  %v1756_v60 = vshrl.u32 %v9894_v5, 16  ;;  %v7452_v47 = vcombine.low %v2188_v26, %v2191_v39  ;;  %v1755_v57 = vsel %vm9415_vm2, %v1750_v54, %v1754_v16  ;;  %v1782_v61 = vrot.slane %v1780_v6, 4  ;;  %v8943_v34 = vld [vmem:[%s11490_s1 + $0x198] sm:$0xff]   ;;  %v7373_v12 = vld [vmem:[%s9371_s26 + $0x6c] sm:$0xf] }
  0x9f   : > { %8419 = vmatprep.subr.bf16.mxu1 %v8940_v4  ;;  %v2201_v5 = vrot.slane %v9907_v20, 5  ;;  %v1779_v18 = vsel %vm9415_vm2, %v1774_v44, %v1778_v14  ;;  %v7453_v19 = vcombine.low %v2195_v0, %v2198_v49  ;;  %v9970_v20 = vld [vmem:[%s9371_s26 + $0x64] sm:$0xf]  ;;  %v1793_v26 = vrot.slane %v1791_v10, 4  ;;  %v7376_v10 = vld [vmem:[%s9371_s26 + $0x78] sm:$0xf] }
  0xa0   : > { %v1758_v52 = vrot.slane %v1756_v60, 4  ;;  %8384 = vmatpush3.bf16.msra.mxu0 %v8937_v21  ;;  %v1783_v3 = vor.u32 %v1782_v61, %v1778_v14  ;;  %v1810_v37 = vshll.u32 %v9955_v51, 16  ;;  %v1796_v45 = vrot.slane %v1794_v17, 5  ;;  %v10036_v17 = vld [vmem:[%s9371_s26 + $0x80] sm:$0x1] }
  0xa1   : > { %8385 = vmatprep.subr.bf16.mxu0 %v8938_v29  ;;  %v2203_v22 = vrot.slane %v2201_v5, 4  ;;  %v1815_v59 = vshrl.u32 %v7370_v7, 16  ;;  %v1802_v2 = vrot.slane %v1800_v31, 5  ;;  %v1824_v53 = vshll.u32 %v9970_v20, 16 }
  0xa2   : > { %8420 = vmatpush3.bf16.msra.mxu1 %v8940_v4  ;;  %v1759_v55 = vor.u32 %v1758_v52, %v1754_v16  ;;  %v7428_v4 = vrot.slane %v7418_v23, 9  ;;  %v1784_v1 = vrot.slane %v1783_v3, 4  ;;  %v1806_v16 = vrot.slane %v1804_v36, 4  ;;  %v7420_v23 = vld [vmem:[%s9371_s26 + $0x60] sm:$0xe] }
  0xa3   : > { %8421 = vmatprep.subr.bf16.mxu1 %v8942_v38  ;;  %8330 = vmatmul.mubr.bf16.gmra.mxu0 %v7398_v58  ;;  %v7419_v58 = vld [vmem:[%s9371_s26 + $0x54] sm:$0xe]  ;;  %v2205_v60 = vsel %vm9642_vm5, %v2203_v22, %v2204_v9  ;;  %v1812_v48 = vrot.slane %v1810_v37, 5  ;;  %v1817_v52 = vrot.slane %v1815_v59, 4  ;;  %v1828_v43 = vshrl.u32 %v9970_v20, 16 }
  0xa4   : > { %v1760_v50 = vrot.slane %v1759_v55, 4  ;;  %8386 = vmatpush3.bf16.msra.mxu0 %v8938_v29  ;;  %v2202_v21 = vsel %vm9642_vm5, %v7428_v4, %v2201_v5  ;;  %v1789_v28 = vsel %vm9415_vm2, %v1784_v1, %v1788_v62  ;;  %v1797_v29 = vor.u32 %v1796_v45, %v1793_v26  ;;  %v10018_v5 = vld [vmem:[%s9371_s26 + $0x70] sm:$0xf] }
  0xa5   : > { %8366 = vmatmul.mubr.bf16.gmra.mxu1 %v7452_v47  ;;  %8387 = vmatprep.subr.bf16.mxu0 %v8941_v25  ;;  %v7400_v39 = vcombine.low %v1779_v18, %v1789_v28  ;;  %v7454_v47 = vcombine.low %v2202_v21, %v2205_v60  ;;  %v1807_v54 = vor.u32 %v1806_v16, %v1802_v2  ;;  %v1834_v6 = vshll.u32 %v9978_v27, 16 }
  0xa6   : > { %8422 = vmatpush3.bf16.msra.mxu1 %v8942_v38  ;;  %v1765_v35 = vsel %vm9415_vm2, %v1760_v50, %v1764_v46  ;;  %8369 = vmatprep.mubr.bf16.mxu1 %v7453_v19  ;;  %v8948_v38 = vld [vmem:[%s11490_s1 + $0x1d0] sm:$0xff]   ;;  %v1818_v46 = vshll.u32 %v7370_v7, 16  ;;  %v7429_v24 = vrot.slane %v7419_v58, 9  ;;  %v1798_v55 = vrot.slane %v1797_v29, 4  ;;  %v8950_v58 = vld [vmem:[%s11490_s1 + $0x180] sm:$0xff]  }
  0xa7   : > { %8423 = vmatprep.subr.bf16.mxu1 %v8944_v42  ;;  %v7399_v13 = vcombine.low %v1755_v57, %v1765_v35  ;;  %v1826_v30 = vrot.slane %v1824_v53, 5  ;;  %v2208_v56 = vrot.slane %v9952_v41, 5  ;;  %v1808_v57 = vrot.slane %v1807_v54, 4  ;;  %v8951_v41 = vld [vmem:[%s11490_s1 + $0x1c0] sm:$0xff]   ;;  %v10021_v7 = vld [vmem:[%s9371_s26 + $0x74] sm:$0x1] }
  0xa8   : > { %8388 = vmatpush3.bf16.msra.mxu0 %v8941_v25  ;;  %v1820_v14 = vrot.slane %v1818_v46, 5  ;;  %v1830_v32 = vrot.slane %v1828_v43, 4  ;;  %v1836_v61 = vrot.slane %v1834_v6, 5  ;;  %v2211_v62 = vrot.slane %v9955_v51, 5 }
  0xa9   : > { %8333 = vmatprep.mubr.bf16.mxu0 %v7399_v13  ;;  %8389 = vmatprep.subr.bf16.mxu0 %v8943_v34  ;;  %v1803_v63 = vsel %vm9415_vm2, %v1798_v55, %v1802_v2  ;;  %v2209_v25 = vsel %vm9642_vm5, %v7429_v24, %v2208_v56  ;;  %v2210_v0 = vrot.slane %v2208_v56, 4  ;;  %v1813_v51 = vsel %vm9415_vm2, %v1808_v57, %v1812_v48  ;;  %v7422_v48 = vld [vmem:[%s9371_s26 + $0x78] sm:$0xe] }
  0xaa   : > { %8424 = vmatpush3.bf16.msra.mxu1 %v8944_v42  ;;  %v8949_v42 = vld [vmem:[%s11490_s1 + $0x1c8] sm:$0xff]   ;;  %v1821_v50 = vor.u32 %v1820_v14, %v1817_v52  ;;  %v1831_v44 = vor.u32 %v1830_v32, %v1826_v30  ;;  %v7430_v3 = vrot.slane %v7420_v23, 9  ;;  %v2215_v4 = vrot.slane %v9970_v20, 5  ;;  %v10030_v20 = vld [vmem:[%s9371_s26 + $0x7c] sm:$0xf] }
  0xab   : > { %8425 = vmatprep.subr.bf16.mxu1 %v8946_v8  ;;  %8334 = vmatmul.mubr.bf16.gmra.mxu0 %v7400_v39  ;;  %v2212_v49 = vsel %vm9642_vm5, %v2210_v0, %v2211_v62  ;;  %v2218_v9 = vrot.slane %v9978_v27, 5  ;;  %v1839_v22 = vshrl.u32 %v7373_v12, 16  ;;  %v1848_v26 = vshll.u32 %v10018_v5, 16  ;;  %v7421_v27 = vld [vmem:[%s9371_s26 + $0x6c] sm:$0xe] }
  0xac   : > { %8390 = vmatpush3.bf16.msra.mxu0 %v8943_v34  ;;  %v1822_v35 = vrot.slane %v1821_v50, 4  ;;  %v1832_v13 = vrot.slane %v1831_v44, 4  ;;  %v7455_v18 = vcombine.low %v2209_v25, %v2212_v49  ;;  %v2216_v1 = vsel %vm9642_vm5, %v7430_v3, %v2215_v4  ;;  %v7521_v25 = vld [vmem:[%s9371_s26 + $0x18] sm:$0xf]  ;;  %v10072_v44 = vld [vmem:[%s9371_s26 + $0x20] sm:$0x1] }
  0xad   : > { %8370 = vmatmul.mubr.bf16.gmra.mxu1 %v7454_v47  ;;  %8391 = vmatprep.subr.bf16.mxu0 %v8945_v33  ;;  %v2217_v19 = vrot.slane %v2215_v4, 4  ;;  %v1842_v34 = vshll.u32 %v7373_v12, 16  ;;  %v1852_v36 = vshrl.u32 %v10018_v5, 16  ;;  %v1858_v37 = vshll.u32 %v10021_v7, 16 }
  0xae   : > { %8426 = vmatpush3.bf16.msra.mxu1 %v8946_v8  ;;  %v7401_v8 = vcombine.low %v1803_v63, %v1813_v51  ;;  %v1827_v21 = vsel %vm9415_vm2, %v1822_v35, %v1826_v30  ;;  %v1837_v28 = vsel %vm9415_vm2, %v1832_v13, %v1836_v61  ;;  %8373 = vmatprep.mubr.bf16.mxu1 %v7455_v18  ;;  %v1841_v60 = vrot.slane %v1839_v22, 4  ;;  %v10069_v51 = vld [vmem:[%s9371_s26 + $0x1c] sm:$0xf]  ;;  %v10077_v35 = vld [vmem:[%s9371_s26 + $0x28] sm:$0xf] }
  0xaf   : > { %8427 = vmatprep.subr.bf16.mxu1 %v8948_v38  ;;  %v2219_v31 = vsel %vm9642_vm5, %v2217_v19, %v2218_v9  ;;  %v1844_v45 = vrot.slane %v1842_v34, 5  ;;  %v1850_v59 = vrot.slane %v1848_v26, 5  ;;  %v1854_v47 = vrot.slane %v1852_v36, 4  ;;  %v10094_v36 = vld [vmem:[%s9371_s26 + $0x2c] sm:$0x1] }
  0xb0   : > { %8392 = vmatpush3.bf16.msra.mxu0 %v8945_v33  ;;  %8337 = vmatprep.mubr.bf16.mxu0 %v7401_v8  ;;  %v7456_v39 = vcombine.low %v2216_v1, %v2219_v31  ;;  %v1860_v2 = vrot.slane %v1858_v37, 5  ;;  %v1863_v16 = vshrl.u32 %v7376_v10, 16  ;;  %v1866_v52 = vshll.u32 %v7376_v10, 16  ;;  %v10054_v33 = vld [vmem:[%s11490_s1 + $0x238] sm:$0xff]   ;;  %v7524_v8 = vld [vmem:[%s9371_s26 + $0x24] sm:$0xf] }
  0xb1   : > { %8393 = vmatprep.subr.bf16.mxu0 %v8947_v11  ;;  %v1845_v29 = vor.u32 %v1844_v45, %v1841_v60  ;;  %v1872_v46 = vshll.u32 %v10030_v20, 16  ;;  %v1876_v53 = vshrl.u32 %v10030_v20, 16  ;;  %v1855_v54 = vor.u32 %v1854_v47, %v1850_v59  ;;  %v7527_v45 = vld [vmem:[%s9371_s26 + $0x30] sm:$0xf] }
  0xb2   : > { %8428 = vmatpush3.bf16.msra.mxu1 %v8948_v38  ;;  %v7402_v38 = vcombine.low %v1827_v21, %v1837_v28  ;;  %v1865_v43 = vrot.slane %v1863_v16, 4  ;;  %v1882_v6 = vshll.u32 %v10036_v17, 16  ;;  %v7431_v24 = vrot.slane %v7421_v27, 9 }
  0xb3   : > { %8429 = vmatprep.subr.bf16.mxu1 %v8949_v42  ;;  %v1868_v55 = vrot.slane %v1866_v52, 5  ;;  %v1874_v14 = vrot.slane %v1872_v46, 5  ;;  %v1878_v30 = vrot.slane %v1876_v53, 4  ;;  %v1856_v56 = vrot.slane %v1855_v54, 4  ;;  %v10104_v54 = vld [vmem:[%s9371_s26 + $0x38] sm:$0x1] }
  0xb4   : > { %8394 = vmatpush3.bf16.msra.mxu0 %v8947_v11  ;;  %v1884_v23 = vrot.slane %v1882_v6, 5  ;;  %v2222_v57 = vrot.slane %v10018_v5, 5  ;;  %v2225_v32 = vrot.slane %v10021_v7, 5  ;;  %v7432_v50 = vrot.slane %v7422_v48, 9  ;;  %v10100_v48 = vld [vmem:[%s9371_s26 + $0x34] sm:$0xf] }
  0xb5   : > { %8338 = vmatmul.mubr.bf16.gmra.mxu0 %v7402_v38  ;;  %8374 = vmatmul.mubr.bf16.gmra.mxu1 %v7456_v39  ;;  %v1869_v62 = vor.u32 %v1868_v55, %v1865_v43  ;;  %v1879_v63 = vor.u32 %v1878_v30, %v1874_v14  ;;  %v1861_v0 = vsel %vm9415_vm2, %v1856_v56, %v1860_v2  ;;  %v2232_v7 = vrot.slane %v10036_v17, 5  ;;  %v8953_v43 = vld [vmem:[%s9371_s26 + $0x24] sm:$0xff]  }
  0xb6   : > { %8430 = vmatpush3.bf16.msra.mxu1 %v8949_v42  ;;  %8395 = vmatprep.subr.bf16.mxu0 %v8950_v58  ;;  %v1846_v42 = vrot.slane %v1845_v29, 4  ;;  %v2223_v11 = vsel %vm9642_vm5, %v7431_v24, %v2222_v57  ;;  %v2224_v12 = vrot.slane %v2222_v57, 4  ;;  %v2782_v13 = vshrl.u32 %v7521_v25, 16  ;;  %v8956_v57 = vld [vmem:[%s9371_s26 + $0x30] sm:$0xff]  }
  0xb7   : > { %8431 = vmatprep.subr.bf16.mxu1 %v8951_v41  ;;  %v1870_v4 = vrot.slane %v1869_v62, 4  ;;  %v1880_v5 = vrot.slane %v1879_v63, 4  ;;  %v2785_v21 = vshll.u32 %v7521_v25, 16  ;;  %v2791_v17 = vshll.u32 %v10069_v51, 16 }
  0xb8   : > { %8396 = vmatpush3.bf16.msra.mxu0 %v8950_v58  ;;  %v1851_v61 = vsel %vm9415_vm2, %v1846_v42, %v1850_v59  ;;  %v2226_v49 = vsel %vm9642_vm5, %v2224_v12, %v2225_v32  ;;  %v2784_v26 = vrot.slane %v2782_v13, 4  ;;  %v2795_v28 = vshrl.u32 %v10069_v51, 16 }
  0xb9   : > { %8453 = vmatprep.subr.bf16.mxu0 %v10054_v33  ;;  %v7403_v3 = vcombine.low %v1851_v61, %v1861_v0  ;;  %v1875_v18 = vsel %vm9415_vm2, %v1870_v4, %v1874_v14  ;;  %v1885_v1 = vsel %vm9415_vm2, %v1880_v5, %v1884_v23  ;;  %v7457_v19 = vcombine.low %v2223_v11, %v2226_v49  ;;  %v7530_v14 = vld [vmem:[%s9371_s26 + $0x3c] sm:$0xf]  ;;  %v8955_v23 = vld [vmem:[%s11490_s1 + $0x230] sm:$0xff]   ;;  %v10116_v0 = vld [vmem:[%s9371_s26 + $0x40] sm:$0xf] }
  0xba   : > { %8432 = vmatpush3.bf16.msra.mxu1 %v8951_v41  ;;  %v2229_v41 = vrot.slane %v10030_v20, 5  ;;  %v8952_v20 = vld [vmem:[%s9371_s26 + $0x18] sm:$0xff]   ;;  %v7404_v22 = vcombine.low %v1875_v18, %v1885_v1  ;;  %v2787_v58 = vrot.slane %v2785_v21, 5  ;;  %v2801_v31 = vshll.u32 %v10072_v44, 16  ;;  %v10120_v4 = vld [vmem:[%s9371_s26 + $0x44] sm:$0x1] }
  0xbb   : > { %8341 = vmatprep.mubr.bf16.mxu0 %v7403_v3  ;;  %8377 = vmatprep.mubr.bf16.mxu1 %v7457_v19  ;;  %v2793_v37 = vrot.slane %v2791_v17, 5  ;;  %v2806_v38 = vshrl.u32 %v7524_v8, 16  ;;  %v2809_v39 = vshll.u32 %v7524_v8, 16  ;;  %v2815_v60 = vshll.u32 %v10077_v35, 16 }
  0xbc   : > { %v2230_v9 = vsel %vm9642_vm5, %v7432_v50, %v2229_v41  ;;  %v2231_v10 = vrot.slane %v2229_v41, 4  ;;  %v2788_v59 = vor.u32 %v2787_v58, %v2784_v26  ;;  %v2797_v47 = vrot.slane %v2795_v28, 4  ;;  %v10136_v58 = vld [vmem:[%s9371_s26 + $0x4c] sm:$0xf] }
  0xbd   : > { %8342 = vmatmul.mubr.bf16.gmra.mxu0 %v7404_v22  ;;  %v2803_v2 = vrot.slane %v2801_v31, 5  ;;  %v2819_v16 = vshrl.u32 %v10077_v35, 16  ;;  %v2808_v29 = vrot.slane %v2806_v38, 4  ;;  %v2811_v52 = vrot.slane %v2809_v39, 5  ;;  %v8958_v22 = vld [vmem:[%s11490_s1 + $0x228] sm:$0xff]  }
  0xbe   : > { %v2233_v34 = vsel %vm9642_vm5, %v2231_v10, %v2232_v7  ;;  %8397 = vmatprep.mubr.bf16.mxu0 %v8952_v20  ;;  %v2817_v46 = vrot.slane %v2815_v60, 5  ;;  %v2825_v53 = vshll.u32 %v10094_v36, 16  ;;  %v2789_v6 = vrot.slane %v2788_v59, 4  ;;  %v10141_v38 = vld [vmem:[%s9371_s26 + $0x50] sm:$0x1]  ;;  %v8957_v60 = vld [vmem:[%s9371_s26 + $0x3c] sm:$0xff]  }
  0xbf   : > { %v7458_v27 = vcombine.low %v2230_v9, %v2233_v34  ;;  %v2798_v24 = vor.u32 %v2797_v47, %v2793_v37  ;;  %v2821_v42 = vrot.slane %v2819_v16, 4  ;;  %v2830_v55 = vshrl.u32 %v7527_v45, 16  ;;  %v7536_v16 = vld [vmem:[%s9371_s26 + $0x54] sm:$0xf] }
  0xc0   : > { %v2812_v30 = vor.u32 %v2811_v52, %v2808_v29  ;;  %v2827_v56 = vrot.slane %v2825_v53, 5  ;;  %v2833_v32 = vshll.u32 %v7527_v45, 16  ;;  %v2839_v61 = vshll.u32 %v10100_v48, 16  ;;  %v8959_v53 = vld [vmem:[%s9371_s26 + $0x48] sm:$0xff]  }
  0xc1   : > { %8378 = vmatmul.mubr.bf16.gmra.mxu1 %v7458_v27  ;;  %v2794_v62 = vsel %vm9415_vm2, %v2789_v6, %v2793_v37  ;;  %v2799_v63 = vrot.slane %v2798_v24, 4  ;;  %v2822_v50 = vor.u32 %v2821_v42, %v2817_v46  ;;  %v2832_v25 = vrot.slane %v2830_v55, 4  ;;  %v7533_v27 = vld [vmem:[%s9371_s26 + $0x48] sm:$0xf]  ;;  %v10149_v6 = vld [vmem:[%s9371_s26 + $0x58] sm:$0xf] }
  0xc2   : > { %v2813_v11 = vrot.slane %v2812_v30, 4  ;;  %v2835_v12 = vrot.slane %v2833_v32, 5  ;;  %v2841_v41 = vrot.slane %v2839_v61, 5  ;;  %v2843_v3 = vshrl.u32 %v10100_v48, 16  ;;  %v8960_v42 = vld [vmem:[%s11490_s1 + $0x220] sm:$0xff]  }
  0xc3   : > { %v2804_v5 = vsel %vm9415_vm2, %v2799_v63, %v2803_v2  ;;  %v2823_v7 = vrot.slane %v2822_v50, 4  ;;  %v2849_v8 = vshll.u32 %v10104_v54, 16  ;;  %v2854_v49 = vshrl.u32 %v7530_v14, 16 }
  0xc4   : > { %v7567_v9 = vcombine.low %v2794_v62, %v2804_v5  ;;  %v2818_v10 = vsel %vm9415_vm2, %v2813_v11, %v2817_v46  ;;  %v2836_v13 = vor.u32 %v2835_v12, %v2832_v25  ;;  %v2845_v18 = vrot.slane %v2843_v3, 4 }
  0xc5   : > { %8398 = vmatmul.mubr.bf16.vlgmr.msra.gmra.mxu0 %v8953_v43  ;;  %v2828_v1 = vsel %vm9415_vm2, %v2823_v7, %v2827_v56  ;;  %v2851_v19 = vrot.slane %v2849_v8, 5  ;;  %v2856_v20 = vrot.slane %v2854_v49, 4  ;;  %v2857_v21 = vshll.u32 %v7530_v14, 16  ;;  %v10159_v56 = vld [vmem:[%s9371_s26 + $0x5c] sm:$0x1] }
  0xc6   : > { %8454 = vmatpush3.bf16.msra.mxu0 %v10054_v33  ;;  %8401 = vmatprep.mubr.bf16.mxu0 %v8956_v57  ;;  %v7568_v34 = vcombine.low %v2818_v10, %v2828_v1  ;;  %v2837_v26 = vrot.slane %v2836_v13, 4  ;;  %v2846_v17 = vor.u32 %v2845_v18, %v2841_v41  ;;  %v2863_v33 = vshll.u32 %v10116_v0, 16  ;;  %v8961_v13 = vld [vmem:[%s9371_s26 + $0x54] sm:$0xff]  }
  0xc7   : > { %8433 = vmatprep.mubr.bf16.mxu1 %v7567_v9  ;;  %8455 = vmatprep.subr.bf16.mxu0 %v8955_v23  ;;  %v2859_v28 = vrot.slane %v2857_v21, 5  ;;  %v2867_v31 = vshrl.u32 %v10116_v0, 16  ;;  %v2873_v37 = vshll.u32 %v10120_v4, 16  ;;  %v2878_v39 = vshrl.u32 %v7533_v27, 16  ;;  %v8962_v9 = vld [vmem:[%s11490_s1 + $0x218] sm:$0xff]  }
  0xc8   : > { %v2842_v45 = vsel %vm9415_vm2, %v2837_v26, %v2841_v41  ;;  %v2847_v59 = vrot.slane %v2846_v17, 4  ;;  %v2865_v47 = vrot.slane %v2863_v33, 5  ;;  %v2881_v2 = vshll.u32 %v7533_v27, 16  ;;  %v7539_v26 = vld [vmem:[%s9371_s26 + $0x60] sm:$0xf] }
  0xc9   : > { %8434 = vmatmul.mubr.bf16.vlgmr.msra.gmra.mxu1 %v7568_v34  ;;  %v2860_v29 = vor.u32 %v2859_v28, %v2856_v20  ;;  %v2869_v52 = vrot.slane %v2867_v31, 4  ;;  %v2875_v46 = vrot.slane %v2873_v37, 5  ;;  %v2880_v43 = vrot.slane %v2878_v39, 4  ;;  %v10177_v17 = vld [vmem:[%s9371_s26 + $0x64] sm:$0xf] }
  0xca   : > { %8456 = vmatpush3.bf16.msra.mxu0 %v8955_v23  ;;  %v2852_v24 = vsel %vm9415_vm2, %v2847_v59, %v2851_v19  ;;  %v2883_v55 = vrot.slane %v2881_v2, 5  ;;  %v2887_v14 = vshll.u32 %v10136_v58, 16  ;;  %v2891_v30 = vshrl.u32 %v10136_v58, 16  ;;  %v8963_v31 = vld [vmem:[%s9371_s26 + $0x60] sm:$0xff]   ;;  %v10181_v37 = vld [vmem:[%s9371_s26 + $0x68] sm:$0x1] }
  0xcb   : > { %8457 = vmatprep.subr.bf16.mxu0 %v8958_v22  ;;  %v7569_v23 = vcombine.low %v2842_v45, %v2852_v24  ;;  %v2861_v57 = vrot.slane %v2860_v29, 4  ;;  %v2870_v32 = vor.u32 %v2869_v52, %v2865_v47  ;;  %v2897_v61 = vshll.u32 %v10141_v38, 16  ;;  %v8965_v2 = vld [vmem:[%s11490_s1 + $0x210] sm:$0xff]  }
  0xcc   : > { %v2884_v62 = vor.u32 %v2883_v55, %v2880_v43  ;;  %v2889_v63 = vrot.slane %v2887_v14, 5  ;;  %v2893_v50 = vrot.slane %v2891_v30, 4  ;;  %v2902_v25 = vshrl.u32 %v7536_v16, 16  ;;  %v10193_v14 = vld [vmem:[%s9371_s26 + $0x70] sm:$0xf] }
  0xcd   : > { %8402 = vmatmul.mubr.bf16.gmra.mxu0 %v8957_v60  ;;  %8437 = vmatprep.mubr.bf16.mxu1 %v7569_v23  ;;  %v2866_v11 = vsel %vm9415_vm2, %v2861_v57, %v2865_v47  ;;  %v2871_v12 = vrot.slane %v2870_v32, 4  ;;  %v2899_v41 = vrot.slane %v2897_v61, 5  ;;  %v2905_v3 = vshll.u32 %v7536_v16, 16  ;;  %v10198_v57 = vld [vmem:[%s9371_s26 + $0x74] sm:$0x1] }
  0xce   : > { %8458 = vmatpush3.bf16.msra.mxu0 %v8958_v22  ;;  %8405 = vmatprep.mubr.bf16.mxu0 %v8959_v53  ;;  %v2885_v5 = vrot.slane %v2884_v62, 4  ;;  %v2894_v7 = vor.u32 %v2893_v50, %v2889_v63  ;;  %v2904_v8 = vrot.slane %v2902_v25, 4  ;;  %v2911_v49 = vshll.u32 %v10149_v6, 16  ;;  %v7542_v53 = vld [vmem:[%s9371_s26 + $0x6c] sm:$0xf] }
  0xcf   : > { %8459 = vmatprep.subr.bf16.mxu0 %v8960_v42  ;;  %v2876_v10 = vsel %vm9415_vm2, %v2871_v12, %v2875_v46  ;;  %v2907_v18 = vrot.slane %v2905_v3, 5  ;;  %v2915_v1 = vshrl.u32 %v10149_v6, 16  ;;  %v2921_v19 = vshll.u32 %v10159_v56, 16  ;;  %v8966_v62 = vld [vmem:[%s11490_s1 + $0x208] sm:$0xff]  }
  0xd0   : > { %v7570_v20 = vcombine.low %v2866_v11, %v2876_v10  ;;  %v2890_v21 = vsel %vm9415_vm2, %v2885_v5, %v2889_v63  ;;  %v2895_v22 = vrot.slane %v2894_v7, 4  ;;  %v2913_v34 = vrot.slane %v2911_v49, 5 }
  0xd1   : > { %v2908_v33 = vor.u32 %v2907_v18, %v2904_v8  ;;  %v2917_v27 = vrot.slane %v2915_v1, 4  ;;  %v2923_v28 = vrot.slane %v2921_v19, 5  ;;  %v2926_v39 = vshrl.u32 %v7539_v26, 16 }
  0xd2   : > { %8460 = vmatpush3.bf16.msra.mxu0 %v8960_v42  ;;  %8438 = vmatmul.mubr.bf16.gmra.mxu1 %v7570_v20  ;;  %v2900_v60 = vsel %vm9415_vm2, %v2895_v22, %v2899_v41  ;;  %v2929_v45 = vshll.u32 %v7539_v26, 16  ;;  %v2935_v59 = vshll.u32 %v10177_v17, 16  ;;  %v2939_v47 = vshrl.u32 %v10177_v17, 16  ;;  %v8964_v41 = vld [vmem:[%s9371_s26 + $0x6c] sm:$0xff]   ;;  %v8969_v20 = vld [vmem:[%s11490_s1 + $0x200] sm:$0xff]  }
  0xd3   : > { %8461 = vmatprep.subr.bf16.mxu0 %v8962_v9  ;;  %v7571_v16 = vcombine.low %v2890_v21, %v2900_v60  ;;  %v2909_v29 = vrot.slane %v2908_v33, 4  ;;  %v2918_v52 = vor.u32 %v2917_v27, %v2913_v34  ;;  %v2928_v46 = vrot.slane %v2926_v39, 4  ;;  %v10219_v26 = vld [vmem:[%s9371_s26 + $0x7c] sm:$0xf]  ;;  %v10222_v33 = vld [vmem:[%s9371_s26 + $0x80] sm:$0x1] }
  0xd4   : > { %v2931_v43 = vrot.slane %v2929_v45, 5  ;;  %v2937_v24 = vrot.slane %v2935_v59, 5  ;;  %v2941_v42 = vrot.slane %v2939_v47, 4  ;;  %v2945_v55 = vshll.u32 %v10181_v37, 16  ;;  %v7548_v60 = vld [vmem:[%s9371_s26 + $0x84] sm:$0xf] }
  0xd5   : > { %8406 = vmatmul.mubr.bf16.gmra.mxu0 %v8961_v13  ;;  %8441 = vmatprep.mubr.bf16.mxu1 %v7571_v16  ;;  %v2914_v30 = vsel %vm9415_vm2, %v2909_v29, %v2913_v34  ;;  %v2919_v23 = vrot.slane %v2918_v52, 4  ;;  %v2950_v32 = vshrl.u32 %v7542_v53, 16  ;;  %v2953_v61 = vshll.u32 %v7542_v53, 16  ;;  %v8967_v13 = vld [vmem:[%s9371_s26 + $0x78] sm:$0xff]   ;;  %v10226_v45 = vld [vmem:[%s9371_s26 + $0x88] sm:$0xf] }
  0xd6   : > { %8462 = vmatpush3.bf16.msra.mxu0 %v8962_v9  ;;  %8409 = vmatprep.mubr.bf16.mxu0 %v8963_v31  ;;  %v2932_v63 = vor.u32 %v2931_v43, %v2928_v46  ;;  %v2942_v50 = vor.u32 %v2941_v42, %v2937_v24  ;;  %v2947_v25 = vrot.slane %v2945_v55, 5  ;;  %v2959_v11 = vshll.u32 %v10193_v14, 16  ;;  %v7545_v34 = vld [vmem:[%s9371_s26 + $0x78] sm:$0xf]  ;;  %v10231_v29 = vld [vmem:[%s9371_s26 + $0x8c] sm:$0x1] }
  0xd7   : > { %8463 = vmatprep.subr.bf16.mxu0 %v8965_v2  ;;  %v2924_v12 = vsel %vm9415_vm2, %v2919_v23, %v2923_v28  ;;  %v2952_v3 = vrot.slane %v2950_v32, 4  ;;  %v2955_v5 = vrot.slane %v2953_v61, 5  ;;  %v2963_v7 = vshrl.u32 %v10193_v14, 16 }
  0xd8   : > { %v7572_v8 = vcombine.low %v2914_v30, %v2924_v12  ;;  %v2933_v49 = vrot.slane %v2932_v63, 4  ;;  %v2943_v9 = vrot.slane %v2942_v50, 4  ;;  %v2961_v10 = vrot.slane %v2959_v11, 5  ;;  %v7585_v50 = vld [vmem:[%s9371_s26 + $0x18] sm:$0xe]  ;;  %v8968_v11 = vld [vmem:[%s9371_s26 + $0x84] sm:$0xff]  }
  0xd9   : > { %v2956_v18 = vor.u32 %v2955_v5, %v2952_v3  ;;  %v2965_v1 = vrot.slane %v2963_v7, 4  ;;  %v2969_v19 = vshll.u32 %v10198_v57, 16  ;;  %v2974_v59 = vshrl.u32 %v7545_v34, 16 }
  0xda   : > { %8464 = vmatpush3.bf16.msra.mxu0 %v8965_v2  ;;  %8442 = vmatmul.mubr.bf16.gmra.mxu1 %v7572_v8  ;;  %v2938_v21 = vsel %vm9415_vm2, %v2933_v49, %v2937_v24  ;;  %v2948_v22 = vsel %vm9415_vm2, %v2943_v9, %v2947_v25  ;;  %v2977_v47 = vshll.u32 %v7545_v34, 16  ;;  %v2983_v2 = vshll.u32 %v10219_v26, 16  ;;  %v7587_v34 = vld [vmem:[%s9371_s26 + $0x30] sm:$0xe] }
  0xdb   : > { %8465 = vmatprep.subr.bf16.mxu0 %v8966_v62  ;;  %v7573_v27 = vcombine.low %v2938_v21, %v2948_v22  ;;  %v2957_v28 = vrot.slane %v2956_v18, 4  ;;  %v2966_v31 = vor.u32 %v2965_v1, %v2961_v10  ;;  %v2971_v39 = vrot.slane %v2969_v19, 5  ;;  %v7586_v18 = vld [vmem:[%s9371_s26 + $0x24] sm:$0xe] }
  0xdc   : > { %v2987_v16 = vshrl.u32 %v10219_v26, 16  ;;  %v2993_v53 = vshll.u32 %v10222_v33, 16  ;;  %v2998_v43 = vshrl.u32 %v7548_v60, 16  ;;  %v2976_v24 = vrot.slane %v2974_v59, 4 }
  0xdd   : > { %8410 = vmatmul.mubr.bf16.gmra.mxu0 %v8964_v41  ;;  %8445 = vmatprep.mubr.bf16.mxu1 %v7573_v27  ;;  %v2962_v52 = vsel %vm9415_vm2, %v2957_v28, %v2961_v10  ;;  %v2967_v46 = vrot.slane %v2966_v31, 4  ;;  %v2979_v42 = vrot.slane %v2977_v47, 5  ;;  %v2985_v55 = vrot.slane %v2983_v2, 5 }
  0xde   : > { %8413 = vmatprep.mubr.bf16.mxu0 %v8967_v13  ;;  %8466 = vmatpush3.bf16.msra.mxu0 %v8966_v62  ;;  %v2989_v30 = vrot.slane %v2987_v16, 4  ;;  %v2995_v32 = vrot.slane %v2993_v53, 5  ;;  %v3000_v61 = vrot.slane %v2998_v43, 4  ;;  %v3001_v63 = vshll.u32 %v7548_v60, 16 }
  0xdf   : > { %v2972_v23 = vsel %vm9415_vm2, %v2967_v46, %v2971_v39  ;;  %8467 = vmatprep.subr.bf16.mxu0 %v8969_v20  ;;  %v2980_v12 = vor.u32 %v2979_v42, %v2976_v24  ;;  %v3007_v3 = vshll.u32 %v10226_v45, 16  ;;  %v3011_v5 = vshrl.u32 %v10226_v45, 16  ;;  %v7588_v24 = vld [vmem:[%s9371_s26 + $0x3c] sm:$0xe] }
  0xe0   : > { %v7574_v25 = vcombine.low %v2962_v52, %v2972_v23  ;;  %v2990_v41 = vor.u32 %v2989_v30, %v2985_v55  ;;  %v3003_v62 = vrot.slane %v3001_v63, 5  ;;  %v3017_v7 = vshll.u32 %v10231_v29, 16  ;;  %v7589_v23 = vld [vmem:[%s9371_s26 + $0x48] sm:$0xe] }
  0xe1   : > { %v7595_v8 = vrot.slane %v7585_v50, 9  ;;  %v2981_v49 = vrot.slane %v2980_v12, 4  ;;  %v3009_v10 = vrot.slane %v3007_v3, 5  ;;  %v3301_v13 = vrot.slane %v10069_v51, 5 }
  0xe2   : > { %8446 = vmatmul.mubr.bf16.gmra.mxu1 %v7574_v25  ;;  %v2991_v9 = vrot.slane %v2990_v41, 4  ;;  %8468 = vmatpush3.bf16.msra.mxu0 %v8969_v20  ;;  %v3004_v1 = vor.u32 %v3003_v62, %v3000_v61  ;;  %v3013_v19 = vrot.slane %v3011_v5, 4  ;;  %v3019_v21 = vrot.slane %v3017_v7, 5 }
  0xe3   : > { %v3304_v22 = vrot.slane %v10072_v44, 5  ;;  %v2986_v27 = vsel %vm9415_vm2, %v2981_v49, %v2985_v55  ;;  %v3302_v20 = vsel %vm9642_vm5, %v7595_v8, %v3301_v13  ;;  %v3303_v31 = vrot.slane %v3301_v13, 4 }
  0xe4   : > { %v2996_v28 = vsel %vm9415_vm2, %v2991_v9, %v2995_v32  ;;  %v3005_v39 = vrot.slane %v3004_v1, 4  ;;  %v3014_v60 = vor.u32 %v3013_v19, %v3009_v10  ;;  %v7596_v59 = vrot.slane %v7586_v18, 9  ;;  %v7590_v9 = vld [vmem:[%s9371_s26 + $0x54] sm:$0xe] }
  0xe5   : > { %8414 = vmatmul.mubr.bf16.gmra.mxu0 %v8968_v11  ;;  %v7575_v51 = vcombine.low %v2986_v27, %v2996_v28  ;;  %v3305_v44 = vsel %vm9642_vm5, %v3303_v31, %v3304_v22  ;;  %v3308_v47 = vrot.slane %v10077_v35, 5  ;;  %v3311_v2 = vrot.slane %v10094_v36, 5  ;;  %v7592_v31 = vld [vmem:[%s9371_s26 + $0x6c] sm:$0xe] }
  0xe6   : > { %v7597_v16 = vrot.slane %v7587_v34, 9  ;;  %v3010_v52 = vsel %vm9415_vm2, %v3005_v39, %v3009_v10  ;;  %v3015_v46 = vrot.slane %v3014_v60, 4  ;;  %v7621_v53 = vcombine.low %v3302_v20, %v3305_v44 }
  0xe7   : > { %8449 = vmatprep.mubr.bf16.mxu1 %v7575_v51  ;;  %v3315_v43 = vrot.slane %v10100_v48, 5  ;;  %v3309_v42 = vsel %vm9642_vm5, %v7596_v59, %v3308_v47  ;;  %v3310_v55 = vrot.slane %v3308_v47, 4  ;;  %v3318_v30 = vrot.slane %v10104_v54, 5 }
  0xe8   : > { %v3020_v35 = vsel %vm9415_vm2, %v3015_v46, %v3019_v21  ;;  %8469 = vmatprep.mubr.bf16.mxu0 %v7621_v53  ;;  %v3322_v61 = vrot.slane %v10116_v0, 5  ;;  %v7598_v50 = vrot.slane %v7588_v24, 9  ;;  %v3325_v25 = vrot.slane %v10120_v4, 5 }
  0xe9   : > { %v3316_v36 = vsel %vm9642_vm5, %v7597_v16, %v3315_v43  ;;  %v3317_v32 = vrot.slane %v3315_v43, 4  ;;  %v7576_v63 = vcombine.low %v3010_v52, %v3020_v35  ;;  %v3312_v48 = vsel %vm9642_vm5, %v3310_v55, %v3311_v2  ;;  %v7594_v43 = vld [vmem:[%s9371_s26 + $0x84] sm:$0xe] }
  0xea   : > { %v7622_v54 = vcombine.low %v3309_v42, %v3312_v48  ;;  %v3324_v12 = vrot.slane %v3322_v61, 4  ;;  %v7599_v41 = vrot.slane %v7589_v23, 9  ;;  %v3329_v62 = vrot.slane %v10136_v58, 5 }
  0xeb   : > { %v3319_v11 = vsel %vm9642_vm5, %v3317_v32, %v3318_v30  ;;  %8450 = vmatmul.mubr.bf16.gmra.mxu1 %v7576_v63  ;;  %v3332_v0 = vrot.slane %v10141_v38, 5  ;;  %v3323_v5 = vsel %vm9642_vm5, %v7598_v50, %v3322_v61  ;;  %v3336_v8 = vrot.slane %v10149_v6, 5  ;;  %v7591_v38 = vld [vmem:[%s9371_s26 + $0x60] sm:$0xe] }
  0xec   : > { %v7623_v3 = vcombine.low %v3316_v36, %v3319_v11  ;;  %v3326_v4 = vsel %vm9642_vm5, %v3324_v12, %v3325_v25  ;;  %v3331_v7 = vrot.slane %v3329_v62, 4  ;;  %v3330_v49 = vsel %vm9642_vm5, %v7599_v41, %v3329_v62 }
  0xed   : > { %8470 = vmatmul.mubr.bf16.vlgmr.msra.gmra.mxu0 %v7622_v54  ;;  %v3343_v10 = vrot.slane %v10177_v17, 5  ;;  %v7624_v13 = vcombine.low %v3323_v5, %v3326_v4  ;;  %v7600_v1 = vrot.slane %v7590_v9, 9  ;;  %v3338_v19 = vrot.slane %v3336_v8, 4 }
  0xee   : > { %8473 = vmatprep.mubr.bf16.mxu0 %v7623_v3  ;;  %v3333_v58 = vsel %vm9642_vm5, %v3331_v7, %v3332_v0  ;;  %v3339_v21 = vrot.slane %v10159_v56, 5  ;;  %v7601_v22 = vrot.slane %v7591_v38, 9  ;;  %v3346_v34 = vrot.slane %v10181_v37, 5  ;;  %v7593_v37 = vld [vmem:[%s9371_s26 + $0x78] sm:$0xe] }
  0xef   : > { %v7625_v18 = vcombine.low %v3330_v49, %v3333_v58  ;;  %v3345_v6 = vrot.slane %v3343_v10, 4  ;;  %v3337_v17 = vsel %vm9642_vm5, %v7600_v1, %v3336_v8  ;;  %v3350_v28 = vrot.slane %v10193_v14, 5 }
  0xf0   : > { %v3340_v27 = vsel %vm9642_vm5, %v3338_v19, %v3339_v21  ;;  %v3344_v20 = vsel %vm9642_vm5, %v7601_v22, %v3343_v10  ;;  %v3357_v51 = vrot.slane %v10219_v26, 5  ;;  %v7602_v59 = vrot.slane %v7592_v31, 9 }
  0xf1   : > { %v3347_v56 = vsel %vm9642_vm5, %v3345_v6, %v3346_v34  ;;  %v7626_v39 = vcombine.low %v3337_v17, %v3340_v27  ;;  %v3352_v44 = vrot.slane %v3350_v28, 4  ;;  %v3353_v47 = vrot.slane %v10198_v57, 5 }
  0xf2   : > { %v7627_v60 = vcombine.low %v3344_v20, %v3347_v56  ;;  %v7603_v2 = vrot.slane %v7593_v37, 9  ;;  %v3359_v16 = vrot.slane %v3357_v51, 4  ;;  %v3360_v14 = vrot.slane %v10222_v33, 5 }
  0xf3   : > { %v3351_v52 = vsel %vm9642_vm5, %v7602_v59, %v3350_v28  ;;  %v3354_v26 = vsel %vm9642_vm5, %v3352_v44, %v3353_v47  ;;  %v3364_v46 = vrot.slane %v10226_v45, 5  ;;  %v7604_v33 = vrot.slane %v7594_v43, 9 }
  0xf4   : > { %v3358_v53 = vsel %vm9642_vm5, %v7603_v2, %v3357_v51  ;;  %v3361_v57 = vsel %vm9642_vm5, %v3359_v16, %v3360_v14  ;;  %v7628_v24 = vcombine.low %v3351_v52, %v3354_v26  ;;  %v3367_v30 = vrot.slane %v10231_v29, 5 }
  0xf5   : > { %8474 = vmatmul.mubr.bf16.gmra.mxu0 %v7624_v13  ;;  %v7629_v42 = vcombine.low %v3358_v53, %v3361_v57  ;;  %v3366_v55 = vrot.slane %v3364_v46, 4  ;;  %v3365_v45 = vsel %vm9642_vm5, %v7604_v33, %v3364_v46 }
  0xf6   : > { %8477 = vmatprep.mubr.bf16.mxu0 %v7625_v18 }
  0xf7   : > { %v3368_v61 = vsel %vm9642_vm5, %v3366_v55, %v3367_v30 }
  0xf8   : > { %v7630_v54 = vcombine.low %v3365_v45, %v3368_v61 }
  0xfd   : > { %8478 = vmatmul.mubr.bf16.gmra.mxu0 %v7626_v39 }
  0xfe   : > { %8481 = vmatprep.mubr.bf16.mxu0 %v7627_v60 }
 0x105   : > { %8482 = vmatmul.mubr.bf16.gmra.mxu0 %v7628_v24 }
 0x106   : > { %8485 = vmatprep.mubr.bf16.mxu0 %v7629_v42 }
 0x10b   : > { %v8183_v23 = vpop.f32.mrf.mxu0 }
 0x10d   : > { %v8219_v35 = vpop.f32.mrf.mxu1  ;;  %v696_v32 = vpop.f32.mrf.mxu0  ;;  %8486 = vmatmul.mubr.bf16.gmra.mxu0 %v7630_v54 }
 0x10e   : > { %v10316_v36 = vadd.f32 %v8219_v35, %v8183_v23 }
 0x10f   : > { %v917_v63 = vpop.f32.mrf.mxu1  ;;  %v8184_v50 = vpop.f32.mrf.mxu0 }
 0x110   : > { %v10322_v48 = vadd.f32 %v917_v63, %v696_v32 }
 0x111   : > { %v8220_v25 = vpop.f32.mrf.mxu1  ;;  %v699_v11 = vpop.f32.mrf.mxu0 }
 0x112   : > { %v10324_v29 = vadd.f32 %v8220_v25, %v8184_v50 }
 0x113   : > { %v920_v12 = vpop.f32.mrf.mxu1  ;;  %v8187_v3 = vpop.f32.mrf.mxu0 }
 0x114   : > { %v10326_v41 = vadd.f32 %v920_v12, %v699_v11 }
 0x115   : > { %v8223_v62 = vpop.f32.mrf.mxu1  ;;  %v712_v5 = vpop.f32.mrf.mxu0 }
 0x116   : > { %v10328_v0 = vadd.f32 %v8223_v62, %v8187_v3 }
 0x117   : > { %v933_v15 = vpop.f32.mrf.mxu1  ;;  %v8188_v7 = vpop.f32.mrf.mxu0 }
 0x118   : > { %v10330_v4 = vadd.f32 %v933_v15, %v712_v5 }
 0x119   : > { %v8224_v8 = vpop.f32.mrf.mxu1  ;;  %v715_v9 = vpop.f32.mrf.mxu0 }
 0x11a   : > { %v10332_v49 = vadd.f32 %v8224_v8, %v8188_v7 }
 0x11b   : > { %v936_v10 = vpop.f32.mrf.mxu1  ;;  %v8191_v38 = vpop.f32.mrf.mxu0 }
 0x11c   : > { %v10334_v58 = vadd.f32 %v936_v10, %v715_v9 }
 0x11d   : > { %v8227_v13 = vpop.f32.mrf.mxu1  ;;  %v728_v1 = vpop.f32.mrf.mxu0 }
 0x11e   : > { %v10336_v18 = vadd.f32 %v8227_v13, %v8191_v38 }
 0x11f   : > { %v949_v19 = vpop.f32.mrf.mxu1  ;;  %v8192_v22 = vpop.f32.mrf.mxu0 }
 0x120   : > { %v10338_v21 = vadd.f32 %v949_v19, %v728_v1 }
 0x121   : > { %v8228_v6 = vpop.f32.mrf.mxu1  ;;  %v731_v17 = vpop.f32.mrf.mxu0 }
 0x122   : > { %v10340_v34 = vadd.f32 %v8228_v6, %v8192_v22 }
 0x123   : > { %v952_v27 = vpop.f32.mrf.mxu1  ;;  %v8195_v56 = vpop.f32.mrf.mxu0 }
 0x124   : > { %v10342_v28 = vadd.f32 %v952_v27, %v731_v17 }
 0x125   : > { %v8231_v20 = vpop.f32.mrf.mxu1  ;;  %v744_v37 = vpop.f32.mrf.mxu0 }
 0x126   : > { %v10344_v31 = vadd.f32 %v8231_v20, %v8195_v56 }
 0x127   : > { %v965_v51 = vpop.f32.mrf.mxu1  ;;  %v8196_v59 = vpop.f32.mrf.mxu0 }
 0x128   : > { %v10346_v39 = vadd.f32 %v965_v51, %v744_v37 }
 0x129   : > { %v8232_v60 = vpop.f32.mrf.mxu1  ;;  %v747_v2 = vpop.f32.mrf.mxu0 }
 0x12a   : > { %v10348_v44 = vadd.f32 %v8232_v60, %v8196_v59 }
 0x12b   : > { %v968_v47 = vpop.f32.mrf.mxu1  ;;  %v8199_v26 = vpop.f32.mrf.mxu0 }
 0x12c   : > { %v10350_v16 = vadd.f32 %v968_v47, %v747_v2 }
 0x12d   : > { %v8235_v14 = vpop.f32.mrf.mxu1  ;;  %v760_v57 = vpop.f32.mrf.mxu0 }
 0x12e   : > { %v10352_v46 = vadd.f32 %v8235_v14, %v8199_v26 }
 0x12f   : > { %v981_v52 = vpop.f32.mrf.mxu1  ;;  %v8200_v42 = vpop.f32.mrf.mxu0 }
 0x130   : > { %v10354_v43 = vadd.f32 %v981_v52, %v760_v57 }
 0x131   : > { %v8236_v53 = vpop.f32.mrf.mxu1  ;;  %v763_v30 = vpop.f32.mrf.mxu0 }
 0x132   : > { %v10356_v33 = vadd.f32 %v8236_v53, %v8200_v42 }
 0x133   : > { %v984_v24 = vpop.f32.mrf.mxu1  ;;  %v8255_v32 = vpop.f32.mrf.mxu0 }
 0x134   : > { %v10358_v23 = vadd.f32 %v984_v24, %v763_v30  ;;  %v1319_v45 = vadd.f32 %v8255_v32, %v10316_v36 }
 0x135   : > { %v8291_v55 = vpop.f32.mrf.mxu1  ;;  %v1238_v63 = vpop.f32.mrf.mxu0 }
 0x136   : > { %v1317_v50 = vadd.f32 %v1238_v63, %v10322_v48  ;;  %v10362_v25 = vadd.f32 %v8291_v55, %v1319_v45 }
 0x137   : > { %v1517_v35 = vpop.f32.mrf.mxu1  ;;  %v8256_v11 = vpop.f32.mrf.mxu0 }
 0x138   : > { %v1320_v12 = vadd.f32 %v8256_v11, %v10324_v29  ;;  %v10365_v3 = vadd.f32 %v1517_v35, %v1317_v50 }
 0x139   : > { %v8292_v61 = vpop.f32.mrf.mxu1  ;;  %v1241_v5 = vpop.f32.mrf.mxu0 }
 0x13a   : > { %v1318_v15 = vadd.f32 %v1241_v5, %v10326_v41  ;;  %v10368_v7 = vadd.f32 %v8292_v61, %v1320_v12 }
 0x13b   : > { %v1520_v54 = vpop.f32.mrf.mxu1  ;;  %v8259_v36 = vpop.f32.mrf.mxu0 }
 0x13c   : > { %v1323_v9 = vadd.f32 %v8259_v36, %v10328_v0  ;;  %v10371_v10 = vadd.f32 %v1520_v54, %v1318_v15 }
 0x13d   : > { %v8295_v62 = vpop.f32.mrf.mxu1  ;;  %v1254_v38 = vpop.f32.mrf.mxu0 }
 0x13e   : > { %v1321_v13 = vadd.f32 %v1254_v38, %v10330_v4  ;;  %v10374_v1 = vadd.f32 %v8295_v62, %v1323_v9 }
 0x13f   : > { %v1533_v8 = vpop.f32.mrf.mxu1  ;;  %v8260_v19 = vpop.f32.mrf.mxu0 }
 0x140   : > { %v1324_v22 = vadd.f32 %v8260_v19, %v10332_v49  ;;  %v10377_v6 = vadd.f32 %v1533_v8, %v1321_v13 }
 0x141   : > { %v8296_v48 = vpop.f32.mrf.mxu1  ;;  %v1257_v17 = vpop.f32.mrf.mxu0 }
 0x142   : > { %v1322_v27 = vadd.f32 %v1257_v17, %v10334_v58  ;;  %v10380_v20 = vadd.f32 %v8296_v48, %v1324_v22 }
 0x143   : > { %v1536_v29 = vpop.f32.mrf.mxu1  ;;  %v8263_v56 = vpop.f32.mrf.mxu0 }
 0x144   : > { %v1327_v51 = vadd.f32 %v8263_v56, %v10336_v18  ;;  %v10383_v37 = vadd.f32 %v1536_v29, %v1322_v27 }
 0x145   : > { %v8299_v41 = vpop.f32.mrf.mxu1  ;;  %v1270_v60 = vpop.f32.mrf.mxu0 }
 0x146   : > { %v1325_v59 = vadd.f32 %v1270_v60, %v10338_v21  ;;  %v10386_v47 = vadd.f32 %v8299_v41, %v1327_v51 }
 0x147   : > { %v1549_v0 = vpop.f32.mrf.mxu1  ;;  %v8264_v2 = vpop.f32.mrf.mxu0 }
 0x148   : > { %v1328_v14 = vadd.f32 %v8264_v2, %v10340_v34  ;;  %v10389_v52 = vadd.f32 %v1549_v0, %v1325_v59 }
 0x149   : > { %v8300_v4 = vpop.f32.mrf.mxu1  ;;  %v1273_v26 = vpop.f32.mrf.mxu0 }
 0x14a   : > { %v1326_v53 = vadd.f32 %v1273_v26, %v10342_v28  ;;  %v10392_v57 = vadd.f32 %v8300_v4, %v1328_v14 }
 0x14b   : > { %v1552_v49 = vpop.f32.mrf.mxu1  ;;  %v8267_v24 = vpop.f32.mrf.mxu0 }
 0x14c   : > { %v1331_v42 = vadd.f32 %v8267_v24, %v10344_v31  ;;  %v10395_v55 = vadd.f32 %v1552_v49, %v1326_v53 }
 0x14d   : > { %v8303_v58 = vpop.f32.mrf.mxu1  ;;  %v1286_v30 = vpop.f32.mrf.mxu0 }
 0x14e   : > { %v1329_v35 = vadd.f32 %v1286_v30, %v10346_v39  ;;  %v10398_v32 = vadd.f32 %v8303_v58, %v1331_v42 }
 0x14f   : > { %v1565_v18 = vpop.f32.mrf.mxu1  ;;  %v8268_v45 = vpop.f32.mrf.mxu0 }
 0x150   : > { %v1332_v61 = vadd.f32 %v8268_v45, %v10348_v44  ;;  %v1608_v63 = vadd.f32 %v1565_v18, %v1329_v35 }
 0x151   : > { %v8304_v21 = vpop.f32.mrf.mxu1  ;;  %v1289_v50 = vpop.f32.mrf.mxu0 }
 0x152   : > { %v1330_v54 = vadd.f32 %v1289_v50, %v10350_v16  ;;  %v1611_v11 = vadd.f32 %v8304_v21, %v1332_v61 }
 0x153   : > { %v1568_v34 = vpop.f32.mrf.mxu1  ;;  %v8271_v31 = vpop.f32.mrf.mxu0 }
 0x154   : > { %v1335_v62 = vadd.f32 %v8271_v31, %v10352_v46  ;;  %v1609_v5 = vadd.f32 %v1568_v34, %v1330_v54 }
 0x155   : > { %v8307_v28 = vpop.f32.mrf.mxu1  ;;  %v1302_v8 = vpop.f32.mrf.mxu0 }
 0x156   : > { %v1333_v39 = vadd.f32 %v1302_v8, %v10354_v43  ;;  %v1614_v36 = vadd.f32 %v8307_v28, %v1335_v62 }
 0x157   : > { %v1581_v12 = vpop.f32.mrf.mxu1  ;;  %v8272_v48 = vpop.f32.mrf.mxu0 }
 0x158   : > { %v1336_v44 = vadd.f32 %v8272_v48, %v10356_v33  ;;  %v1612_v38 = vadd.f32 %v1581_v12, %v1333_v39 }
 0x159   : > { %v8308_v15 = vpop.f32.mrf.mxu1  ;;  %v1305_v29 = vpop.f32.mrf.mxu0 }
 0x15a   : > { %v1334_v16 = vadd.f32 %v1305_v29, %v10358_v23  ;;  %v1615_v19 = vadd.f32 %v8308_v15, %v1336_v44 }
 0x15b   : > { %v1584_v9 = vpop.f32.mrf.mxu1  ;;  %v8327_v46 = vpop.f32.mrf.mxu0 }
 0x15c   : > { %v1613_v41 = vadd.f32 %v1584_v9, %v1334_v16  ;;  %v10411_v17 = vadd.f32 %v8327_v46, %v10362_v25 }
 0x15d   : > { %v10405_v13 = vpop.f32.mrf.mxu1  ;;  %v2025_v27 = vpop.f32.mrf.mxu0 }
 0x15e   : > { %v10416_v0 = vadd.f32 %v2025_v27, %v10365_v3 }
 0x15f   : > { %v10408_v22 = vpop.f32.mrf.mxu1  ;;  %v8328_v56 = vpop.f32.mrf.mxu0 }
 0x160   : > { %v10421_v51 = vadd.f32 %v8328_v56, %v10368_v7 }
 0x161   : > { %v10413_v43 = vpop.f32.mrf.mxu1  ;;  %v2028_v4 = vpop.f32.mrf.mxu0 }
 0x162   : > { %v10426_v60 = vadd.f32 %v2028_v4, %v10371_v10 }
 0x163   : > { %v10418_v33 = vpop.f32.mrf.mxu1  ;;  %v8331_v59 = vpop.f32.mrf.mxu0 }
 0x164   : > { %v10431_v49 = vadd.f32 %v8331_v59, %v10374_v1 }
 0x165   : > { %v10423_v23 = vpop.f32.mrf.mxu1  ;;  %v2041_v2 = vpop.f32.mrf.mxu0 }
 0x166   : > { %v10436_v14 = vadd.f32 %v2041_v2, %v10377_v6 }
 0x167   : > { %v10428_v25 = vpop.f32.mrf.mxu1  ;;  %v8332_v58 = vpop.f32.mrf.mxu0 }
 0x168   : > { %v10441_v26 = vadd.f32 %v8332_v58, %v10380_v20 }
 0x169   : > { %v10433_v3 = vpop.f32.mrf.mxu1  ;;  %v2044_v10 = vpop.f32.mrf.mxu0 }
 0x16a   : > { %v10444_v53 = vadd.f32 %v2044_v10, %v10383_v37 }
 0x16b   : > { %v10438_v7 = vpop.f32.mrf.mxu1  ;;  %v8335_v1 = vpop.f32.mrf.mxu0 }
 0x16c   : > { %v10449_v24 = vadd.f32 %v8335_v1, %v10386_v47 }
 0x16d   : > { %v10446_v18 = vpop.f32.mrf.mxu1  ;;  %v2057_v6 = vpop.f32.mrf.mxu0 }
 0x16e   : > { %v10454_v21 = vadd.f32 %v2057_v6, %v10389_v52 }
 0x16f   : > { %v10451_v42 = vpop.f32.mrf.mxu1  ;;  %v8336_v20 = vpop.f32.mrf.mxu0 }
 0x170   : > { %v10459_v35 = vadd.f32 %v8336_v20, %v10392_v57 }
 0x171   : > { %v10456_v30 = vpop.f32.mrf.mxu1  ;;  %v2060_v37 = vpop.f32.mrf.mxu0 }
 0x172   : > { %v10464_v45 = vadd.f32 %v2060_v37, %v10395_v55 }
 0x173   : > { %v10461_v34 = vpop.f32.mrf.mxu1 }
 0x175   : > { %v8339_v47 = vpop.f32.mrf.mxu0  ;;  %v10466_v61 = vpop.f32.mrf.mxu1 }
 0x176   : > { %v10469_v28 = vadd.f32 %v8339_v47, %v10398_v32 }
 0x177   : > { %v2073_v52 = vpop.f32.mrf.mxu0  ;;  %v10471_v50 = vpop.f32.mrf.mxu1 }
 0x178   : > { %v10473_v54 = vadd.f32 %v2073_v52, %v1608_v63 }
 0x179   : > { %v8340_v12 = vpop.f32.mrf.mxu0  ;;  %v10475_v57 = vpop.f32.mrf.mxu1 }
 0x17a   : > { %v10477_v31 = vadd.f32 %v8340_v12, %v1611_v11 }
 0x17b   : > { %v2076_v62 = vpop.f32.mrf.mxu0  ;;  %v10481_v55 = vpop.f32.mrf.mxu1 }
 0x17c   : > { %v10479_v15 = vadd.f32 %v2076_v62, %v1609_v5 }
 0x17d   : > { %v8343_v8 = vpop.f32.mrf.mxu0 }
 0x17e   : > { %v10483_v39 = vadd.f32 %v8343_v8, %v1614_v36 }
 0x17f   : > { %v2089_v9 = vpop.f32.mrf.mxu0 }
 0x180   : > { %v10487_v48 = vadd.f32 %v2089_v9, %v1612_v38 }
 0x181   : > { %v10485_v32 = vpop.f32.mrf.mxu1  ;;  %v8344_v44 = vpop.f32.mrf.mxu0 }
 0x182   : > { %v10491_v29 = vadd.f32 %v8344_v44, %v1615_v19 }
 0x183   : > { %v10489_v63 = vpop.f32.mrf.mxu1  ;;  %v2092_v16 = vpop.f32.mrf.mxu0 }
 0x184   : > { %v10495_v5 = vadd.f32 %v2092_v16, %v1613_v41 }
 0x185   : > { %v10493_v11 = vpop.f32.mrf.mxu1  ;;  %v8399_v27 = vpop.f32.mrf.mxu0 }
 0x186   : > { %11510 = vst [vmem:[#allocation10_spill] sm:$0xff] %v10495_v5 }
 0x187   : > { %v10497_v46 = vpop.f32.mrf.mxu1  ;;  %v2652_v36 = vpop.f32.mrf.mxu0 }
 0x188   : > { %11511 = vst [vmem:[#allocation11_spill] sm:$0xff] %v10497_v46 }
 0x189   : > { %v8435_v56 = vpop.f32.mrf.mxu1  ;;  %v8400_v4 = vpop.f32.mrf.mxu0 }
 0x18b   : > { %v3160_v59 = vpop.f32.mrf.mxu1  ;;  %v2655_v2 = vpop.f32.mrf.mxu0 }
 0x18d   : > { %v8436_v38 = vpop.f32.mrf.mxu1  ;;  %v8403_v58 = vpop.f32.mrf.mxu0 }
 0x18f   : > { %v2668_v10 = vpop.f32.mrf.mxu0  ;;  %v3163_v1 = vpop.f32.mrf.mxu1 }
 0x191   : > { %v8404_v6 = vpop.f32.mrf.mxu0 }
 0x192   : > { %v8439_v20 = vpop.f32.mrf.mxu1 }
 0x193   : > { %v10499_v19 = vpop.f32.mrf.mxu0 }
 0x194   : > { %v10505_v47 = vpop.f32.mrf.mxu1 }
 0x195   : > { %v10501_v37 = vpop.f32.mrf.mxu0 }
 0x196   : > { %v10511_v62 = vpop.f32.mrf.mxu1 }
 0x197   : > { %v10503_v41 = vpop.f32.mrf.mxu0 }
 0x198   : > { %11512 = vst [vmem:[#allocation12_spill] sm:$0xff] %v10503_v41  ;;  %v10517_v44 = vpop.f32.mrf.mxu1 }
 0x199   : > { %v10507_v52 = vpop.f32.mrf.mxu0  ;;  %11517 = vst [vmem:[#allocation17_spill] sm:$0xff] %v10517_v44 }
 0x19a   : > { %11513 = vst [vmem:[#allocation13_spill] sm:$0xff] %v10507_v52  ;;  %v10523_v46 = vpop.f32.mrf.mxu1  ;;  %v2454_v52 = vadd.f32 %v10405_v13, %v10411_v17  ;;  %v2458_v13 = vadd.f32 %v10423_v23, %v10431_v49  ;;  %v10558_v23 = vld [vmem:[%s11491_s2] ss:$0 sm:$0xff] }
 0x19b   : > { %v10509_v12 = vpop.f32.mrf.mxu0  ;;  %11520 = vst [vmem:[#allocation20_spill] sm:$0xff] %v10523_v46 }
 0x19c   : > { %11514 = vst [vmem:[#allocation14_spill] sm:$0xff] %v10509_v12  ;;  %v2733_v41 = vadd.f32 %v8399_v27, %v2454_v52  ;;  %v2459_v27 = vadd.f32 %v10433_v3, %v10441_v26  ;;  %v10568_v3 = vadd.f32 %v10461_v34, %v10464_v45  ;;  %v2737_v26 = vadd.f32 %v8403_v58, %v2458_v13 }
 0x19d   : > { %v10513_v8 = vpop.f32.mrf.mxu0  ;;  %v10587_v34 = vadd.f32 %v10481_v55, %v10479_v15  ;;  %v10591_v45 = vadd.f32 %v10485_v32, %v10483_v39 }
 0x19e   : > { %11515 = vst [vmem:[#allocation15_spill] sm:$0xff] %v10513_v8  ;;  %v2452_v8 = vadd.f32 %v10408_v22, %v10416_v0  ;;  %v3241_v17 = vadd.f32 %v8435_v56, %v2733_v41  ;;  %v2456_v0 = vadd.f32 %v10428_v25, %v10436_v14  ;;  %v10572_v14 = vadd.f32 %v10466_v61, %v10469_v28 }
 0x19f   : > { %v10515_v9 = vpop.f32.mrf.mxu0  ;;  %v2738_v56 = vadd.f32 %v8404_v6, %v2459_v27  ;;  %v11523_v13 = vld [vmem:[#allocation12_spill] sm:$0xff] }
 0x1a0   : > { %11516 = vst [vmem:[#allocation16_spill] sm:$0xff] %v10515_v9  ;;  %v10533_v9 = vpop.f32.mrf.mxu1  ;;  %v2735_v61 = vadd.f32 %v2668_v10, %v2456_v0 }
 0x1a1   : > { %v10519_v16 = vpop.f32.mrf.mxu0 }
 0x1a2   : > { %11518 = vst [vmem:[#allocation18_spill] sm:$0xff] %v10519_v16  ;;  %v2731_v16 = vadd.f32 %v2652_v36, %v2452_v8  ;;  %v10545_v22 = vpop.f32.mrf.mxu1  ;;  %v10596_v36 = vadd.f32 %v10489_v63, %v10487_v48 }
 0x1a3   : > { %v10521_v40 = vpop.f32.mrf.mxu0 }
 0x1a4   : > { %11519 = vst [vmem:[#allocation19_spill] sm:$0xff] %v10521_v40  ;;  %v2455_v40 = vadd.f32 %v10413_v43, %v10421_v51  ;;  %v2457_v43 = vadd.f32 %v10438_v7, %v10444_v53  ;;  %v2462_v51 = vadd.f32 %v10446_v18, %v10449_v24  ;;  %v3239_v25 = vadd.f32 %v3160_v59, %v2731_v16 }
 0x1a5   : > { %v10525_v5 = vpop.f32.mrf.mxu0  ;;  %v10576_v18 = vadd.f32 %v10471_v50, %v10473_v54  ;;  %v10603_v59 = vadd.f32 %v10493_v11, %v10491_v29  ;;  %v3246_v29 = vadd.f32 %v10511_v62, %v2738_v56 }
 0x1a6   : > { %11521 = vst [vmem:[#allocation21_spill] sm:$0xff] %v10525_v5  ;;  %v2453_v5 = vadd.f32 %v10418_v33, %v10426_v60  ;;  %v10564_v60 = vadd.f32 %v10456_v30, %v10459_v35  ;;  %v10583_v35 = vadd.f32 %v10475_v57, %v10477_v31  ;;  %v3245_v31 = vadd.f32 %v8439_v20, %v2737_v26 }
 0x1a7   : > { %v10529_v12 = vpop.f32.mrf.mxu0  ;;  %v2736_v6 = vadd.f32 %v10499_v19, %v2457_v43  ;;  %v2741_v20 = vadd.f32 %v10501_v37, %v2462_v51 }
 0x1a8   : > { %11522 = vst [vmem:[#allocation22_spill] sm:$0xff] %v10529_v12  ;;  %v2734_v12 = vadd.f32 %v8400_v4, %v2455_v40  ;;  %v2460_v40 = vadd.f32 %v10451_v42, %v10454_v21  ;;  %v2732_v7 = vadd.f32 %v2655_v2, %v2453_v5  ;;  %v10578_v42 = vpop.f32.mrf.mxu1  ;;  %v3243_v2 = vadd.f32 %v10505_v47, %v2735_v61 }
 0x1a9   : > { %v10535_v44 = vpop.f32.mrf.mxu0 }
 0x1aa   : > { %v3242_v24 = vadd.f32 %v8436_v38, %v2734_v12  ;;  %v3240_v57 = vadd.f32 %v3163_v1, %v2732_v7  ;;  %v10598_v55 = vpop.f32.mrf.mxu1  ;;  %v11526_v7 = vld [vmem:[#allocation13_spill] sm:$0xff] }
 0x1ab   : > { %v10539_v46 = vpop.f32.mrf.mxu0  ;;  %v2742_v26 = vadd.f32 %v11526_v7, %v10564_v60  ;;  %v11528_v60 = vld [vmem:[#allocation15_spill] sm:$0xff] }
 0x1ac   : > { %v10610_v11 = vpop.f32.mrf.mxu1 }
 0x1ad   : > { %v8471_v33 = vpop.f32.mrf.mxu0 }
 0x1ae   : > { %v3589_v49 = vadd.f32 %v8471_v33, %v3241_v17  ;;  %v2739_v17 = vadd.f32 %v11523_v13, %v2460_v40  ;;  %v11524_v33 = vld [vmem:[#allocation17_spill] sm:$0xff] }
 0x1af   : > { %v3508_v53 = vpop.f32.mrf.mxu0  ;;  %v3244_v62 = vadd.f32 %v11524_v33, %v2736_v6 }
 0x1b0   : > { %v3616_v21 = vadd.f32 %v10558_v23, %v3589_v49  ;;  %v3587_v30 = vadd.f32 %v3508_v53, %v3239_v25  ;;  %v11525_v25 = vld [vmem:[#allocation20_spill] sm:$0xff]  ;;  %v3247_v56 = vadd.f32 %v10533_v9, %v2739_v17 }
 0x1b1   : > { %v8472_v28 = vpop.f32.mrf.mxu0  ;;  %v3249_v49 = vadd.f32 %v11525_v25, %v2741_v20 }
 0x1b2   : > { %vm3636_vm6 = vcmp.ge.f32.partialorder %v3616_v21, 0.0  ;;  %v3656_v50 = vmul.f32 0.2, %v3616_v21  ;;  %v3614_v54 = vadd.f32 %v10558_v23, %v3587_v30  ;;  %v3590_v5 = vadd.f32 %v8472_v28, %v3242_v24  ;;  %v10619_v24 = vpop.f32.mrf.mxu1  ;;  %v11527_v28 = vld [vmem:[#allocation14_spill] sm:$0xff] }
 0x1b3   : > { %v3511_v15 = vpop.f32.mrf.mxu0 }
 0x1b4   : > { %v3676_v4 = vsel %vm3636_vm6, %v3616_v21, %v3656_v50  ;;  %vm3634_vm7 = vcmp.ge.f32.partialorder %v3614_v54, 0.0  ;;  %v3654_v39 = vmul.f32 0.2, %v3614_v54  ;;  %v3617_v32 = vadd.f32 %v10558_v23, %v3590_v5 }
 0x1b5   : > { %v7840_v38 = vpack.c.bf16 %v3676_v4, %v3676_v4  ;;  %v3588_v48 = vadd.f32 %v3511_v15, %v3240_v57  ;;  %v8475_v63 = vpop.f32.mrf.mxu0  ;;  %v2740_v50 = vadd.f32 %v11527_v28, %v10568_v3  ;;  %v2745_v15 = vadd.f32 %v11528_v60, %v10572_v14 }
 0x1b6   : > { %v3674_v58 = vsel %vm3634_vm7, %v3614_v54, %v3654_v39  ;;  %vm3637_vm8 = vcmp.ge.f32.partialorder %v3617_v32, 0.0  ;;  %v3657_v10 = vmul.f32 0.2, %v3617_v32  ;;  %v3593_v1 = vadd.f32 %v8475_v63, %v3245_v31  ;;  %v11529_v63 = vld [vmem:[#allocation16_spill] sm:$0xff] }
 0x1b7   : > { %3776 = vst [vmem:[#allocation2 + $0x14] sm:$0xf] %v7840_v38  ;;  %v7838_v41 = vpack.c.bf16 %v3674_v58, %v3674_v58  ;;  %v3615_v52 = vadd.f32 %v10558_v23, %v3588_v48  ;;  %v3524_v12 = vpop.f32.mrf.mxu0  ;;  %v3250_v48 = vadd.f32 %v10545_v22, %v2742_v26  ;;  %v2743_v58 = vadd.f32 %v11529_v63, %v10576_v18  ;;  %v11530_v18 = vld [vmem:[#allocation18_spill] sm:$0xff] }
 0x1b8   : > { %v3677_v47 = vsel %vm3637_vm8, %v3617_v32, %v3657_v10  ;;  %v3620_v8 = vadd.f32 %v10558_v23, %v3593_v1  ;;  %v3591_v16 = vadd.f32 %v3524_v12, %v3243_v2  ;;  %v3211_v10 = vpop.f32.mrf.mxu1  ;;  %v3248_v14 = vadd.f32 %v10578_v42, %v2740_v50 }
 0x1b9   : > { %3774 = vst [vmem:[#allocation2 + $0x4] sm:$0xf] %v7838_v41  ;;  %v7841_v0 = vpack.c.bf16 %v3677_v47, %v3677_v47  ;;  %vm3635_vm9 = vcmp.ge.f32.partialorder %v3615_v52, 0.0  ;;  %v3655_v19 = vmul.f32 0.2, %v3615_v52  ;;  %v8476_v37 = vpop.f32.mrf.mxu0  ;;  %v3253_v22 = vadd.f32 %v10598_v55, %v2745_v15 }
 0x1ba   : > { %vm3640_vm10 = vcmp.ge.f32.partialorder %v3620_v8, 0.0  ;;  %v3660_v27 = vmul.f32 0.2, %v3620_v8  ;;  %v3618_v43 = vadd.f32 %v10558_v23, %v3591_v16  ;;  %v3594_v51 = vadd.f32 %v8476_v37, %v3246_v29  ;;  %v8451_v17 = vpop.f32.mrf.mxu1  ;;  %v11531_v37 = vld [vmem:[#allocation19_spill] sm:$0xff] }
 0x1bb   : > { %3777 = vst [vmem:[#allocation2 + $0x18] sm:$0xf] %v7841_v0  ;;  %v3675_v53 = vsel %vm3635_vm9, %v3615_v52, %v3655_v19  ;;  %v3527_v40 = vpop.f32.mrf.mxu0  ;;  %v2746_v47 = vadd.f32 %v11530_v18, %v10583_v35  ;;  %v11532_v35 = vld [vmem:[#allocation21_spill] sm:$0xff] }
 0x1bc   : > { %v7839_v21 = vpack.c.bf16 %v3675_v53, %v3675_v53  ;;  %v3680_v30 = vsel %vm3640_vm10, %v3620_v8, %v3660_v27  ;;  %vm3638_vm11 = vcmp.ge.f32.partialorder %v3618_v43, 0.0  ;;  %v3658_v61 = vmul.f32 0.2, %v3618_v43  ;;  %v3224_v50 = vpop.f32.mrf.mxu1 }
 0x1bd   : > { %v7844_v54 = vpack.c.bf16 %v3680_v30, %v3680_v30  ;;  %v3621_v5 = vadd.f32 %v10558_v23, %v3594_v51  ;;  %v3592_v57 = vadd.f32 %v3527_v40, %v3244_v62  ;;  %v8479_v31 = vpop.f32.mrf.mxu0  ;;  %v2744_v27 = vadd.f32 %v11531_v37, %v10587_v34  ;;  %v11534_v30 = vld [vmem:[#allocation11_spill] sm:$0xff] }
 0x1be   : > { %3775 = vst [vmem:[#allocation2 + $0x8] sm:$0xf] %v7839_v21  ;;  %v3678_v4 = vsel %vm3638_vm11, %v3618_v43, %v3658_v61  ;;  %v3597_v39 = vadd.f32 %v8479_v31, %v3249_v49  ;;  %v3251_v62 = vadd.f32 %v10610_v11, %v2743_v58  ;;  %v2749_v25 = vadd.f32 %v11532_v35, %v10591_v45  ;;  %v11533_v21 = vld [vmem:[#allocation10_spill] sm:$0xff] }
 0x1bf   : > { %3780 = vst [vmem:[#allocation2 + $0x34] sm:$0xf] %v7844_v54  ;;  %v7842_v32 = vpack.c.bf16 %v3678_v4, %v3678_v4  ;;  %vm3641_vm12 = vcmp.ge.f32.partialorder %v3621_v5, 0.0  ;;  %v3661_v2 = vmul.f32 0.2, %v3621_v5  ;;  %v3619_v38 = vadd.f32 %v10558_v23, %v3592_v57  ;;  %v3540_v3 = vpop.f32.mrf.mxu0  ;;  %v11535_v45 = vld [vmem:[#allocation22_spill] sm:$0xff] }
 0x1c0   : > { %v3624_v9 = vadd.f32 %v10558_v23, %v3597_v39  ;;  %v3595_v1 = vadd.f32 %v3540_v3, %v3247_v56  ;;  %v2469_v61 = vadd.f32 %v11534_v30, %v11533_v21  ;;  %v3254_v28 = vadd.f32 %v10619_v24, %v2746_v47  ;;  %v8452_v3 = vpop.f32.mrf.mxu1 }
 0x1c1   : > { %3778 = vst [vmem:[#allocation2 + $0x24] sm:$0xf] %v7842_v32  ;;  %v3681_v6 = vsel %vm3641_vm12, %v3621_v5, %v3661_v2  ;;  %vm3639_vm13 = vcmp.ge.f32.partialorder %v3619_v38, 0.0  ;;  %v3659_v20 = vmul.f32 0.2, %v3619_v38  ;;  %v8480_v41 = vpop.f32.mrf.mxu0  ;;  %v2747_v5 = vadd.f32 %v11535_v45, %v10596_v36 }
 0x1c2   : > { %v7845_v52 = vpack.c.bf16 %v3681_v6, %v3681_v6  ;;  %vm3644_vm14 = vcmp.ge.f32.partialorder %v3624_v9, 0.0  ;;  %v3664_v12 = vmul.f32 0.2, %v3624_v9  ;;  %v3622_v29 = vadd.f32 %v10558_v23, %v3595_v1  ;;  %v3227_v47 = vpop.f32.mrf.mxu1 }
 0x1c3   : > { %v3679_v8 = vsel %vm3639_vm13, %v3619_v38, %v3659_v20  ;;  %v3598_v16 = vadd.f32 %v8480_v41, %v3250_v48  ;;  %v3543_v13 = vpop.f32.mrf.mxu0  ;;  %v3252_v39 = vadd.f32 %v3211_v10, %v2744_v27  ;;  %v3257_v32 = vadd.f32 %v8451_v17, %v2749_v25 }
 0x1c4   : > { %3781 = vst [vmem:[#allocation2 + $0x38] sm:$0xf] %v7845_v52  ;;  %v7843_v42 = vpack.c.bf16 %v3679_v8, %v3679_v8  ;;  %v3684_v0 = vsel %vm3644_vm14, %v3624_v9, %v3664_v12  ;;  %vm3642_vm15 = vcmp.ge.f32.partialorder %v3622_v29, 0.0  ;;  %v3662_v19 = vmul.f32 0.2, %v3622_v29 }
 0x1c5   : > { %v7848_v43 = vpack.c.bf16 %v3684_v0, %v3684_v0  ;;  %v3625_v51 = vadd.f32 %v10558_v23, %v3598_v16  ;;  %v3596_v33 = vadd.f32 %v3543_v13, %v3248_v14  ;;  %v8483_v55 = vpop.f32.mrf.mxu0  ;;  %v2750_v58 = vadd.f32 %v10535_v44, %v10603_v59 }
 0x1c6   : > { %3779 = vst [vmem:[#allocation2 + $0x28] sm:$0xf] %v7843_v42  ;;  %v3682_v49 = vsel %vm3642_vm15, %v3622_v29, %v3662_v19  ;;  %v3601_v7 = vadd.f32 %v8483_v55, %v3253_v22  ;;  %v3255_v20 = vadd.f32 %v3224_v50, %v2747_v5  ;;  %v2748_v10 = vadd.f32 %v10539_v46, %v2469_v61 }
 0x1c7   : > { %3784 = vst [vmem:[#allocation2 + $0x54] sm:$0xf] %v7848_v43  ;;  %v7846_v26 = vpack.c.bf16 %v3682_v49, %v3682_v49  ;;  %vm3645_vm0 = vcmp.ge.f32.partialorder %v3625_v51, 0.0  ;;  %v3665_v53 = vmul.f32 0.2, %v3625_v51  ;;  %v3623_v40 = vadd.f32 %v10558_v23, %v3596_v33  ;;  %v3556_v34 = vpop.f32.mrf.mxu0 }
 0x1c8   : > { %v3628_v11 = vadd.f32 %v10558_v23, %v3601_v7  ;;  %v3599_v54 = vadd.f32 %v3556_v34, %v3251_v62  ;;  %v3258_v8 = vadd.f32 %v8452_v3, %v2750_v58  ;;  %v3256_v19 = vadd.f32 %v3227_v47, %v2748_v10 }
 0x1c9   : > { %3782 = vst [vmem:[#allocation2 + $0x44] sm:$0xf] %v7846_v26  ;;  %v3685_v57 = vsel %vm3645_vm0, %v3625_v51, %v3665_v53  ;;  %vm3643_vm1 = vcmp.ge.f32.partialorder %v3623_v40, 0.0  ;;  %v3663_v31 = vmul.f32 0.2, %v3623_v40  ;;  %v8484_v56 = vpop.f32.mrf.mxu0 }
 0x1ca   : > { %v7849_v60 = vpack.c.bf16 %v3685_v57, %v3685_v57  ;;  %vm3648_vm3 = vcmp.ge.f32.partialorder %v3628_v11, 0.0  ;;  %v3668_v15 = vmul.f32 0.2, %v3628_v11  ;;  %v3626_v4 = vadd.f32 %v10558_v23, %v3599_v54 }
 0x1cb   : > { %v3683_v24 = vsel %vm3643_vm1, %v3623_v40, %v3663_v31  ;;  %v3602_v2 = vadd.f32 %v8484_v56, %v3254_v28  ;;  %v3559_v38 = vpop.f32.mrf.mxu0 }
 0x1cc   : > { %3785 = vst [vmem:[#allocation2 + $0x58] sm:$0xf] %v7849_v60  ;;  %v7847_v48 = vpack.c.bf16 %v3683_v24, %v3683_v24  ;;  %v3688_v63 = vsel %vm3648_vm3, %v3628_v11, %v3668_v15  ;;  %vm3646_vm4 = vcmp.ge.f32.partialorder %v3626_v4, 0.0  ;;  %v3666_v36 = vmul.f32 0.2, %v3626_v4 }
 0x1cd   : > { %v7852_v9 = vpack.c.bf16 %v3688_v63, %v3688_v63  ;;  %v3629_v1 = vadd.f32 %v10558_v23, %v3602_v2  ;;  %v3600_v14 = vadd.f32 %v3559_v38, %v3252_v39  ;;  %v8487_v6 = vpop.f32.mrf.mxu0 }
 0x1ce   : > { %3783 = vst [vmem:[#allocation2 + $0x48] sm:$0xf] %v7847_v48  ;;  %v3686_v41 = vsel %vm3646_vm4, %v3626_v4, %v3666_v36  ;;  %v3605_v52 = vadd.f32 %v8487_v6, %v3257_v32 }
 0x1cf   : > { %3788 = vst [vmem:[#allocation2 + $0x74] sm:$0xf] %v7852_v9  ;;  %v7850_v12 = vpack.c.bf16 %v3686_v41, %v3686_v41  ;;  %vm3649_vm5 = vcmp.ge.f32.partialorder %v3629_v1, 0.0  ;;  %v3669_v29 = vmul.f32 0.2, %v3629_v1  ;;  %v3627_v22 = vadd.f32 %v10558_v23, %v3600_v14  ;;  %v3572_v18 = vpop.f32.mrf.mxu0 }
 0x1d0   : > { %v3632_v44 = vadd.f32 %v10558_v23, %v3605_v52  ;;  %v3603_v59 = vadd.f32 %v3572_v18, %v3255_v20 }
 0x1d1   : > { %3786 = vst [vmem:[#allocation2 + $0x64] sm:$0xf] %v7850_v12  ;;  %v3689_v16 = vsel %vm3649_vm5, %v3629_v1, %v3669_v29  ;;  %vm3647_vm6 = vcmp.ge.f32.partialorder %v3627_v22, 0.0  ;;  %v3667_v13 = vmul.f32 0.2, %v3627_v22  ;;  %v8488_v46 = vpop.f32.mrf.mxu0 }
 0x1d2   : > { %v7853_v17 = vpack.c.bf16 %v3689_v16, %v3689_v16  ;;  %vm3652_vm7 = vcmp.ge.f32.partialorder %v3632_v44, 0.0  ;;  %v3672_v42 = vmul.f32 0.2, %v3632_v44  ;;  %v3630_v0 = vadd.f32 %v10558_v23, %v3603_v59 }
 0x1d3   : > { %v3687_v37 = vsel %vm3647_vm6, %v3627_v22, %v3667_v13  ;;  %v3606_v27 = vadd.f32 %v8488_v46, %v3258_v8  ;;  %v3575_v43 = vpop.f32.mrf.mxu0 }
 0x1d4   : > { %3789 = vst [vmem:[#allocation2 + $0x78] sm:$0xf] %v7853_v17  ;;  %v7851_v51 = vpack.c.bf16 %v3687_v37, %v3687_v37  ;;  %v3692_v33 = vsel %vm3652_vm7, %v3632_v44, %v3672_v42  ;;  %vm3650_vm8 = vcmp.ge.f32.partialorder %v3630_v0, 0.0  ;;  %v3670_v55 = vmul.f32 0.2, %v3630_v0 }
 0x1d5   : > { %v7856_v62 = vpack.c.bf16 %v3692_v33, %v3692_v33  ;;  %v3633_v35 = vadd.f32 %v10558_v23, %v3606_v27  ;;  %v3604_v25 = vadd.f32 %v3575_v43, %v3256_v19 }
 0x1d6   : > { %3787 = vst [vmem:[#allocation2 + $0x68] sm:$0xf] %v7851_v51  ;;  %v3690_v49 = vsel %vm3650_vm8, %v3630_v0, %v3670_v55 }
 0x1d7   : > { %3792 = vst [vmem:[#allocation2 + $0x94] sm:$0xf] %v7856_v62  ;;  %v7854_v7 = vpack.c.bf16 %v3690_v49, %v3690_v49  ;;  %vm3653_vm9 = vcmp.ge.f32.partialorder %v3633_v35, 0.0  ;;  %v3673_v26 = vmul.f32 0.2, %v3633_v35  ;;  %v3631_v53 = vadd.f32 %v10558_v23, %v3604_v25 }
 0x1d9   : > { %3790 = vst [vmem:[#allocation2 + $0x84] sm:$0xf] %v7854_v7  ;;  %v3693_v40 = vsel %vm3653_vm9, %v3633_v35, %v3673_v26  ;;  %vm3651_vm10 = vcmp.ge.f32.partialorder %v3631_v53, 0.0  ;;  %v3671_v34 = vmul.f32 0.2, %v3631_v53 }
 0x1da   : > { %v7857_v21 = vpack.c.bf16 %v3693_v40, %v3693_v40  ;;  %3817 = sbr.rel (%p7660_p13) target bundleno = 482 (0x1e2), region = 48 }
 0x1db   : > { %v3691_v30 = vsel %vm3651_vm10, %v3631_v53, %v3671_v34 }
 0x1dc   : > { %3793 = vst [vmem:[#allocation2 + $0x98] sm:$0xf] %v7857_v21  ;;  %v7855_v61 = vpack.c.bf16 %v3691_v30, %v3691_v30 }
 0x1de   : > { %3791 = vst [vmem:[#allocation2 + $0x88] sm:$0xf] %v7855_v61 }
 0x1df   : > { %v9194_v28 = vmov 0  }
 0x1e0   : > { %3818 = vst [vmem:[#allocation2] sm:$0xf] %v9194_v28  ;;  %3819 = vst [vmem:[#allocation2 + $0x4] sm:$0xf] %v9194_v28 }
 0x1e1   : > { %3820 = vst [vmem:[#allocation2 + $0x8] sm:$0xf] %v9194_v28  ;;  %3821 = vst [vmem:[#allocation2 + $0xc] sm:$0xf] %v9194_v28 }
 0x1e2 PF: > { %p7661_p0 = scmp.ne.s32.totalorder %s9172_s21, 1 }
 0x1e4   : > { %3825 = sbr.rel (%p7661_p0) target bundleno = 492 (0x1ec), region = 52 }
 0x1e9   : > { %v9195_v23 = vmov 0  }
 0x1ea   : > { %3827 = vst [vmem:[#allocation2 + $0x90] sm:$0xf] %v9195_v23  ;;  %3828 = vst [vmem:[#allocation2 + $0x94] sm:$0xf] %v9195_v23 }
 0x1eb   : > { %3829 = vst [vmem:[#allocation2 + $0x98] sm:$0xf] %v9195_v23  ;;  %3830 = vst [vmem:[#allocation2 + $0x9c] sm:$0xf] %v9195_v23 }
 0x1ec PF: > { %v8970_v50 = vld [vmem:[#allocation3 + $0x78] sm:$0xff]   ;;  %v8971_v11 = vld [vmem:[#allocation3 + $0x70] sm:$0xff]   ;;  %v8972_v54 = vld [vmem:[#allocation3 + $0x68] sm:$0xff]   ;;  %vm3855_vm11 = vsmask.f32 256  ;;  %s7858_s15 = sshll.u32 %s9172_s21, 4 }
 0x1ed   : > { %8489 = vmatprep.subr.bf16.mxu1 %v8970_v50  ;;  %v8973_v45 = vld [vmem:[#allocation3 + $0x60] sm:$0xff]   ;;  %v8978_v5 = vld [vmem:[#allocation3 + $0xb8] sm:$0xff]   ;;  %v10667_v31 = vld [vmem:[#allocation2 + $0x8] sm:$0xf]  ;;  %vm3856_vm12 = vsmask.f32 4368 }
 0x1ee   : > { %8490 = vmatpush3.bf16.msra.mxu1 %v8970_v50  ;;  %v10665_v57 = vld [vmem:[#allocation2 + $0x4] sm:$0xf]  ;;  %8553 = vmatprep.subr.bf16.mxu0 %v8978_v5  ;;  %v10670_v60 = vld [vmem:[#allocation2 + $0x14] sm:$0xf]  ;;  %v10674_v4 = vld [vmem:[#allocation2 + $0x18] sm:$0xf] }
 0x1ef   : > { %8491 = vmatprep.subr.bf16.mxu1 %v8971_v11  ;;  %v3864_v56 = vshrl.u32 %v10665_v57, 16  ;;  %8554 = vmatpush3.bf16.msra.mxu0 %v8978_v5  ;;  %v7670_v15 = vcombine.low %v10665_v57, %v10667_v31  ;;  %v3886_v39 = vshrl.u32 %v10670_v60, 16  ;;  %v8974_v32 = vld [vmem:[#allocation3 + $0x58] sm:$0xff]   ;;  %v3873_v24 = vshrl.u32 %v10667_v31, 16  ;;  %v8982_v38 = vld [vmem:[#allocation3 + $0xb0] sm:$0xff]   ;;  %v8984_v9 = vld [vmem:[#allocation3 + $0xa8] sm:$0xff]  }
 0x1f0   : > { %v3895_v2 = vshrl.u32 %v10674_v4, 16  ;;  %v8975_v48 = vld [vmem:[#allocation3 + $0x50] sm:$0xff]   ;;  %v3867_v63 = vshll.u32 %v10665_v57, 16  ;;  %v3876_v36 = vshll.u32 %v10667_v31, 16  ;;  %8555 = vmatprep.subr.bf16.mxu0 %v8982_v38  ;;  %v3889_v14 = vshll.u32 %v10670_v60, 16  ;;  %v8976_v22 = vld [vmem:[#allocation3 + $0x48] sm:$0xff]   ;;  %vm10816_vm13 = vmor %vm3855_vm11, %vm3856_vm12 }
 0x1f1   : > { %v10679_v3 = vrot.slane %v3864_v56, 7  ;;  %8505 = vmatprep.mubr.bf16.mxu1 %v7670_v15  ;;  %v10683_v58 = vrot.slane %v3886_v39, 7  ;;  %v3875_v1 = vrot.slane %v3873_v24, 7  ;;  %v3898_v20 = vshll.u32 %v10674_v4, 16  ;;  %v10687_v10 = vld [vmem:[#allocation2 + $0x24] sm:$0xf] }
 0x1f2   : > { %8492 = vmatpush3.bf16.msra.mxu1 %v8971_v11  ;;  %v3897_v6 = vrot.slane %v3895_v2, 7  ;;  %v10690_v52 = vld [vmem:[#allocation2 + $0x28] sm:$0xf]  ;;  %v3908_v12 = vshrl.u32 %v10687_v10, 16  ;;  %v10693_v29 = vld [vmem:[#allocation2 + $0x34] sm:$0xf]  ;;  %v7671_v50 = vcombine.low %v10670_v60, %v10674_v4 }
 0x1f3   : > { %8493 = vmatprep.subr.bf16.mxu1 %v8972_v54  ;;  %8556 = vmatpush3.bf16.msra.mxu0 %v8982_v38  ;;  %v3917_v18 = vshrl.u32 %v10690_v52, 16  ;;  %v10696_v47 = vld [vmem:[#allocation2 + $0x38] sm:$0xf]  ;;  %v3930_v44 = vshrl.u32 %v10693_v29, 16  ;;  %v3911_v8 = vshll.u32 %v10687_v10, 16  ;;  %v8988_v13 = vld [vmem:[#allocation3 + $0xa0] sm:$0xff]   ;;  %v10728_v23 = vor.u32 %v3867_v63, %v10679_v3 }
 0x1f4   : > { %8557 = vmatprep.subr.bf16.mxu0 %v8984_v9  ;;  %v3939_v16 = vshrl.u32 %v10696_v47, 16  ;;  %v3920_v46 = vshll.u32 %v10690_v52, 16  ;;  %v3933_v17 = vshll.u32 %v10693_v29, 16  ;;  %v10704_v42 = vrot.slane %v3908_v12, 7  ;;  %v8977_v19 = vld [vmem:[#allocation3 + $0x40] sm:$0xff]   ;;  %v8990_v27 = vld [vmem:[#allocation3 + $0x98] sm:$0xff]  }
 0x1f5   : > { %v10706_v0 = vrot.slane %v3930_v44, 7  ;;  %v3919_v37 = vrot.slane %v3917_v18, 7  ;;  %v3942_v51 = vshll.u32 %v10696_v47, 16  ;;  %v10709_v33 = vld [vmem:[#allocation2 + $0x44] sm:$0xf]  ;;  %v8981_v34 = vld [vmem:[#allocation3 + $0x38] sm:$0xff]   ;;  %v10740_v5 = vor.u32 %v3889_v14, %v10683_v58 }
 0x1f6   : > { %8494 = vmatpush3.bf16.msra.mxu1 %v8972_v54  ;;  %v3941_v43 = vrot.slane %v3939_v16, 7  ;;  %v10711_v55 = vld [vmem:[#allocation2 + $0x48] sm:$0xf]  ;;  %v3952_v62 = vshrl.u32 %v10709_v33, 16  ;;  %v10715_v25 = vld [vmem:[#allocation2 + $0x54] sm:$0xf]  ;;  %v10743_v15 = vor.u32 %v3898_v20, %v3897_v6  ;;  %v7672_v60 = vcombine.low %v10687_v10, %v10690_v52 }
 0x1f7   : > { %8495 = vmatprep.subr.bf16.mxu1 %v8973_v45  ;;  %8558 = vmatpush3.bf16.msra.mxu0 %v8984_v9  ;;  %v3961_v35 = vshrl.u32 %v10711_v55, 16  ;;  %v10717_v49 = vld [vmem:[#allocation2 + $0x58] sm:$0xf]  ;;  %v3974_v7 = vshrl.u32 %v10715_v25, 16  ;;  %v3955_v30 = vshll.u32 %v10709_v33, 16  ;;  %v3964_v61 = vshll.u32 %v10711_v55, 16 }
 0x1f8   : > { %8559 = vmatprep.subr.bf16.mxu0 %v8988_v13  ;;  %v3983_v26 = vshrl.u32 %v10717_v49, 16  ;;  %v10723_v21 = vrot.slane %v3952_v62, 7  ;;  %v8994_v28 = vld [vmem:[#allocation3 + $0x90] sm:$0xff]   ;;  %v3977_v54 = vshll.u32 %v10715_v25, 16  ;;  %v3986_v56 = vshll.u32 %v10717_v49, 16  ;;  %v10805_v41 = vld [vmem:[#allocation3 + $0x138] sm:$0xff]  }
 0x1f9   : > { %v10732_v11 = vrot.slane %v3974_v7, 7  ;;  %v3963_v57 = vrot.slane %v3961_v35, 7  ;;  %v7673_v4 = vcombine.low %v10693_v29, %v10696_v47  ;;  %v8983_v31 = vld [vmem:[#allocation3 + $0x30] sm:$0xff]   ;;  %v10749_v24 = vld [vmem:[#allocation2 + $0x64] sm:$0xf]  ;;  %v10754_v38 = vor.u32 %v3911_v8, %v10704_v42  ;;  %s7834_s3 = sshll.u32 %s9176_s22, 5 }
 0x1fa   : > { %8496 = vmatpush3.bf16.msra.mxu1 %v8973_v45  ;;  %v10737_v45 = vor.u32 %v3876_v36, %v3875_v1  ;;  %v3985_v39 = vrot.slane %v3983_v26, 7  ;;  %v10751_v2 = vld [vmem:[#allocation2 + $0x68] sm:$0xf]  ;;  %v3996_v9 = vshrl.u32 %v10749_v24, 16  ;;  %v10762_v14 = vld [vmem:[#allocation2 + $0x74] sm:$0xf]  ;;  %v10767_v20 = vor.u32 %v3933_v17, %v10706_v0  ;;  %s7090_s30 = sadd.s32 %s7858_s15, %s7834_s3 }
 0x1fb   : > { %8497 = vmatprep.subr.bf16.mxu1 %v8974_v32  ;;  %8560 = vmatpush3.bf16.msra.mxu0 %v8988_v13  ;;  %v4005_v1 = vshrl.u32 %v10751_v2, 16  ;;  %v10764_v6 = vld [vmem:[#allocation2 + $0x78] sm:$0xf]  ;;  %v10769_v10 = vor.u32 %v3942_v51, %v3941_v43  ;;  %v3999_v52 = vshll.u32 %v10749_v24, 16  ;;  %v4008_v12 = vshll.u32 %v10751_v2, 16  ;;  %v8987_v17 = vld [vmem:[#allocation3 + $0x28] sm:$0xff]  }
 0x1fc   : > { %8561 = vmatprep.subr.bf16.mxu0 %v8990_v27  ;;  %v4027_v18 = vshrl.u32 %v10764_v6, 16  ;;  %v7674_v44 = vcombine.low %v10709_v33, %v10711_v55  ;;  %v10777_v8 = vrot.slane %v3996_v9, 7  ;;  %v4021_v13 = vshll.u32 %v10762_v14, 16  ;;  %v4437_v26 = vld [vmem:[#allocation2 + $0x4] sm:$0xf]  ;;  %s7093_s21 = sshll.u32 %s10661_s6, 4  ;;  %s11427_s21 = int_to_ptr.vmem [resolvable:$true] %s7093_s21 }
 0x1fd   : > { %v4007_v16 = vrot.slane %v4005_v1, 7  ;;  %v10786_v43 = vor.u32 %v3955_v30, %v10723_v21  ;;  %v10788_v33 = vor.u32 %v3964_v61, %v3963_v57  ;;  %v10791_v55 = vor.u32 %v3977_v54, %v10732_v11  ;;  %v4438_v30 = vld [vmem:[#allocation2 + $0x8] sm:$0xf]  ;;  %v8989_v9 = vld [vmem:[#allocation3 + $0x20] sm:$0xff]   ;;  %s7835_s22 = sshll.u32 %s7090_s30, 7  ;;  %s11591_s27 = sand.u32 1, %s9164_s19  }
 0x1fe   : > { %8498 = vmatpush3.bf16.msra.mxu1 %v8974_v32  ;;  %v8996_v32 = vld [vmem:[#allocation3 + $0x88] sm:$0xff]   ;;  %v4029_v51 = vrot.slane %v4027_v18, 7  ;;  %v4462_v61 = vshrl.u32 %v4437_v26, 16  ;;  %v4471_v54 = vshll.u32 %v4438_v30, 16  ;;  %v4475_v57 = vshrl.u32 %v4438_v30, 16  ;;  %s11432_s11 = scalar_lea.hbm %s11494_s5, %s7835_s22  ;;  %s11438_s9 = scalar_lea.sflag [#allocation5], %s11591_s27 }
 0x1ff   : > { %8499 = vmatprep.subr.bf16.mxu1 %v8975_v48  ;;  %8562 = vmatpush3.bf16.msra.mxu0 %v8990_v27  ;;  %v4030_v27 = vshll.u32 %v10764_v6, 16  ;;  %v10801_v62 = vor.u32 %v3999_v52, %v10777_v8  ;;  %v10803_v36 = vor.u32 %v4008_v12, %v4007_v16  ;;  %v3831_v52 = vld [vmem:[#allocation2] sm:$0x8]  ;;  %v8993_v16 = vld [vmem:[#allocation3 + $0x18] sm:$0xff]   ;;  %s9092_s26 = scalar_lea.vmem %s11427_s21, 2048  ;;  %s9196_s12 = smov [#allocation6]  }
 0x200   : > { %8563 = vmatprep.subr.bf16.mxu0 %v8994_v28  ;;  %v4464_v63 = vrot.slane %v4462_v61, 4  ;;  %v4477_v7 = vrot.slane %v4475_v57, 4  ;;  %v3859_v47 = vshrl.u32 %v3831_v52, 16  ;;  %p9093_p1 = scmp.ne.s32.totalorder %s11427_s21, %s9092_s26  ;;  %s9096_s10 = sshll.u32 %s9196_s12, 4  ;;  %s9097_s10 = int_to_ptr.vmem [resolvable:$false] %s9096_s10 }
 0x201   : > { %s9098_s14 = scalar_lea.vmem %s9097_s10, 4096  ;;  %p9099_p5 = scmp.lt.s32.totalorder %s11427_s21, %s9097_s10 }
 0x202   : > { %8500 = vmatpush3.bf16.msra.mxu1 %v8975_v48  ;;  %v10756_v48 = vor.u32 %v3920_v46, %v3919_v37  ;;  %v9000_v46 = vld [vmem:[#allocation3 + $0x80] sm:$0xff]   ;;  %p9094_p2 = pnand %p9093_p1, %p9281_p3  ;;  %p9100_p6 = scmp.lt.s32.totalorder %s9098_s14, %s9092_s26 }
 0x203   : > { %8501 = vmatprep.subr.bf16.mxu1 %v8976_v22  ;;  %8564 = vmatpush3.bf16.msra.mxu0 %v8994_v28  ;;  %v10798_v28 = vor.u32 %v3986_v56, %v3985_v39  ;;  %v4473_v39 = vrot.slane %v4471_v54, 5 }
 0x204   : > { %8565 = vmatprep.subr.bf16.mxu0 %v8996_v32  ;;  %p9095_p4 = pneg %p9094_p2  ;;  %p9101_p7 = por %p9100_p6, %p9099_p5 }
 0x205   : > { %v4478_v40 = vor.u32 %v4477_v7, %v4473_v39  ;;  %v3834_v7 = vld [vmem:[#allocation2 + $0x10] sm:$0x8] }
 0x206   : > { %8502 = vmatpush3.bf16.msra.mxu1 %v8976_v22  ;;  %v4018_v22 = vshrl.u32 %v10762_v14, 16  ;;  %p9102_p9 = pnand %p9101_p7, %p9095_p4 }
 0x207   : > { %8503 = vmatprep.subr.bf16.mxu1 %v8977_v19  ;;  %8566 = vmatpush3.bf16.msra.mxu0 %v8996_v32  ;;  %v4441_v32 = vld [vmem:[#allocation2 + $0x18] sm:$0xf]  ;;  %v4479_v61 = vrot.slane %v4478_v40, 4  ;;  %v10822_v40 = vor.u32 %v4030_v27, %v4029_v51  ;;  %v11539_v27 = vrot.slane %v10679_v3, 4  ;;  %v11541_v3 = vrot.slane %v10704_v42, 4 }
 0x208   : > { %v10782_v37 = vrot.slane %v4018_v22, 7  ;;  %8567 = vmatprep.subr.bf16.mxu0 %v9000_v46  ;;  %v4442_v22 = vld [vmem:[#allocation2 + $0x1c] sm:$0x1]  ;;  %v4499_v53 = vshrl.u32 %v4441_v32, 16 }
 0x209   : > { %v4505_v59 = vshll.u32 %v4442_v22, 16  ;;  %v3879_v51 = vsel %vm10816_vm13, %v11539_v27, %v10737_v45  ;;  %v10847_v45 = vsel %vm10816_vm13, %v11541_v3, %v10756_v48 }
 0x20a   : > { %8504 = vmatpush3.bf16.msra.mxu1 %v8977_v19  ;;  %v4495_v19 = vshll.u32 %v4441_v32, 16  ;;  %v4443_v32 = vld [vmem:[#allocation2 + $0x24] sm:$0xf] }
 0x20b   : > { %8521 = vmatprep.subr.bf16.mxu1 %v8981_v34  ;;  %8568 = vmatpush3.bf16.msra.mxu0 %v9000_v46 }
 0x20c   : > { %v4497_v12 = vrot.slane %v4495_v19, 5  ;;  %8617 = vmatprep.subr.bf16.mxu0 %v10805_v41  ;;  %v4507_v19 = vrot.slane %v4505_v59, 5 }
 0x20d   : > { %8506 = vmatmul.mubr.bf16.vlgmr.msra.gmra.mxu1 %v7671_v50  ;;  %v4465_v50 = vshll.u32 %v4437_v26, 16 }
 0x20e   : > { %8522 = vmatpush3.bf16.msra.mxu1 %v8981_v34  ;;  %8509 = vmatprep.mubr.bf16.mxu1 %v7672_v60  ;;  %v4439_v34 = vld [vmem:[#allocation2 + $0xc] sm:$0x1]  ;;  %v4440_v60 = vld [vmem:[#allocation2 + $0x14] sm:$0xf] }
 0x20f   : > { %8523 = vmatprep.subr.bf16.mxu1 %v8983_v31  ;;  %v4481_v1 = vshll.u32 %v4439_v34, 16  ;;  %v4486_v18 = vshrl.u32 %v4440_v60, 16  ;;  %v4467_v56 = vrot.slane %v4465_v50, 5  ;;  %v4489_v35 = vshll.u32 %v4440_v60, 16 }
 0x210   : > { %v10813_v50 = vor.u32 %v4021_v13, %v10782_v37  ;;  %v7662_v60 = vrot.slane %v3859_v47, 11  ;;  %v4448_v47 = vld [vmem:[#allocation2 + $0x3c] sm:$0x1] }
 0x211   : > { %v4483_v26 = vrot.slane %v4481_v1, 5  ;;  %v4488_v30 = vrot.slane %v4486_v18, 4  ;;  %v4468_v34 = vor.u32 %v4467_v56, %v4464_v63  ;;  %v4501_v63 = vrot.slane %v4499_v53, 4  ;;  %v4444_v56 = vld [vmem:[#allocation2 + $0x28] sm:$0xf] }
 0x212   : > { %8524 = vmatpush3.bf16.msra.mxu1 %v8983_v31  ;;  %v4491_v31 = vrot.slane %v4489_v35, 5  ;;  %v11540_v18 = vrot.slane %v10683_v58, 4  ;;  %v11542_v58 = vrot.slane %v10706_v0, 4  ;;  %v11543_v0 = vcombine.low %v10715_v25, %v10717_v49 }
 0x213   : > { %8525 = vmatprep.subr.bf16.mxu1 %v8987_v17  ;;  %v4469_v46 = vrot.slane %v4468_v34, 4  ;;  %v4484_v13 = vsel %vm9415_vm2, %v4479_v61, %v4483_v26  ;;  %v4510_v26 = vshrl.u32 %v4443_v32, 16  ;;  %v4513_v34 = vshll.u32 %v4443_v32, 16  ;;  %v9004_v61 = vld [vmem:[#allocation3 + $0x130] sm:$0xff]   ;;  %v3837_v32 = vld [vmem:[#allocation2 + $0x20] sm:$0x8] }
 0x214   : > { %v4492_v54 = vor.u32 %v4491_v31, %v4488_v30  ;;  %v3901_v59 = vsel %vm10816_vm13, %v11540_v18, %v10743_v15  ;;  %v8995_v30 = vld [vmem:[#allocation3 + $0x10] sm:$0xff]   ;;  %v10854_v15 = vsel %vm10816_vm13, %v11542_v58, %v10769_v10  ;;  %v3870_v31 = vsel %vm10816_vm13, %v7662_v60, %v10728_v23 }
 0x215   : > { %8510 = vmatmul.mubr.bf16.gmra.mxu1 %v7673_v4  ;;  %v3881_v4 = vshrl.u32 %v3834_v7, 16  ;;  %v4512_v48 = vrot.slane %v4510_v26, 4  ;;  %v4519_v7 = vshll.u32 %v4444_v56, 16  ;;  %v11544_v23 = vcombine.low %v10749_v24, %v10751_v2  ;;  %v9001_v24 = vld [vmem:[#allocation3] sm:$0xff]  }
 0x216   : > { %8526 = vmatpush3.bf16.msra.mxu1 %v8987_v17  ;;  %8513 = vmatprep.mubr.bf16.mxu1 %v7674_v44  ;;  %v4474_v44 = vsel %vm9415_vm2, %v4469_v46, %v4473_v39  ;;  %v4502_v17 = vor.u32 %v4501_v63, %v4497_v12  ;;  %v4493_v57 = vrot.slane %v4492_v54, 4  ;;  %v4445_v39 = vld [vmem:[#allocation2 + $0x2c] sm:$0x1]  ;;  %v4447_v46 = vld [vmem:[#allocation2 + $0x38] sm:$0xf]  ;;  %v4515_v63 = vrot.slane %v4513_v34, 5 }
 0x217   : > { %8527 = vmatprep.subr.bf16.mxu1 %v8989_v9  ;;  %v7702_v35 = vcombine.low %v4474_v44, %v4484_v13  ;;  %v10828_v1 = vrot.slane %v3881_v4, 11  ;;  %v4523_v54 = vshrl.u32 %v4444_v56, 16  ;;  %v4529_v4 = vshll.u32 %v4445_v39, 16  ;;  %v9006_v56 = vld [vmem:[#allocation3 + $0x128] sm:$0xff]   ;;  %v3840_v39 = vld [vmem:[#allocation2 + $0x30] sm:$0x8] }
 0x218   : > { %v4503_v22 = vrot.slane %v4502_v17, 4  ;;  %v4543_v13 = vshll.u32 %v4447_v46, 16  ;;  %v8999_v17 = vld [vmem:[#allocation3 + $0x8] sm:$0xff]   ;;  %v4516_v25 = vor.u32 %v4515_v63, %v4512_v48  ;;  %v4521_v49 = vrot.slane %v4519_v7, 5  ;;  %v9008_v63 = vld [vmem:[#allocation3 + $0x120] sm:$0xff]  }
 0x219   : > { %8569 = vmatprep.mubr.bf16.mxu0 %v7702_v35  ;;  %v3892_v42 = vsel %vm10816_vm13, %v10828_v1, %v10740_v5  ;;  %v4547_v35 = vshrl.u32 %v4447_v46, 16  ;;  %v4553_v18 = vshll.u32 %v4448_v47, 16  ;;  %v7686_v26 = vcombine.low %v3870_v31, %v3879_v51  ;;  %v4449_v7 = vld [vmem:[#allocation2 + $0x44] sm:$0xf]  ;;  %v4451_v47 = vld [vmem:[#allocation2 + $0x4c] sm:$0x1] }
 0x21a   : > { %8528 = vmatpush3.bf16.msra.mxu1 %v8989_v9  ;;  %v4498_v9 = vsel %vm9415_vm2, %v4493_v57, %v4497_v12  ;;  %v4508_v52 = vsel %vm9415_vm2, %v4503_v22, %v4507_v19  ;;  %v4446_v12 = vld [vmem:[#allocation2 + $0x34] sm:$0xf]  ;;  %v4525_v19 = vrot.slane %v4523_v54, 4  ;;  %v4531_v57 = vrot.slane %v4529_v4, 5  ;;  %v4450_v54 = vld [vmem:[#allocation2 + $0x48] sm:$0xf] }
 0x21b   : > { %8529 = vmatprep.subr.bf16.mxu1 %v8993_v16  ;;  %v7703_v10 = vcombine.low %v4498_v9, %v4508_v52  ;;  %v4534_v5 = vshrl.u32 %v4446_v12, 16  ;;  %v4537_v44 = vshll.u32 %v4446_v12, 16  ;;  %v4545_v1 = vrot.slane %v4543_v13, 5  ;;  %v4452_v13 = vld [vmem:[#allocation2 + $0x54] sm:$0xf] }
 0x21c   : > { %v4517_v2 = vrot.slane %v4516_v25, 4  ;;  %v4526_v22 = vor.u32 %v4525_v19, %v4521_v49  ;;  %v4549_v27 = vrot.slane %v4547_v35, 4  ;;  %v3903_v34 = vshrl.u32 %v3837_v32, 16  ;;  %v9010_v25 = vld [vmem:[#allocation3 + $0x118] sm:$0xff]  }
 0x21d   : > { %8514 = vmatmul.mubr.bf16.gmra.mxu1 %v11543_v0  ;;  %8570 = vmatmul.mubr.bf16.vlgmr.msra.gmra.mxu0 %v7703_v10  ;;  %v4536_v60 = vrot.slane %v4534_v5, 4  ;;  %v3925_v3 = vshrl.u32 %v3840_v39, 16  ;;  %v4555_v48 = vrot.slane %v4553_v18, 5  ;;  %v7687_v12 = vcombine.low %v3892_v42, %v3901_v59 }
 0x21e   : > { %8530 = vmatpush3.bf16.msra.mxu1 %v8993_v16  ;;  %8517 = vmatprep.mubr.bf16.mxu1 %v11544_v23  ;;  %v4539_v16 = vrot.slane %v4537_v44, 5  ;;  %v4527_v58 = vrot.slane %v4526_v22, 4  ;;  %v4550_v52 = vor.u32 %v4549_v27, %v4545_v1  ;;  %v7664_v0 = vrot.slane %v3903_v34, 11  ;;  %v3846_v34 = vld [vmem:[#allocation2 + $0x50] sm:$0x8] }
 0x21f   : > { %8531 = vmatprep.subr.bf16.mxu1 %v8995_v30  ;;  %8618 = vmatpush3.bf16.msra.mxu0 %v10805_v41  ;;  %v4522_v41 = vsel %vm9415_vm2, %v4517_v2, %v4521_v49  ;;  %v10874_v10 = vrot.slane %v3925_v3, 11  ;;  %v11545_v51 = vcombine.low %v10762_v14, %v10764_v6  ;;  %v4558_v23 = vshrl.u32 %v4449_v7, 16  ;;  %v9005_v2 = vld [vmem:[#allocation3 + $0xf0] sm:$0xff]  }
 0x220   : > { %8619 = vmatprep.subr.bf16.mxu0 %v9004_v61  ;;  %v4540_v9 = vor.u32 %v4539_v16, %v4536_v60  ;;  %v4551_v31 = vrot.slane %v4550_v52, 4  ;;  %v11546_v59 = vrot.slane %v10723_v21, 4  ;;  %v3914_v4 = vsel %vm10816_vm13, %v7664_v0, %v10754_v38  ;;  %v4454_v60 = vld [vmem:[#allocation2 + $0x5c] sm:$0x1]  ;;  %v9012_v3 = vld [vmem:[#allocation3 + $0x110] sm:$0xff]  }
 0x221   : > { %v4561_v5 = vshll.u32 %v4449_v7, 16  ;;  %v7688_v44 = vcombine.low %v3914_v4, %v10847_v45  ;;  %v11547_v49 = vrot.slane %v10732_v11, 4  ;;  %v3936_v35 = vsel %vm10816_vm13, %v10874_v10, %v10767_v20  ;;  %v4457_v4 = vld [vmem:[#allocation2 + $0x6c] sm:$0x1] }
 0x222   : > { %8532 = vmatpush3.bf16.msra.mxu1 %v8995_v30  ;;  %v4541_v46 = vrot.slane %v4540_v9, 4  ;;  %v4532_v30 = vsel %vm9415_vm2, %v4527_v58, %v4531_v57  ;;  %v10886_v42 = vsel %vm10816_vm13, %v11546_v59, %v10788_v33  ;;  %v4556_v21 = vsel %vm9415_vm2, %v4551_v31, %v4555_v48 }
 0x223   : > { %8533 = vmatprep.subr.bf16.mxu1 %v8999_v17  ;;  %8620 = vmatpush3.bf16.msra.mxu0 %v9004_v61  ;;  %v9003_v61 = vld [vmem:[#allocation3 + $0xf8] sm:$0xff]   ;;  %v7704_v14 = vcombine.low %v4522_v41, %v4532_v30  ;;  %v4560_v33 = vrot.slane %v4558_v23, 4  ;;  %v10901_v19 = vsel %vm10816_vm13, %v11547_v49, %v10798_v28  ;;  %v4563_v45 = vrot.slane %v4561_v5, 5 }
 0x224   : > { %8621 = vmatprep.subr.bf16.mxu0 %v9006_v56  ;;  %v4546_v6 = vsel %vm9415_vm2, %v4541_v46, %v4545_v1  ;;  %v4567_v57 = vshll.u32 %v4450_v54, 16  ;;  %v4571_v16 = vshrl.u32 %v4450_v54, 16  ;;  %v4577_v1 = vshll.u32 %v4451_v47, 16  ;;  %v4455_v54 = vld [vmem:[#allocation2 + $0x64] sm:$0xf] }
 0x225   : > { %8518 = vmatmul.mubr.bf16.gmra.mxu1 %v11545_v51  ;;  %8573 = vmatprep.mubr.bf16.mxu0 %v7704_v14  ;;  %v7705_v38 = vcombine.low %v4546_v6, %v4556_v21  ;;  %v4582_v32 = vshrl.u32 %v4452_v13, 16  ;;  %v4585_v11 = vshll.u32 %v4452_v13, 16  ;;  %v4564_v28 = vor.u32 %v4563_v45, %v4560_v33  ;;  %v4456_v14 = vld [vmem:[#allocation2 + $0x68] sm:$0xf]  ;;  %v9009_v13 = vld [vmem:[#allocation3 + $0xe0] sm:$0xff]  }
 0x226   : > { %8534 = vmatpush3.bf16.msra.mxu1 %v8999_v17  ;;  %8537 = vmatprep.mubr.bf16.mxu1 %v7686_v26  ;;  %v4453_v17 = vld [vmem:[#allocation2 + $0x58] sm:$0xf]  ;;  %v4569_v22 = vrot.slane %v4567_v57, 5  ;;  %v4573_v39 = vrot.slane %v4571_v16, 4  ;;  %v4579_v26 = vrot.slane %v4577_v1, 5  ;;  %v4601_v48 = vshll.u32 %v4454_v60, 16 }
 0x227   : > { %8535 = vmatprep.subr.bf16.mxu1 %v9001_v24  ;;  %8622 = vmatpush3.bf16.msra.mxu0 %v9006_v56  ;;  %v4591_v27 = vshll.u32 %v4453_v17, 16  ;;  %v4595_v18 = vshrl.u32 %v4453_v17, 16  ;;  %v3843_v56 = vld [vmem:[#allocation2 + $0x40] sm:$0x8]  ;;  %v4584_v20 = vrot.slane %v4582_v32, 4  ;;  %v4587_v9 = vrot.slane %v4585_v11, 5 }
 0x228   : > { %8623 = vmatprep.subr.bf16.mxu0 %v9008_v63  ;;  %8574 = vmatmul.mubr.bf16.gmra.mxu0 %v7705_v38  ;;  %v4565_v41 = vrot.slane %v4564_v28, 4  ;;  %v4574_v46 = vor.u32 %v4573_v39, %v4569_v22  ;;  %v3947_v10 = vshrl.u32 %v3843_v56, 16  ;;  %v3969_v7 = vshrl.u32 %v3846_v34, 16  ;;  %v4458_v38 = vld [vmem:[#allocation2 + $0x74] sm:$0xf]  ;;  %v9011_v34 = vld [vmem:[#allocation3 + $0xd8] sm:$0xff]  }
 0x229   : > { %v4593_v58 = vrot.slane %v4591_v27, 5  ;;  %v4597_v52 = vrot.slane %v4595_v18, 4  ;;  %v4588_v0 = vor.u32 %v4587_v9, %v4584_v20  ;;  %v4603_v31 = vrot.slane %v4601_v48, 5  ;;  %v4460_v57 = vld [vmem:[#allocation2 + $0x7c] sm:$0x1]  ;;  %v9016_v20 = vld [vmem:[#allocation3 + $0x100] sm:$0xff]  }
 0x22a   : > { %8536 = vmatpush3.bf16.msra.mxu1 %v9001_v24  ;;  %v9007_v24 = vld [vmem:[#allocation3 + $0xe8] sm:$0xff]   ;;  %v4570_v51 = vsel %vm9415_vm2, %v4565_v41, %v4569_v22  ;;  %v4575_v47 = vrot.slane %v4574_v46, 4  ;;  %v7667_v59 = vrot.slane %v3969_v7, 11  ;;  %v4606_v5 = vshrl.u32 %v4455_v54, 16  ;;  %v3849_v18 = vld [vmem:[#allocation2 + $0x60] sm:$0x8] }
 0x22b   : > { %8585 = vmatprep.subr.bf16.mxu1 %v9003_v61  ;;  %8624 = vmatpush3.bf16.msra.mxu0 %v9008_v63  ;;  %v4598_v30 = vor.u32 %v4597_v52, %v4593_v58  ;;  %v4025_v63 = vrot.slane %v10782_v37, 4  ;;  %v4589_v23 = vrot.slane %v4588_v0, 4  ;;  %v4615_v21 = vshll.u32 %v4456_v14, 16  ;;  %v4864_v37 = vld [vmem:[#allocation2 + $0x10] sm:$0x8] }
 0x22c   : > { %8625 = vmatprep.subr.bf16.mxu0 %v9010_v25  ;;  %v4580_v33 = vsel %vm9415_vm2, %v4575_v47, %v4579_v26  ;;  %v11548_v60 = vrot.slane %v10777_v8, 4  ;;  %v4608_v1 = vrot.slane %v4606_v5, 4  ;;  %v4619_v28 = vshrl.u32 %v4456_v14, 16  ;;  %v3852_v26 = vld [vmem:[#allocation2 + $0x70] sm:$0x8] }
 0x22d   : > { %8538 = vmatmul.mubr.bf16.vlgmr.msra.gmra.mxu1 %v7687_v12  ;;  %v7666_v12 = vrot.slane %v3947_v10, 11  ;;  %v4599_v6 = vrot.slane %v4598_v30, 4  ;;  %v4594_v17 = vsel %vm9415_vm2, %v4589_v23, %v4593_v58  ;;  %v4617_v11 = vrot.slane %v4615_v21, 5  ;;  %v4866_v5 = vld [vmem:[#allocation2 + $0x18] sm:$0xf] }
 0x22e   : > { %8586 = vmatpush3.bf16.msra.mxu1 %v9003_v61  ;;  %8541 = vmatprep.mubr.bf16.mxu1 %v7688_v44  ;;  %v4609_v61 = vshll.u32 %v4455_v54, 16  ;;  %v7689_v44 = vcombine.low %v3936_v35, %v10854_v15  ;;  %v4459_v35 = vld [vmem:[#allocation2 + $0x78] sm:$0xf]  ;;  %v10926_v16 = vsel %vm10816_vm13, %v11548_v60, %v10803_v36  ;;  %v4625_v22 = vshll.u32 %v4457_v4, 16 }
 0x22f   : > { %8587 = vmatprep.subr.bf16.mxu1 %v9005_v2  ;;  %8626 = vmatpush3.bf16.msra.mxu0 %v9010_v25  ;;  %v3958_v49 = vsel %vm10816_vm13, %v7666_v12, %v10786_v43  ;;  %v7706_v25 = vcombine.low %v4570_v51, %v4580_v33  ;;  %v4604_v45 = vsel %vm9415_vm2, %v4599_v6, %v4603_v31  ;;  %v4633_v27 = vshll.u32 %v4458_v38, 16  ;;  %v9013_v31 = vld [vmem:[#allocation3 + $0xd0] sm:$0xff]  }
 0x230   : > { %8627 = vmatprep.subr.bf16.mxu0 %v9012_v3  ;;  %v7690_v15 = vcombine.low %v3958_v49, %v10886_v42  ;;  %v7707_v43 = vcombine.low %v4594_v17, %v4604_v45  ;;  %v4611_v32 = vrot.slane %v4609_v61, 5  ;;  %v4630_v42 = vshrl.u32 %v4458_v38, 16  ;;  %v4865_v6 = vld [vmem:[#allocation2 + $0x14] sm:$0xf]  ;;  %v10948_v49 = vld [vmem:[#allocation2 + $0x24] sm:$0xf] }
 0x231   : > { %8577 = vmatprep.mubr.bf16.mxu0 %v7706_v25  ;;  %v4639_v56 = vshll.u32 %v4459_v35, 16  ;;  %v4643_v39 = vshrl.u32 %v4459_v35, 16  ;;  %v4649_v36 = vshll.u32 %v4460_v57, 16  ;;  %v3980_v9 = vsel %vm10816_vm13, %v7667_v59, %v10791_v55  ;;  %v10950_v38 = vld [vmem:[#allocation2 + $0x28] sm:$0xf] }
 0x232   : > { %8588 = vmatpush3.bf16.msra.mxu1 %v9005_v2  ;;  %v9014_v2 = vld [vmem:[#allocation3 + $0x108] sm:$0xff]   ;;  %8578 = vmatmul.mubr.bf16.gmra.mxu0 %v7707_v43  ;;  %v4612_v8 = vor.u32 %v4611_v32, %v4608_v1  ;;  %v4632_v41 = vrot.slane %v4630_v42, 4  ;;  %v4635_v58 = vrot.slane %v4633_v27, 5  ;;  %v4627_v48 = vrot.slane %v4625_v22, 5  ;;  %v4867_v35 = vld [vmem:[#allocation2 + $0x20] sm:$0x8] }
 0x233   : > { %8589 = vmatprep.subr.bf16.mxu1 %v9007_v24  ;;  %8628 = vmatpush3.bf16.msra.mxu0 %v9012_v3  ;;  %v4621_v3 = vrot.slane %v4619_v28, 4  ;;  %v4641_v46 = vrot.slane %v4639_v56, 5  ;;  %v4645_v0 = vrot.slane %v4643_v39, 4  ;;  %v3991_v51 = vshrl.u32 %v3849_v18, 16  ;;  %v9015_v43 = vld [vmem:[#allocation3 + $0xc8] sm:$0xff]   ;;  %v9017_v42 = vld [vmem:[#allocation3 + $0xc0] sm:$0xff]  }
 0x234   : > { %v4613_v52 = vrot.slane %v4612_v8, 4  ;;  %8629 = vmatprep.subr.bf16.mxu0 %v9014_v2  ;;  %v4636_v7 = vor.u32 %v4635_v58, %v4632_v41  ;;  %v7691_v30 = vcombine.low %v3980_v9, %v10901_v19  ;;  %v4651_v47 = vrot.slane %v4649_v36, 5  ;;  %v4871_v9 = vld [vmem:[#allocation2 + $0x34] sm:$0xf] }
 0x235   : > { %8542 = vmatmul.mubr.bf16.gmra.mxu1 %v7689_v44  ;;  %v4622_v10 = vor.u32 %v4621_v3, %v4617_v11  ;;  %v4646_v54 = vor.u32 %v4645_v0, %v4641_v46  ;;  %v7668_v59 = vrot.slane %v3991_v51, 11  ;;  %v4894_v61 = vshrl.u32 %v4865_v6, 16  ;;  %v10934_v44 = vld [vmem:[#allocation3 + $0x1b8] sm:$0xff]   ;;  %v10969_v51 = vld [vmem:[#allocation2 + $0x44] sm:$0xf] }
 0x236   : > { %8590 = vmatpush3.bf16.msra.mxu1 %v9007_v24  ;;  %8545 = vmatprep.mubr.bf16.mxu1 %v7690_v15  ;;  %v4013_v24 = vshrl.u32 %v3852_v26, 16  ;;  %v4618_v55 = vsel %vm9415_vm2, %v4613_v52, %v4617_v11  ;;  %v4637_v12 = vrot.slane %v4636_v7, 4  ;;  %v4897_v21 = vshll.u32 %v4865_v6, 16 }
 0x237   : > { %8591 = vmatprep.subr.bf16.mxu1 %v9009_v13  ;;  %8630 = vmatpush3.bf16.msra.mxu0 %v9014_v2  ;;  %v4623_v23 = vrot.slane %v4622_v10, 4  ;;  %v4647_v4 = vrot.slane %v4646_v54, 4  ;;  %v4033_v17 = vsel %vm10816_vm13, %v4025_v63, %v10822_v40  ;;  %v4896_v63 = vrot.slane %v4894_v61, 7  ;;  %v9022_v10 = vld [vmem:[#allocation3 + $0x1b0] sm:$0xff]  }
 0x238   : > { %8631 = vmatprep.subr.bf16.mxu0 %v9016_v20  ;;  %v7669_v14 = vrot.slane %v4013_v24, 11  ;;  %v4642_v33 = vsel %vm9415_vm2, %v4637_v12, %v4641_v46  ;;  %v4903_v57 = vshrl.u32 %v4866_v5, 16  ;;  %v4906_v60 = vshll.u32 %v4866_v5, 16  ;;  %v10971_v24 = vld [vmem:[#allocation2 + $0x48] sm:$0xf] }
 0x239   : > { %v4628_v19 = vsel %vm9415_vm2, %v4623_v23, %v4627_v48  ;;  %v4652_v45 = vsel %vm9415_vm2, %v4647_v4, %v4651_v47  ;;  %v7742_v1 = vcombine.low %v4865_v6, %v4866_v5  ;;  %v4916_v32 = vshrl.u32 %v10948_v49, 16  ;;  %v4873_v6 = vld [vmem:[#allocation2 + $0x40] sm:$0x8]  ;;  %v9021_v5 = vld [vmem:[#allocation3 + $0x178] sm:$0xff]  }
 0x23a   : > { %8592 = vmatpush3.bf16.msra.mxu1 %v9009_v13  ;;  %v4002_v13 = vsel %vm10816_vm13, %v7668_v59, %v10801_v62  ;;  %v7708_v25 = vcombine.low %v4618_v55, %v4628_v19  ;;  %v4024_v62 = vsel %vm10816_vm13, %v7669_v14, %v10813_v50  ;;  %v7709_v40 = vcombine.low %v4642_v33, %v4652_v45  ;;  %v4870_v14 = vld [vmem:[#allocation2 + $0x30] sm:$0x8] }
 0x23b   : > { %8593 = vmatprep.subr.bf16.mxu1 %v9011_v34  ;;  %8632 = vmatpush3.bf16.msra.mxu0 %v9016_v20  ;;  %v7692_v15 = vcombine.low %v4002_v13, %v10926_v16  ;;  %v4919_v16 = vshll.u32 %v10948_v49, 16  ;;  %v4925_v11 = vshrl.u32 %v10950_v38, 16  ;;  %v7693_v50 = vcombine.low %v4024_v62, %v4033_v17 }
 0x23c   : > { %8681 = vmatprep.subr.bf16.mxu0 %v10934_v44  ;;  %8581 = vmatprep.mubr.bf16.mxu0 %v7708_v25  ;;  %v4905_v2 = vrot.slane %v4903_v57, 7  ;;  %v4928_v28 = vshll.u32 %v10950_v38, 16  ;;  %v4889_v22 = vshrl.u32 %v4864_v37, 16  ;;  %v4918_v27 = vrot.slane %v4916_v32, 7  ;;  %v9026_v37 = vld [vmem:[#allocation3 + $0x1a8] sm:$0xff]  }
 0x23d   : > { %8546 = vmatmul.mubr.bf16.gmra.mxu1 %v7691_v30  ;;  %8582 = vmatmul.mubr.bf16.gmra.mxu0 %v7709_v40  ;;  %v4927_v18 = vrot.slane %v4925_v11, 7  ;;  %v4899_v8 = vor.u32 %v4897_v21, %v4896_v63  ;;  %v4901_v56 = vrot.slane %v4896_v63, 4  ;;  %v7743_v39 = vcombine.low %v10948_v49, %v10950_v38  ;;  %v9024_v38 = vld [vmem:[#allocation3 + $0x170] sm:$0xff]  }
 0x23e   : > { %8594 = vmatpush3.bf16.msra.mxu1 %v9011_v34  ;;  %8549 = vmatprep.mubr.bf16.mxu1 %v7692_v15  ;;  %v7718_v36 = vrot.slane %v4889_v22, 11  ;;  %v4908_v26 = vor.u32 %v4906_v60, %v4905_v2  ;;  %v4911_v20 = vshrl.u32 %v4867_v35, 16  ;;  %v4872_v34 = vld [vmem:[#allocation2 + $0x38] sm:$0xf]  ;;  %v4921_v3 = vor.u32 %v4919_v16, %v4918_v27  ;;  %v4877_v60 = vld [vmem:[#allocation2 + $0x54] sm:$0xf] }
 0x23f   : > { %8595 = vmatprep.subr.bf16.mxu1 %v9013_v31  ;;  %8633 = vmatprep.mubr.bf16.mxu0 %v7742_v1  ;;  %v4923_v41 = vrot.slane %v4918_v27, 4  ;;  %v4930_v58 = vor.u32 %v4928_v28, %v4927_v18  ;;  %v4938_v52 = vshrl.u32 %v4871_v9, 16  ;;  %v4941_v7 = vshll.u32 %v4871_v9, 16  ;;  %v9027_v27 = vld [vmem:[#allocation3 + $0x168] sm:$0xff]  }
 0x240   : > { %v4900_v48 = vsel %vm10816_vm13, %v7718_v36, %v4899_v8  ;;  %v4909_v46 = vsel %vm10816_vm13, %v4901_v56, %v4908_v26  ;;  %v7719_v0 = vrot.slane %v4911_v20, 11  ;;  %v4947_v54 = vshrl.u32 %v4872_v34, 16  ;;  %v10990_v56 = vld [vmem:[#allocation2 + $0x64] sm:$0xf] }
 0x241   : > { %v7726_v30 = vcombine.low %v4900_v48, %v4909_v46  ;;  %v4931_v55 = vsel %vm10816_vm13, %v4923_v41, %v4930_v58  ;;  %v4950_v23 = vshll.u32 %v4872_v34, 16  ;;  %v7744_v12 = vcombine.low %v4871_v9, %v4872_v34  ;;  %v9028_v26 = vld [vmem:[#allocation3 + $0x1a0] sm:$0xff]   ;;  %v4876_v58 = vld [vmem:[#allocation2 + $0x50] sm:$0x8]  ;;  %v9032_v48 = vld [vmem:[#allocation3 + $0x198] sm:$0xff]  }
 0x242   : > { %8596 = vmatpush3.bf16.msra.mxu1 %v9013_v31  ;;  %v4940_v31 = vrot.slane %v4938_v52, 7  ;;  %v4922_v47 = vsel %vm10816_vm13, %v7719_v0, %v4921_v3  ;;  %v4960_v59 = vshrl.u32 %v10969_v51, 16  ;;  %v4949_v61 = vrot.slane %v4947_v54, 7 }
 0x243   : > { %8597 = vmatprep.subr.bf16.mxu1 %v9015_v43  ;;  %v7727_v4 = vcombine.low %v4922_v47, %v4931_v55  ;;  %v4963_v21 = vshll.u32 %v10969_v51, 16  ;;  %v4969_v19 = vshrl.u32 %v10971_v24, 16  ;;  %v4972_v13 = vshll.u32 %v10971_v24, 16 }
 0x244   : > { %v4962_v33 = vrot.slane %v4960_v59, 7  ;;  %v7745_v17 = vcombine.low %v10969_v51, %v10971_v24  ;;  %v4933_v49 = vshrl.u32 %v4870_v14, 16  ;;  %v4943_v45 = vor.u32 %v4941_v7, %v4940_v31  ;;  %v4879_v7 = vld [vmem:[#allocation2 + $0x60] sm:$0x8] }
 0x245   : > { %8550 = vmatmul.mubr.bf16.gmra.mxu1 %v7693_v50  ;;  %8634 = vmatmul.mubr.bf16.vlgmr.msra.gmra.mxu0 %v7743_v39  ;;  %v4971_v25 = vrot.slane %v4969_v19, 7  ;;  %v4945_v15 = vrot.slane %v4940_v31, 4  ;;  %v4952_v62 = vor.u32 %v4950_v23, %v4949_v61  ;;  %v4955_v40 = vshrl.u32 %v4873_v6, 16  ;;  %v10992_v39 = vld [vmem:[#allocation2 + $0x68] sm:$0xf]  ;;  %v9030_v23 = vld [vmem:[#allocation3 + $0x160] sm:$0xff]  }
 0x246   : > { %8598 = vmatpush3.bf16.msra.mxu1 %v9015_v43  ;;  %8601 = vmatprep.mubr.bf16.mxu1 %v7726_v30  ;;  %v7720_v35 = vrot.slane %v4933_v49, 11  ;;  %v4965_v63 = vor.u32 %v4963_v21, %v4962_v33  ;;  %v4967_v57 = vrot.slane %v4962_v33, 4  ;;  %v4982_v32 = vshrl.u32 %v4877_v60, 16 }
 0x247   : > { %8599 = vmatprep.subr.bf16.mxu1 %v9017_v42  ;;  %8682 = vmatpush3.bf16.msra.mxu0 %v10934_v44  ;;  %v4953_v43 = vsel %vm10816_vm13, %v4945_v15, %v4952_v62  ;;  %v4974_v1 = vor.u32 %v4972_v13, %v4971_v25  ;;  %v4878_v44 = vld [vmem:[#allocation2 + $0x58] sm:$0xf]  ;;  %v4985_v16 = vshll.u32 %v4877_v60, 16  ;;  %v7721_v50 = vrot.slane %v4955_v40, 11 }
 0x248   : > { %8637 = vmatprep.mubr.bf16.mxu0 %v7744_v12  ;;  %8683 = vmatprep.subr.bf16.mxu0 %v9022_v10  ;;  %v4944_v11 = vsel %vm10816_vm13, %v7720_v35, %v4943_v45  ;;  %v4991_v2 = vshrl.u32 %v4878_v44, 16  ;;  %v4994_v28 = vshll.u32 %v4878_v44, 16  ;;  %v4984_v18 = vrot.slane %v4982_v32, 7  ;;  %v11010_v45 = vld [vmem:[#allocation2 + $0x84] sm:$0xf] }
 0x249   : > { %v7728_v22 = vcombine.low %v4944_v11, %v4953_v43  ;;  %v7746_v8 = vcombine.low %v4877_v60, %v4878_v44  ;;  %v4966_v36 = vsel %vm10816_vm13, %v7721_v50, %v4965_v63  ;;  %v5004_v9 = vshrl.u32 %v10990_v56, 16  ;;  %v4887_v35 = vld [vmem:[#allocation2 + $0x88] sm:$0xf]  ;;  %v9033_v63 = vld [vmem:[#allocation3 + $0x158] sm:$0xff]   ;;  %v4882_v32 = vld [vmem:[#allocation2 + $0x70] sm:$0x8] }
 0x24a   : > { %8600 = vmatpush3.bf16.msra.mxu1 %v9017_v42  ;;  %v4975_v42 = vsel %vm10816_vm13, %v4967_v57, %v4974_v1  ;;  %v4993_v20 = vrot.slane %v4991_v2, 7  ;;  %v5007_v34 = vshll.u32 %v10990_v56, 16  ;;  %v5013_v3 = vshrl.u32 %v10992_v39, 16  ;;  %v9038_v44 = vld [vmem:[#allocation3 + $0x188] sm:$0xff]   ;;  %v4885_v2 = vld [vmem:[#allocation2 + $0x80] sm:$0x8] }
 0x24b   : > { %8649 = vmatprep.subr.bf16.mxu1 %v9021_v5  ;;  %8684 = vmatpush3.bf16.msra.mxu0 %v9022_v10  ;;  %v5016_v41 = vshll.u32 %v10992_v39, 16  ;;  %v5006_v52 = vrot.slane %v5004_v9, 7  ;;  %v4977_v46 = vshrl.u32 %v4876_v58, 16  ;;  %v4987_v0 = vor.u32 %v4985_v16, %v4984_v18 }
 0x24c   : > { %8685 = vmatprep.subr.bf16.mxu0 %v9026_v37  ;;  %v4989_v10 = vrot.slane %v4984_v18, 4  ;;  %v7729_v51 = vcombine.low %v4966_v36, %v4975_v42  ;;  %v5015_v24 = vrot.slane %v5013_v3, 7  ;;  %v4996_v30 = vor.u32 %v4994_v28, %v4993_v20  ;;  %v5927_v3 = vld [vmem:[#allocation2 + $0x20] sm:$0x8] }
 0x24d   : > { %8602 = vmatmul.mubr.bf16.vlgmr.msra.gmra.mxu1 %v7727_v4  ;;  %8638 = vmatmul.mubr.bf16.gmra.mxu0 %v7745_v17  ;;  %v4999_v55 = vshrl.u32 %v4879_v7, 16  ;;  %v7722_v31 = vrot.slane %v4977_v46, 11  ;;  %v5009_v54 = vor.u32 %v5007_v34, %v5006_v52  ;;  %v5011_v47 = vrot.slane %v5006_v52, 4  ;;  %v4883_v4 = vld [vmem:[#allocation2 + $0x74] sm:$0xf]  ;;  %v9040_v34 = vld [vmem:[#allocation3 + $0x180] sm:$0xff]  }
 0x24e   : > { %8650 = vmatpush3.bf16.msra.mxu1 %v9021_v5  ;;  %8605 = vmatprep.mubr.bf16.mxu1 %v7728_v22  ;;  %v7747_v12 = vcombine.low %v10990_v56, %v10992_v39  ;;  %v4997_v59 = vsel %vm10816_vm13, %v4989_v10, %v4996_v30  ;;  %v5018_v6 = vor.u32 %v5016_v41, %v5015_v24  ;;  %v4884_v5 = vld [vmem:[#allocation2 + $0x78] sm:$0xf]  ;;  %v5026_v21 = vshrl.u32 %v4883_v4, 16  ;;  %v11017_v41 = vld [vmem:[#allocation2 + $0x24] sm:$0xf] }
 0x24f   : > { %8651 = vmatprep.subr.bf16.mxu1 %v9024_v38  ;;  %8686 = vmatpush3.bf16.msra.mxu0 %v9026_v37  ;;  %v7723_v14 = vrot.slane %v4999_v55, 11  ;;  %v4988_v61 = vsel %vm10816_vm13, %v7722_v31, %v4987_v0  ;;  %v5029_v19 = vshll.u32 %v4883_v4, 16  ;;  %v5035_v33 = vshrl.u32 %v4884_v5, 16  ;;  %v5930_v10 = vld [vmem:[#allocation2 + $0x30] sm:$0x8] }
 0x250   : > { %8641 = vmatprep.mubr.bf16.mxu0 %v7746_v8  ;;  %8687 = vmatprep.subr.bf16.mxu0 %v9028_v26  ;;  %v7730_v13 = vcombine.low %v4988_v61, %v4997_v59  ;;  %v5019_v49 = vsel %vm10816_vm13, %v5011_v47, %v5018_v6  ;;  %v5038_v25 = vshll.u32 %v4884_v5, 16  ;;  %v5028_v15 = vrot.slane %v5026_v21, 7  ;;  %v9036_v8 = vld [vmem:[#allocation3 + $0x150] sm:$0xff]   ;;  %v11032_v31 = vld [vmem:[#allocation2 + $0x38] sm:$0xf]  ;;  %v9039_v47 = vld [vmem:[#allocation3 + $0x148] sm:$0xff]  }
 0x251   : > { %v5010_v17 = vsel %vm10816_vm13, %v7723_v14, %v5009_v54  ;;  %v5037_v62 = vrot.slane %v5035_v33, 7  ;;  %v7748_v37 = vcombine.low %v4883_v4, %v4884_v5  ;;  %v5048_v57 = vshrl.u32 %v11010_v45, 16  ;;  %v11030_v55 = vld [vmem:[#allocation2 + $0x34] sm:$0xf] }
 0x252   : > { %8652 = vmatpush3.bf16.msra.mxu1 %v9024_v38  ;;  %v9034_v38 = vld [vmem:[#allocation3 + $0x190] sm:$0xff]   ;;  %v7731_v40 = vcombine.low %v5010_v17, %v5019_v49  ;;  %v5051_v60 = vshll.u32 %v11010_v45, 16  ;;  %v5057_v43 = vshrl.u32 %v4887_v35, 16  ;;  %v5060_v1 = vshll.u32 %v4887_v35, 16 }
 0x253   : > { %8653 = vmatprep.subr.bf16.mxu1 %v9027_v27  ;;  %8688 = vmatpush3.bf16.msra.mxu0 %v9028_v26  ;;  %v5031_v16 = vor.u32 %v5029_v19, %v5028_v15  ;;  %v5033_v11 = vrot.slane %v5028_v15, 4  ;;  %v5040_v50 = vor.u32 %v5038_v25, %v5037_v62  ;;  %v5050_v28 = vrot.slane %v5048_v57, 7  ;;  %v9042_v25 = vld [vmem:[#allocation3 + $0x238] sm:$0xff]   ;;  %v9041_v62 = vld [vmem:[#allocation3 + $0x140] sm:$0xff]  }
 0x254   : > { %8689 = vmatprep.subr.bf16.mxu0 %v9032_v48  ;;  %v5059_v22 = vrot.slane %v5057_v43, 7  ;;  %v5021_v42 = vshrl.u32 %v4882_v32, 16  ;;  %v7749_v20 = vcombine.low %v11010_v45, %v4887_v35  ;;  %v5952_v46 = vshrl.u32 %v5927_v3, 16  ;;  %v5501_v45 = vld [vmem:[#allocation2 + $0x18] sm:$0xf] }
 0x255   : > { %8606 = vmatmul.mubr.bf16.gmra.mxu1 %v7729_v51  ;;  %8642 = vmatmul.mubr.bf16.gmra.mxu0 %v7747_v12  ;;  %v5041_v18 = vsel %vm10816_vm13, %v5033_v11, %v5040_v50  ;;  %v5053_v36 = vor.u32 %v5051_v60, %v5050_v28  ;;  %v5055_v26 = vrot.slane %v5050_v28, 4  ;;  %v5957_v0 = vshrl.u32 %v11017_v41, 16  ;;  %v5503_v32 = vld [vmem:[#allocation2 + $0x24] sm:$0xf] }
 0x256   : > { %8654 = vmatpush3.bf16.msra.mxu1 %v9027_v27  ;;  %8609 = vmatprep.mubr.bf16.mxu1 %v7730_v13  ;;  %v5043_v27 = vshrl.u32 %v4885_v2, 16  ;;  %v7724_v56 = vrot.slane %v5021_v42, 11  ;;  %v5062_v9 = vor.u32 %v5060_v1, %v5059_v22  ;;  %v5960_v24 = vshll.u32 %v11017_v41, 16  ;;  %v5500_v13 = vld [vmem:[#allocation2 + $0x14] sm:$0xf] }
 0x257   : > { %8655 = vmatprep.subr.bf16.mxu1 %v9030_v23  ;;  %8690 = vmatpush3.bf16.msra.mxu0 %v9032_v48  ;;  %v11023_v48 = vld [vmem:[#allocation2 + $0x28] sm:$0xf]  ;;  %v5959_v12 = vrot.slane %v5957_v0, 7  ;;  %v5974_v6 = vshrl.u32 %v5930_v10, 16  ;;  %v5979_v4 = vshrl.u32 %v11030_v55, 16  ;;  %v5982_v5 = vshll.u32 %v11030_v55, 16 }
 0x258   : > { %8645 = vmatprep.mubr.bf16.mxu0 %v7748_v37  ;;  %8691 = vmatprep.subr.bf16.mxu0 %v9034_v38  ;;  %v7725_v39 = vrot.slane %v5043_v27, 11  ;;  %v5032_v58 = vsel %vm10816_vm13, %v7724_v56, %v5031_v16  ;;  %v5063_v51 = vsel %vm10816_vm13, %v5055_v26, %v5062_v9  ;;  %v5966_v30 = vshrl.u32 %v11023_v48, 16  ;;  %v5504_v16 = vld [vmem:[#allocation2 + $0x28] sm:$0xf]  ;;  %v5505_v22 = vld [vmem:[#allocation2 + $0x2c] sm:$0x1] }
 0x259   : > { %v7732_v7 = vcombine.low %v5032_v58, %v5041_v18  ;;  %v5969_v59 = vshll.u32 %v11023_v48, 16  ;;  %v5962_v61 = vor.u32 %v5960_v24, %v5959_v12  ;;  %v5964_v21 = vrot.slane %v5959_v12, 4  ;;  %v11047_v56 = vld [vmem:[#allocation3 + $0x1f8] sm:$0xff]   ;;  %v5933_v9 = vld [vmem:[#allocation2 + $0x40] sm:$0x8] }
 0x25a   : > { %8656 = vmatpush3.bf16.msra.mxu1 %v9030_v23  ;;  %v5054_v52 = vsel %vm10816_vm13, %v7725_v39, %v5053_v36  ;;  %v7774_v23 = vrot.slane %v5952_v46, 11  ;;  %v5968_v14 = vrot.slane %v5966_v30, 7  ;;  %v5988_v19 = vshrl.u32 %v11032_v31, 16  ;;  %v9044_v46 = vld [vmem:[#allocation3 + $0x230] sm:$0xff]   ;;  %v11051_v0 = vld [vmem:[#allocation2 + $0x44] sm:$0xf] }
 0x25b   : > { %8657 = vmatprep.subr.bf16.mxu1 %v9033_v63  ;;  %8692 = vmatpush3.bf16.msra.mxu0 %v9034_v38  ;;  %v7733_v54 = vcombine.low %v5054_v52, %v5063_v51  ;;  %v5991_v33 = vshll.u32 %v11032_v31, 16  ;;  %v7775_v49 = vrot.slane %v5974_v6, 11  ;;  %v5981_v38 = vrot.slane %v5979_v4, 7  ;;  %v11053_v30 = vld [vmem:[#allocation2 + $0x48] sm:$0xf] }
 0x25c   : > { %8693 = vmatprep.subr.bf16.mxu0 %v9038_v44  ;;  %v5971_v17 = vor.u32 %v5969_v59, %v5968_v14  ;;  %v7798_v15 = vcombine.low %v11017_v41, %v11023_v48  ;;  %v5963_v37 = vsel %vm10816_vm13, %v7774_v23, %v5962_v61  ;;  %v5990_v35 = vrot.slane %v5988_v19, 7  ;;  %v9046_v59 = vld [vmem:[#allocation3 + $0x228] sm:$0xff]   ;;  %v5936_v61 = vld [vmem:[#allocation2 + $0x50] sm:$0x8]  ;;  %v6574_v41 = vld [vmem:[#allocation2 + $0x5c] sm:$0x1] }
 0x25d   : > { %8610 = vmatmul.mubr.bf16.gmra.mxu1 %v7731_v40  ;;  %8646 = vmatmul.mubr.bf16.gmra.mxu0 %v7749_v20  ;;  %v5502_v40 = vld [vmem:[#allocation2 + $0x1c] sm:$0x1]  ;;  %v5528_v57 = vshll.u32 %v5500_v13, 16  ;;  %v5984_v43 = vor.u32 %v5982_v5, %v5981_v38  ;;  %v5986_v1 = vrot.slane %v5981_v38, 4  ;;  %v5538_v18 = vshrl.u32 %v5501_v45, 16 }
 0x25e   : > { %8658 = vmatpush3.bf16.msra.mxu1 %v9033_v63  ;;  %8613 = vmatprep.mubr.bf16.mxu1 %v7732_v7  ;;  %v5525_v63 = vshrl.u32 %v5500_v13, 16  ;;  %v5972_v60 = vsel %vm10816_vm13, %v5964_v21, %v5971_v17  ;;  %v5993_v50 = vor.u32 %v5991_v33, %v5990_v35  ;;  %v5549_v26 = vshrl.u32 %v5503_v32, 16  ;;  %v11060_v17 = vld [vmem:[#allocation2 + $0x54] sm:$0xf] }
 0x25f   : > { %8659 = vmatprep.subr.bf16.mxu1 %v9036_v8  ;;  %8694 = vmatpush3.bf16.msra.mxu0 %v9038_v44  ;;  %v5534_v44 = vshll.u32 %v5501_v45, 16  ;;  %v7782_v11 = vcombine.low %v5963_v37, %v5972_v60  ;;  %v5530_v28 = vrot.slane %v5528_v57, 5  ;;  %v5985_v42 = vsel %vm10816_vm13, %v7775_v49, %v5984_v43 }
 0x260   : > { %8695 = vmatprep.subr.bf16.mxu0 %v9040_v34  ;;  %v5527_v2 = vrot.slane %v5525_v63, 4  ;;  %v5994_v39 = vsel %vm10816_vm13, %v5986_v1, %v5993_v50  ;;  %v5552_v20 = vshll.u32 %v5503_v32, 16  ;;  %v5540_v3 = vrot.slane %v5538_v18, 4 }
 0x261   : > { %v5536_v27 = vrot.slane %v5534_v44, 5  ;;  %8697 = vmatprep.mubr.bf16.mxu0 %v7782_v11  ;;  %v5558_v52 = vshll.u32 %v5504_v16, 16  ;;  %v5551_v7 = vrot.slane %v5549_v26, 4  ;;  %v5562_v24 = vshrl.u32 %v5504_v16, 16  ;;  %v9048_v44 = vld [vmem:[#allocation3 + $0x220] sm:$0xff]   ;;  %v9045_v11 = vld [vmem:[#allocation3 + $0x1f0] sm:$0xff]  }
 0x262   : > { %8660 = vmatpush3.bf16.msra.mxu1 %v9036_v8  ;;  %v5544_v8 = vshll.u32 %v5502_v40, 16  ;;  %v5531_v36 = vor.u32 %v5530_v28, %v5527_v2  ;;  %v5554_v51 = vrot.slane %v5552_v20, 5  ;;  %v5568_v23 = vshll.u32 %v5505_v22, 16  ;;  %v5506_v28 = vld [vmem:[#allocation2 + $0x34] sm:$0xf] }
 0x263   : > { %8661 = vmatprep.subr.bf16.mxu1 %v9039_v47  ;;  %8696 = vmatpush3.bf16.msra.mxu0 %v9040_v34  ;;  %v7783_v34 = vcombine.low %v5985_v42, %v5994_v39  ;;  %v5996_v12 = vshrl.u32 %v5933_v9, 16  ;;  %v5564_v4 = vrot.slane %v5562_v24, 4  ;;  %v6001_v5 = vshrl.u32 %v11051_v0, 16  ;;  %v5508_v39 = vld [vmem:[#allocation2 + $0x3c] sm:$0x1] }
 0x264   : > { %8745 = vmatprep.subr.bf16.mxu0 %v9042_v25  ;;  %v5546_v58 = vrot.slane %v5544_v8, 5  ;;  %v5532_v10 = vrot.slane %v5531_v36, 4  ;;  %v5555_v6 = vor.u32 %v5554_v51, %v5551_v7  ;;  %v5570_v19 = vrot.slane %v5568_v23, 5  ;;  %v5507_v8 = vld [vmem:[#allocation2 + $0x38] sm:$0xf] }
 0x265   : > { %8614 = vmatmul.mubr.bf16.gmra.mxu1 %v7733_v54  ;;  %v5541_v54 = vor.u32 %v5540_v3, %v5536_v27  ;;  %v7776_v33 = vrot.slane %v5996_v12, 11  ;;  %v6004_v13 = vshll.u32 %v11051_v0, 16  ;;  %v6010_v45 = vshrl.u32 %v11053_v30, 16  ;;  %v5510_v3 = vld [vmem:[#allocation2 + $0x48] sm:$0xf]  ;;  %v9050_v23 = vld [vmem:[#allocation3 + $0x218] sm:$0xff]  }
 0x266   : > { %8662 = vmatpush3.bf16.msra.mxu1 %v9039_v47  ;;  %8698 = vmatmul.mubr.bf16.vlgmr.msra.gmra.mxu0 %v7783_v34  ;;  %v5560_v47 = vrot.slane %v5558_v52, 5  ;;  %v5537_v14 = vsel %vm9415_vm2, %v5532_v10, %v5536_v27  ;;  %v5556_v49 = vrot.slane %v5555_v6, 4  ;;  %v6013_v35 = vshll.u32 %v11053_v30, 16  ;;  %v5509_v34 = vld [vmem:[#allocation2 + $0x44] sm:$0xf] }
 0x267   : > { %8663 = vmatprep.subr.bf16.mxu1 %v9041_v62  ;;  %8746 = vmatpush3.bf16.msra.mxu0 %v9042_v25  ;;  %v5542_v21 = vrot.slane %v5541_v54, 4  ;;  %v6003_v25 = vrot.slane %v6001_v5, 7  ;;  %v6018_v40 = vshrl.u32 %v5936_v61, 16  ;;  %v6023_v63 = vshrl.u32 %v11060_v17, 16 }
 0x268   : > { %8747 = vmatprep.subr.bf16.mxu0 %v9044_v46  ;;  %v5565_v38 = vor.u32 %v5564_v4, %v5560_v47  ;;  %v5561_v60 = vsel %vm9415_vm2, %v5556_v49, %v5560_v47  ;;  %v6012_v16 = vrot.slane %v6010_v45, 7  ;;  %v6026_v27 = vshll.u32 %v11060_v17, 16  ;;  %v5511_v47 = vld [vmem:[#allocation2 + $0x4c] sm:$0x1] }
 0x269   : > { %v5547_v37 = vsel %vm9415_vm2, %v5542_v21, %v5546_v58  ;;  %v6006_v1 = vor.u32 %v6004_v13, %v6003_v25  ;;  %v6008_v32 = vrot.slane %v6003_v25, 4  ;;  %v7777_v50 = vrot.slane %v6018_v40, 11  ;;  %v9047_v4 = vld [vmem:[#allocation3 + $0x1e8] sm:$0xff]   ;;  %v11085_v25 = vld [vmem:[#allocation2 + $0x64] sm:$0xf] }
 0x26a   : > { %8664 = vmatpush3.bf16.msra.mxu1 %v9041_v62  ;;  %v11063_v62 = vld [vmem:[#allocation2 + $0x58] sm:$0xf]  ;;  %v7758_v57 = vcombine.low %v5537_v14, %v5547_v37  ;;  %v5566_v43 = vrot.slane %v5565_v38, 4  ;;  %v6025_v2 = vrot.slane %v6023_v63, 7  ;;  %v6015_v26 = vor.u32 %v6013_v35, %v6012_v16  ;;  %v11087_v63 = vld [vmem:[#allocation2 + $0x68] sm:$0xf] }
 0x26b   : > { %8713 = vmatprep.subr.bf16.mxu1 %v11047_v56  ;;  %8748 = vmatpush3.bf16.msra.mxu0 %v9044_v46  ;;  %v6007_v42 = vsel %vm10816_vm13, %v7776_v33, %v6006_v1  ;;  %v6032_v18 = vshrl.u32 %v11063_v62, 16  ;;  %v6035_v9 = vshll.u32 %v11063_v62, 16  ;;  %v5573_v46 = vshrl.u32 %v5506_v28, 16  ;;  %v5939_v33 = vld [vmem:[#allocation2 + $0x60] sm:$0x8] }
 0x26c   : > { %8749 = vmatprep.subr.bf16.mxu0 %v9046_v59  ;;  %8665 = vmatprep.mubr.bf16.mxu1 %v7758_v57  ;;  %v5571_v22 = vsel %vm9415_vm2, %v5566_v43, %v5570_v19  ;;  %v6030_v20 = vrot.slane %v6025_v2, 4  ;;  %v6028_v58 = vor.u32 %v6026_v27, %v6025_v2  ;;  %v5576_v10 = vshll.u32 %v5506_v28, 16  ;;  %v9049_v57 = vld [vmem:[#allocation3 + $0x1e0] sm:$0xff]  }
 0x26d   : > { %v7759_v36 = vcombine.low %v5561_v60, %v5571_v22  ;;  %v6034_v52 = vrot.slane %v6032_v18, 7  ;;  %v6016_v7 = vsel %vm10816_vm13, %v6008_v32, %v6015_v26  ;;  %v5582_v51 = vshll.u32 %v5507_v8, 16  ;;  %v9052_v60 = vld [vmem:[#allocation3 + $0x210] sm:$0xff]  }
 0x26e   : > { %v5586_v24 = vshrl.u32 %v5507_v8, 16  ;;  %v5592_v54 = vshll.u32 %v5508_v39, 16  ;;  %v7784_v12 = vcombine.low %v6007_v42, %v6016_v7  ;;  %v6029_v14 = vsel %vm10816_vm13, %v7777_v50, %v6028_v58  ;;  %v5942_v22 = vld [vmem:[#allocation2 + $0x70] sm:$0x8]  ;;  %v11091_v39 = vld [vmem:[#allocation2 + $0x74] sm:$0xf] }
 0x26f   : > { %8750 = vmatpush3.bf16.msra.mxu0 %v9046_v59  ;;  %8666 = vmatmul.mubr.bf16.vlgmr.msra.gmra.mxu1 %v7759_v36  ;;  %v6037_v6 = vor.u32 %v6035_v9, %v6034_v52  ;;  %v5575_v59 = vrot.slane %v5573_v46, 4  ;;  %v5578_v5 = vrot.slane %v5576_v10, 5  ;;  %v5584_v61 = vrot.slane %v5582_v51, 5  ;;  %v9054_v9 = vld [vmem:[#allocation3 + $0x208] sm:$0xff]   ;;  %v9051_v46 = vld [vmem:[#allocation3 + $0x1d8] sm:$0xff]  }
 0x270   : > { %8751 = vmatprep.subr.bf16.mxu0 %v9048_v44  ;;  %8714 = vmatpush3.bf16.msra.mxu1 %v11047_v56  ;;  %v5588_v21 = vrot.slane %v5586_v24, 4  ;;  %v5594_v19 = vrot.slane %v5592_v54, 5  ;;  %v5597_v49 = vshrl.u32 %v5509_v34, 16  ;;  %v5600_v38 = vshll.u32 %v5509_v34, 16  ;;  %v11099_v51 = vld [vmem:[#allocation2 + $0x78] sm:$0xf] }
 0x271   : > { %8715 = vmatprep.subr.bf16.mxu1 %v9045_v11  ;;  %8701 = vmatprep.mubr.bf16.mxu0 %v7784_v12  ;;  %v6038_v13 = vsel %vm10816_vm13, %v6030_v20, %v6037_v6  ;;  %v5606_v56 = vshll.u32 %v5510_v3, 16  ;;  %v5579_v37 = vor.u32 %v5578_v5, %v5575_v59  ;;  %v5610_v40 = vshrl.u32 %v5510_v3, 16  ;;  %v5512_v6 = vld [vmem:[#allocation2 + $0x54] sm:$0xf]  ;;  %v5513_v59 = vld [vmem:[#allocation2 + $0x58] sm:$0xf] }
 0x272   : > { %v7785_v45 = vcombine.low %v6029_v14, %v6038_v13  ;;  %v5589_v35 = vor.u32 %v5588_v21, %v5584_v61  ;;  %v5599_v43 = vrot.slane %v5597_v49, 4  ;;  %v5602_v1 = vrot.slane %v5600_v38, 5 }
 0x273   : > { %8752 = vmatpush3.bf16.msra.mxu0 %v9048_v44  ;;  %v5608_v32 = vrot.slane %v5606_v56, 5  ;;  %v5616_v16 = vshll.u32 %v5511_v47, 16  ;;  %v5580_v50 = vrot.slane %v5579_v37, 4  ;;  %v5612_v44 = vrot.slane %v5610_v40, 4  ;;  %v5516_v37 = vld [vmem:[#allocation2 + $0x68] sm:$0xf] }
 0x274   : > { %8753 = vmatprep.subr.bf16.mxu0 %v9050_v23  ;;  %8716 = vmatpush3.bf16.msra.mxu1 %v9045_v11  ;;  %v5590_v2 = vrot.slane %v5589_v35, 4  ;;  %v6040_v28 = vshrl.u32 %v5939_v33, 16  ;;  %v5603_v42 = vor.u32 %v5602_v1, %v5599_v43  ;;  %v6045_v18 = vshrl.u32 %v11085_v25, 16  ;;  %v9056_v33 = vld [vmem:[#allocation3 + $0x200] sm:$0xff]   ;;  %v9053_v1 = vld [vmem:[#allocation3 + $0x1d0] sm:$0xff]  }
 0x275   : > { %8702 = vmatmul.mubr.bf16.gmra.mxu0 %v7785_v45  ;;  %8717 = vmatprep.subr.bf16.mxu1 %v9047_v4  ;;  %v5618_v27 = vrot.slane %v5616_v16, 5  ;;  %v6048_v8 = vshll.u32 %v11085_v25, 16  ;;  %v5585_v11 = vsel %vm9415_vm2, %v5580_v50, %v5584_v61  ;;  %v5613_v26 = vor.u32 %v5612_v44, %v5608_v32  ;;  %v5515_v45 = vld [vmem:[#allocation2 + $0x64] sm:$0xf] }
 0x276   : > { %v5595_v36 = vsel %vm9415_vm2, %v5590_v2, %v5594_v19  ;;  %v7778_v20 = vrot.slane %v6040_v28, 11  ;;  %v5604_v3 = vrot.slane %v5603_v42, 4  ;;  %v6047_v58 = vrot.slane %v6045_v18, 7  ;;  %v5514_v19 = vld [vmem:[#allocation2 + $0x5c] sm:$0x1] }
 0x277   : > { %8754 = vmatpush3.bf16.msra.mxu0 %v9050_v23  ;;  %v7760_v34 = vcombine.low %v5585_v11, %v5595_v36  ;;  %v6054_v52 = vshrl.u32 %v11087_v63, 16  ;;  %v5614_v10 = vrot.slane %v5613_v26, 4  ;;  %v6057_v7 = vshll.u32 %v11087_v63, 16  ;;  %v5517_v11 = vld [vmem:[#allocation2 + $0x6c] sm:$0x1] }
 0x278   : > { %8755 = vmatprep.subr.bf16.mxu0 %v9052_v60  ;;  %8718 = vmatpush3.bf16.msra.mxu1 %v9047_v4  ;;  %v6062_v24 = vshrl.u32 %v5942_v22, 16  ;;  %v6067_v54 = vshrl.u32 %v11091_v39, 16  ;;  %v5609_v47 = vsel %vm9415_vm2, %v5604_v3, %v5608_v32  ;;  %v6050_v23 = vor.u32 %v6048_v8, %v6047_v58  ;;  %v9055_v36 = vld [vmem:[#allocation3 + $0x1c8] sm:$0xff]  }
 0x279   : > { %8719 = vmatprep.subr.bf16.mxu1 %v9049_v57  ;;  %8669 = vmatprep.mubr.bf16.mxu1 %v7760_v34  ;;  %v6052_v12 = vrot.slane %v6047_v58, 4  ;;  %v6056_v14 = vrot.slane %v6054_v52, 7  ;;  %v5619_v4 = vsel %vm9415_vm2, %v5614_v10, %v5618_v27  ;;  %v6070_v21 = vshll.u32 %v11091_v39, 16 }
 0x27a   : > { %v7779_v5 = vrot.slane %v6062_v24, 11  ;;  %v6069_v61 = vrot.slane %v6067_v54, 7  ;;  %v7761_v13 = vcombine.low %v5609_v47, %v5619_v4  ;;  %v6051_v49 = vsel %vm10816_vm13, %v7778_v20, %v6050_v23  ;;  %v11117_v24 = vld [vmem:[#allocation2 + $0x84] sm:$0xf]  ;;  %v11119_v4 = vld [vmem:[#allocation2 + $0x88] sm:$0xf] }
 0x27b   : > { %8756 = vmatpush3.bf16.msra.mxu0 %v9052_v60  ;;  %v6059_v38 = vor.u32 %v6057_v7, %v6056_v14  ;;  %v6076_v56 = vshrl.u32 %v11099_v51, 16  ;;  %v6079_v60 = vshll.u32 %v11099_v51, 16  ;;  %v5621_v43 = vshrl.u32 %v5512_v6, 16 }
 0x27c   : > { %8757 = vmatprep.subr.bf16.mxu0 %v9054_v9  ;;  %8720 = vmatpush3.bf16.msra.mxu1 %v9049_v57  ;;  %v6072_v35 = vor.u32 %v6070_v21, %v6069_v61  ;;  %v6074_v40 = vrot.slane %v6069_v61, 4  ;;  %v5624_v50 = vshll.u32 %v5512_v6, 16  ;;  %v5630_v2 = vshll.u32 %v5513_v59, 16 }
 0x27d   : > { %8721 = vmatprep.subr.bf16.mxu1 %v9051_v46  ;;  %8670 = vmatmul.mubr.bf16.gmra.mxu1 %v7761_v13  ;;  %v6060_v32 = vsel %vm10816_vm13, %v6052_v12, %v6059_v38  ;;  %v6078_v16 = vrot.slane %v6076_v56, 7  ;;  %v5623_v28 = vrot.slane %v5621_v43, 4  ;;  %v5634_v22 = vshrl.u32 %v5513_v59, 16  ;;  %v5948_v13 = vld [vmem:[#allocation2 + $0x90] sm:$0x8] }
 0x27e   : > { %v7786_v44 = vcombine.low %v6051_v49, %v6060_v32  ;;  %v6073_v57 = vsel %vm10816_vm13, %v7779_v5, %v6072_v35  ;;  %v5626_v27 = vrot.slane %v5624_v50, 5  ;;  %v5632_v18 = vrot.slane %v5630_v2, 5  ;;  %v11127_v43 = vld [vmem:[#allocation2 + $0x94] sm:$0xf]  ;;  %v11131_v2 = vld [vmem:[#allocation2 + $0x98] sm:$0xf] }
 0x27f   : > { %8758 = vmatpush3.bf16.msra.mxu0 %v9054_v9  ;;  %v6081_v42 = vor.u32 %v6079_v60, %v6078_v16  ;;  %v5640_v8 = vshll.u32 %v5514_v19, 16  ;;  %v5636_v26 = vrot.slane %v5634_v22, 4  ;;  %v5645_v20 = vshrl.u32 %v5515_v45, 16  ;;  %v5945_v9 = vld [vmem:[#allocation2 + $0x80] sm:$0x8] }
 0x280   : > { %8759 = vmatprep.subr.bf16.mxu0 %v9056_v33  ;;  %8722 = vmatpush3.bf16.msra.mxu1 %v9051_v46  ;;  %v5648_v34 = vshll.u32 %v5515_v45, 16  ;;  %v5654_v3 = vshll.u32 %v5516_v37, 16  ;;  %v5627_v52 = vor.u32 %v5626_v27, %v5623_v28  ;;  %v5658_v7 = vshrl.u32 %v5516_v37, 16 }
 0x281   : > { %8705 = vmatprep.mubr.bf16.mxu0 %v7786_v44  ;;  %8723 = vmatprep.subr.bf16.mxu1 %v9053_v1  ;;  %v6082_v58 = vsel %vm10816_vm13, %v6074_v40, %v6081_v42  ;;  %v5642_v10 = vrot.slane %v5640_v8, 5  ;;  %v5637_v47 = vor.u32 %v5636_v26, %v5632_v18  ;;  %v5647_v46 = vrot.slane %v5645_v20, 4  ;;  %v5518_v42 = vld [vmem:[#allocation2 + $0x74] sm:$0xf]  ;;  %v5519_v26 = vld [vmem:[#allocation2 + $0x78] sm:$0xf] }
 0x282   : > { %v7787_v54 = vcombine.low %v6073_v57, %v6082_v58  ;;  %v5650_v23 = vrot.slane %v5648_v34, 5  ;;  %v5628_v12 = vrot.slane %v5627_v52, 4  ;;  %v5656_v14 = vrot.slane %v5654_v3, 5  ;;  %v5521_v58 = vld [vmem:[#allocation2 + $0x84] sm:$0xf] }
 0x283   : > { %8760 = vmatpush3.bf16.msra.mxu0 %v9056_v33  ;;  %v5660_v6 = vrot.slane %v5658_v7, 4  ;;  %v5664_v59 = vshll.u32 %v5517_v11, 16  ;;  %v5638_v5 = vrot.slane %v5637_v47, 4  ;;  %v6084_v21 = vshrl.u32 %v5945_v9, 16  ;;  %v9057_v33 = vld [vmem:[#allocation3 + $0x1c0] sm:$0xff]  }
 0x284   : > { %8724 = vmatpush3.bf16.msra.mxu1 %v9053_v1  ;;  %8706 = vmatmul.mubr.bf16.gmra.mxu0 %v7787_v54  ;;  %v5651_v61 = vor.u32 %v5650_v23, %v5647_v46  ;;  %v6089_v19 = vshrl.u32 %v11117_v24, 16  ;;  %v5633_v49 = vsel %vm9415_vm2, %v5628_v12, %v5632_v18  ;;  %v6092_v45 = vshll.u32 %v11117_v24, 16  ;;  %v5520_v9 = vld [vmem:[#allocation2 + $0x7c] sm:$0x1]  ;;  %v5522_v47 = vld [vmem:[#allocation2 + $0x88] sm:$0xf] }
 0x285   : > { %8725 = vmatprep.subr.bf16.mxu1 %v9055_v36  ;;  %v5661_v38 = vor.u32 %v5660_v6, %v5656_v14  ;;  %v5666_v56 = vrot.slane %v5664_v59, 5  ;;  %v5643_v37 = vsel %vm9415_vm2, %v5638_v5, %v5642_v10  ;;  %v7780_v40 = vrot.slane %v6084_v21, 11 }
 0x286   : > { %v5652_v35 = vrot.slane %v5651_v61, 4  ;;  %v6091_v60 = vrot.slane %v6089_v19, 7  ;;  %v7762_v1 = vcombine.low %v5633_v49, %v5643_v37  ;;  %v6098_v16 = vshrl.u32 %v11119_v4, 16 }
 0x287   : > { %v5662_v32 = vrot.slane %v5661_v38, 4  ;;  %v6101_v50 = vshll.u32 %v11119_v4, 16  ;;  %v6106_v22 = vshrl.u32 %v5948_v13, 16  ;;  %v6111_v8 = vshrl.u32 %v11127_v43, 16 }
 0x288   : > { %8726 = vmatpush3.bf16.msra.mxu1 %v9055_v36  ;;  %v5657_v44 = vsel %vm9415_vm2, %v5652_v35, %v5656_v14  ;;  %v6094_v57 = vor.u32 %v6092_v45, %v6091_v60  ;;  %v6096_v28 = vrot.slane %v6091_v60, 4  ;;  %8673 = vmatprep.mubr.bf16.mxu1 %v7762_v1  ;;  %v6100_v18 = vrot.slane %v6098_v16, 7 }
 0x289   : > { %8727 = vmatprep.subr.bf16.mxu1 %v9057_v33  ;;  %v5667_v27 = vsel %vm9415_vm2, %v5662_v32, %v5666_v56  ;;  %v6114_v11 = vshll.u32 %v11127_v43, 16  ;;  %v7781_v34 = vrot.slane %v6106_v22, 11  ;;  %v6120_v3 = vshrl.u32 %v11131_v2, 16  ;;  %v6563_v32 = vld [vmem:[#allocation2 + $0x24] sm:$0xf] }
 0x28a   : > { %v7763_v20 = vcombine.low %v5657_v44, %v5667_v27  ;;  %v6095_v36 = vsel %vm10816_vm13, %v7780_v40, %v6094_v57  ;;  %v6103_v52 = vor.u32 %v6101_v50, %v6100_v18  ;;  %v6113_v10 = vrot.slane %v6111_v8, 7  ;;  %v5523_v40 = vld [vmem:[#allocation2 + $0x8c] sm:$0x1] }
 0x28b   : > { %v6123_v7 = vshll.u32 %v11131_v2, 16  ;;  %v5669_v54 = vshrl.u32 %v5518_v42, 16  ;;  %v6122_v46 = vrot.slane %v6120_v3, 7  ;;  %v5672_v23 = vshll.u32 %v5518_v42, 16  ;;  %v6565_v3 = vld [vmem:[#allocation2 + $0x2c] sm:$0x1] }
 0x28c   : > { %8728 = vmatpush3.bf16.msra.mxu1 %v9057_v33  ;;  %v5678_v12 = vshll.u32 %v5519_v26, 16  ;;  %v5682_v14 = vshrl.u32 %v5519_v26, 16  ;;  %v6104_v6 = vsel %vm10816_vm13, %v6096_v28, %v6103_v52  ;;  %v6116_v59 = vor.u32 %v6114_v11, %v6113_v10  ;;  %v6564_v28 = vld [vmem:[#allocation2 + $0x28] sm:$0xf] }
 0x28d   : > { %8674 = vmatmul.mubr.bf16.gmra.mxu1 %v7763_v20  ;;  %v6118_v5 = vrot.slane %v6113_v10, 4  ;;  %v5671_v61 = vrot.slane %v5669_v54, 4  ;;  %v7788_v21 = vcombine.low %v6095_v36, %v6104_v6  ;;  %v6125_v19 = vor.u32 %v6123_v7, %v6122_v46 }
 0x28e   : > { %v5674_v13 = vrot.slane %v5672_v23, 5  ;;  %v5680_v49 = vrot.slane %v5678_v12, 5  ;;  %v6117_v38 = vsel %vm10816_vm13, %v7781_v34, %v6116_v59  ;;  %v5684_v56 = vrot.slane %v5682_v14, 4 }
 0x28f   : > { %v5688_v33 = vshll.u32 %v5520_v9, 16  ;;  %v5693_v45 = vshrl.u32 %v5521_v58, 16  ;;  %8709 = vmatprep.mubr.bf16.mxu0 %v7788_v21  ;;  %v6126_v37 = vsel %vm10816_vm13, %v6118_v5, %v6125_v19  ;;  %v5696_v60 = vshll.u32 %v5521_v58, 16  ;;  %v6566_v58 = vld [vmem:[#allocation2 + $0x34] sm:$0xf] }
 0x290   : > { %v5675_v35 = vor.u32 %v5674_v13, %v5671_v61  ;;  %v5702_v1 = vshll.u32 %v5522_v47, 16  ;;  %v7789_v16 = vcombine.low %v6117_v38, %v6126_v37  ;;  %v5685_v50 = vor.u32 %v5684_v56, %v5680_v49  ;;  %v6568_v13 = vld [vmem:[#allocation2 + $0x3c] sm:$0x1] }
 0x291   : > { %v5690_v44 = vrot.slane %v5688_v33, 5  ;;  %v5695_v57 = vrot.slane %v5693_v45, 4  ;;  %v5698_v42 = vrot.slane %v5696_v60, 5  ;;  %v5706_v18 = vshrl.u32 %v5522_v47, 16  ;;  %v6567_v47 = vld [vmem:[#allocation2 + $0x38] sm:$0xf] }
 0x292   : > { %v5676_v22 = vrot.slane %v5675_v35, 4  ;;  %v5704_v27 = vrot.slane %v5702_v1, 5  ;;  %8710 = vmatmul.mubr.bf16.gmra.mxu0 %v7789_v16  ;;  %v5686_v8 = vrot.slane %v5685_v50, 4  ;;  %v5712_v11 = vshll.u32 %v5523_v40, 16  ;;  %v6569_v35 = vld [vmem:[#allocation2 + $0x44] sm:$0xf] }
 0x293   : > { %v6588_v26 = vshrl.u32 %v6563_v32, 16  ;;  %v6591_v29 = vshll.u32 %v6563_v32, 16  ;;  %v5699_v36 = vor.u32 %v5698_v42, %v5695_v57  ;;  %v5708_v34 = vrot.slane %v5706_v18, 4  ;;  %v6570_v16 = vld [vmem:[#allocation2 + $0x48] sm:$0xf] }
 0x294   : > { %v5681_v20 = vsel %vm9415_vm2, %v5676_v22, %v5680_v49  ;;  %v6597_v9 = vshll.u32 %v6564_v28, 16  ;;  %v5691_v52 = vsel %vm9415_vm2, %v5686_v8, %v5690_v44  ;;  %v5714_v10 = vrot.slane %v5712_v11, 5  ;;  %v6571_v18 = vld [vmem:[#allocation2 + $0x4c] sm:$0x1] }
 0x295   : > { %v6590_v7 = vrot.slane %v6588_v26, 4  ;;  %v6593_v54 = vrot.slane %v6591_v29, 5  ;;  %v7764_v46 = vcombine.low %v5681_v20, %v5691_v52  ;;  %v5700_v23 = vrot.slane %v5699_v36, 4 }
 0x296   : > { %v5709_v12 = vor.u32 %v5708_v34, %v5704_v27  ;;  %v6599_v14 = vrot.slane %v6597_v9, 5  ;;  %v6601_v59 = vshrl.u32 %v6564_v28, 16  ;;  %v6607_v5 = vshll.u32 %v6565_v3, 16 }
 0x297   : > { %v6594_v6 = vor.u32 %v6593_v54, %v6590_v7  ;;  %v6612_v61 = vshrl.u32 %v6566_v58, 16  ;;  %8677 = vmatprep.mubr.bf16.mxu1 %v7764_v46  ;;  %v5705_v21 = vsel %vm9415_vm2, %v5700_v23, %v5704_v27  ;;  %v6615_v49 = vshll.u32 %v6566_v58, 16  ;;  %v6572_v58 = vld [vmem:[#allocation2 + $0x54] sm:$0xf]  ;;  %v6573_v7 = vld [vmem:[#allocation2 + $0x58] sm:$0xf] }
 0x298   : > { %v5710_v19 = vrot.slane %v5709_v12, 4  ;;  %v6621_v38 = vshll.u32 %v6567_v47, 16  ;;  %v6603_v33 = vrot.slane %v6601_v59, 4  ;;  %v6609_v45 = vrot.slane %v6607_v5, 5 }
 0x299   : > { %v6595_v56 = vrot.slane %v6594_v6, 4  ;;  %v6614_v37 = vrot.slane %v6612_v61, 4  ;;  %v6617_v60 = vrot.slane %v6615_v49, 5  ;;  %v6625_v32 = vshrl.u32 %v6567_v47, 16 }
 0x29a   : > { %v5715_v40 = vsel %vm9415_vm2, %v5710_v19, %v5714_v10  ;;  %v6623_v1 = vrot.slane %v6621_v38, 5  ;;  %v6604_v57 = vor.u32 %v6603_v33, %v6599_v14  ;;  %v6631_v28 = vshll.u32 %v6568_v13, 16 }
 0x29b   : > { %v7765_v50 = vcombine.low %v5705_v21, %v5715_v40  ;;  %v6600_v44 = vsel %vm9415_vm2, %v6595_v56, %v6599_v14  ;;  %v6618_v22 = vor.u32 %v6617_v60, %v6614_v37  ;;  %v6627_v42 = vrot.slane %v6625_v32, 4  ;;  %v6575_v21 = vld [vmem:[#allocation2 + $0x64] sm:$0xf]  ;;  %v6577_v32 = vld [vmem:[#allocation2 + $0x6c] sm:$0x1] }
 0x29c   : > { %v7799_v27 = vcombine.low %v11030_v55, %v11032_v31  ;;  %v6636_v8 = vshrl.u32 %v6569_v35, 16  ;;  %v6605_v11 = vrot.slane %v6604_v57, 4  ;;  %v6633_v26 = vrot.slane %v6631_v28, 5 }
 0x29d   : > { %8678 = vmatmul.mubr.bf16.gmra.mxu1 %v7765_v50  ;;  %v6639_v29 = vshll.u32 %v6569_v35, 16  ;;  %v6645_v20 = vshll.u32 %v6570_v16, 16  ;;  %v6619_v36 = vrot.slane %v6618_v22, 4  ;;  %v6628_v34 = vor.u32 %v6627_v42, %v6623_v1  ;;  %v6578_v22 = vld [vmem:[#allocation2 + $0x74] sm:$0xf] }
 0x29e   : > { %8729 = vmatprep.mubr.bf16.mxu1 %v7798_v15  ;;  %v6638_v3 = vrot.slane %v6636_v8, 4  ;;  %v6649_v9 = vshrl.u32 %v6570_v16, 16  ;;  %v6610_v52 = vsel %vm9415_vm2, %v6605_v11, %v6609_v45  ;;  %v6655_v10 = vshll.u32 %v6571_v18, 16 }
 0x29f   : > { %v6641_v55 = vrot.slane %v6639_v29, 5  ;;  %v6647_v31 = vrot.slane %v6645_v20, 5  ;;  %v7814_v54 = vcombine.low %v6600_v44, %v6610_v52  ;;  %v6624_v47 = vsel %vm9415_vm2, %v6619_v36, %v6623_v1  ;;  %v6576_v1 = vld [vmem:[#allocation2 + $0x68] sm:$0xf]  ;;  %v6579_v29 = vld [vmem:[#allocation2 + $0x78] sm:$0xf] }
 0x2a0   : > { %v6629_v46 = vrot.slane %v6628_v34, 4  ;;  %v6651_v23 = vrot.slane %v6649_v9, 4  ;;  %v6657_v14 = vrot.slane %v6655_v10, 5  ;;  %v6660_v48 = vshrl.u32 %v6572_v58, 16  ;;  %v6580_v34 = vld [vmem:[#allocation2 + $0x7c] sm:$0x1] }
 0x2a1   : > { %v6642_v12 = vor.u32 %v6641_v55, %v6638_v3  ;;  %v6663_v15 = vshll.u32 %v6572_v58, 16  ;;  %8761 = vmatprep.mubr.bf16.mxu0 %v7814_v54  ;;  %v6669_v5 = vshll.u32 %v6573_v7, 16  ;;  %v6673_v61 = vshrl.u32 %v6573_v7, 16 }
 0x2a2   : > { %v6634_v6 = vsel %vm9415_vm2, %v6629_v46, %v6633_v26  ;;  %v6652_v59 = vor.u32 %v6651_v23, %v6647_v31  ;;  %v6662_v49 = vrot.slane %v6660_v48, 4  ;;  %v6679_v37 = vshll.u32 %v6574_v41, 16 }
 0x2a3   : > { %v7815_v19 = vcombine.low %v6624_v47, %v6634_v6  ;;  %v6643_v13 = vrot.slane %v6642_v12, 4  ;;  %v6665_v38 = vrot.slane %v6663_v15, 5  ;;  %v6671_v33 = vrot.slane %v6669_v5, 5  ;;  %v6581_v12 = vld [vmem:[#allocation2 + $0x84] sm:$0xf] }
 0x2a4   : > { %v6653_v56 = vrot.slane %v6652_v59, 4  ;;  %v6675_v45 = vrot.slane %v6673_v61, 4  ;;  %v7800_v60 = vcombine.low %v11051_v0, %v11053_v30  ;;  %v6684_v16 = vshrl.u32 %v6575_v21, 16  ;;  %v6582_v6 = vld [vmem:[#allocation2 + $0x88] sm:$0xf] }
 0x2a5   : > { %8762 = vmatmul.mubr.bf16.vlgmr.msra.gmra.mxu0 %v7815_v19  ;;  %8730 = vmatmul.mubr.bf16.vlgmr.msra.gmra.mxu1 %v7799_v27  ;;  %v6648_v35 = vsel %vm9415_vm2, %v6643_v13, %v6647_v31  ;;  %v6666_v40 = vor.u32 %v6665_v38, %v6662_v49  ;;  %v6681_v57 = vrot.slane %v6679_v37, 5  ;;  %v7801_v28 = vcombine.low %v11060_v17, %v11063_v62  ;;  %v6583_v49 = vld [vmem:[#allocation2 + $0x8c] sm:$0x1] }
 0x2a6   : > { %v6658_v50 = vsel %vm9415_vm2, %v6653_v56, %v6657_v14  ;;  %v6676_v44 = vor.u32 %v6675_v45, %v6671_v33  ;;  %8733 = vmatprep.mubr.bf16.mxu1 %v7800_v60  ;;  %v6686_v18 = vrot.slane %v6684_v16, 4  ;;  %v6687_v8 = vshll.u32 %v6575_v21, 16 }
 0x2a7   : > { %v7816_v42 = vcombine.low %v6648_v35, %v6658_v50  ;;  %v6667_v27 = vrot.slane %v6666_v40, 4  ;;  %v6693_v26 = vshll.u32 %v6576_v1, 16  ;;  %v6697_v0 = vshrl.u32 %v6576_v1, 16 }
 0x2a8   : > { %v6677_v11 = vrot.slane %v6676_v44, 4  ;;  %v6703_v30 = vshll.u32 %v6577_v32, 16  ;;  %v6689_v36 = vrot.slane %v6687_v8, 5  ;;  %v6708_v3 = vshrl.u32 %v6578_v22, 16 }
 0x2a9   : > { %8765 = vmatprep.mubr.bf16.mxu0 %v7816_v42  ;;  %v6672_v20 = vsel %vm9415_vm2, %v6667_v27, %v6671_v33  ;;  %v6711_v9 = vshll.u32 %v6578_v22, 16  ;;  %v6695_v62 = vrot.slane %v6693_v26, 5  ;;  %v6699_v58 = vrot.slane %v6697_v0, 4 }
 0x2aa   : > { %v6682_v17 = vsel %vm9415_vm2, %v6677_v11, %v6681_v57  ;;  %v6705_v52 = vrot.slane %v6703_v30, 5  ;;  %v6690_v31 = vor.u32 %v6689_v36, %v6686_v18  ;;  %v6710_v10 = vrot.slane %v6708_v3, 4  ;;  %v6586_v57 = vld [vmem:[#allocation2 + $0x9c] sm:$0x1] }
 0x2ab   : > { %v7817_v55 = vcombine.low %v6672_v20, %v6682_v17  ;;  %v6713_v7 = vrot.slane %v6711_v9, 5  ;;  %v6700_v54 = vor.u32 %v6699_v58, %v6695_v62  ;;  %v6717_v47 = vshll.u32 %v6579_v29, 16 }
 0x2ac   : > { %v6721_v46 = vshrl.u32 %v6579_v29, 16  ;;  %v6727_v23 = vshll.u32 %v6580_v34, 16  ;;  %v6691_v14 = vrot.slane %v6690_v31, 4  ;;  %v7802_v48 = vcombine.low %v11085_v25, %v11087_v63 }
 0x2ad   : > { %8766 = vmatmul.mubr.bf16.gmra.mxu0 %v7817_v55  ;;  %8734 = vmatmul.mubr.bf16.gmra.mxu1 %v7801_v28  ;;  %v6714_v41 = vor.u32 %v6713_v7, %v6710_v10  ;;  %v7803_v15 = vcombine.low %v11091_v39, %v11099_v51  ;;  %v6701_v59 = vrot.slane %v6700_v54, 4  ;;  %v6719_v5 = vrot.slane %v6717_v47, 5  ;;  %v6584_v39 = vld [vmem:[#allocation2 + $0x94] sm:$0xf]  ;;  %v6585_v51 = vld [vmem:[#allocation2 + $0x98] sm:$0xf] }
 0x2ae   : > { %v6723_v61 = vrot.slane %v6721_v46, 4  ;;  %v6729_v21 = vrot.slane %v6727_v23, 5  ;;  %v6696_v19 = vsel %vm9415_vm2, %v6691_v14, %v6695_v62  ;;  %8737 = vmatprep.mubr.bf16.mxu1 %v7802_v48  ;;  %v6732_v38 = vshrl.u32 %v6581_v12, 16 }
 0x2af   : > { %v6715_v13 = vrot.slane %v6714_v41, 4  ;;  %v6735_v56 = vshll.u32 %v6581_v12, 16  ;;  %v6706_v33 = vsel %vm9415_vm2, %v6701_v59, %v6705_v52  ;;  %v6741_v63 = vshll.u32 %v6582_v6, 16 }
 0x2b0   : > { %v6724_v25 = vor.u32 %v6723_v61, %v6719_v5  ;;  %v6745_v45 = vshrl.u32 %v6582_v6, 16  ;;  %v7818_v37 = vcombine.low %v6696_v19, %v6706_v33  ;;  %v6734_v40 = vrot.slane %v6732_v38, 4 }
 0x2b1   : > { %v6720_v35 = vsel %vm9415_vm2, %v6715_v13, %v6719_v5  ;;  %v6737_v60 = vrot.slane %v6735_v56, 5  ;;  %v6743_v32 = vrot.slane %v6741_v63, 5  ;;  %v6751_v50 = vshll.u32 %v6583_v49, 16 }
 0x2b2   : > { %v6725_v1 = vrot.slane %v6724_v25, 4  ;;  %v6747_v16 = vrot.slane %v6745_v45, 4  ;;  %8769 = vmatprep.mubr.bf16.mxu0 %v7818_v37  ;;  %v6756_v28 = vshrl.u32 %v6584_v39, 16  ;;  %v6759_v22 = vshll.u32 %v6584_v39, 16 }
 0x2b3   : > { %v6738_v44 = vor.u32 %v6737_v60, %v6734_v40  ;;  %v6765_v42 = vshll.u32 %v6585_v51, 16  ;;  %v6753_v8 = vrot.slane %v6751_v50, 5  ;;  %v6769_v11 = vshrl.u32 %v6585_v51, 16 }
 0x2b4   : > { %v6730_v27 = vsel %vm9415_vm2, %v6725_v1, %v6729_v21  ;;  %v6748_v18 = vor.u32 %v6747_v16, %v6743_v32  ;;  %v6758_v30 = vrot.slane %v6756_v28, 4  ;;  %v6761_v29 = vrot.slane %v6759_v22, 5 }
 0x2b5   : > { %v7819_v26 = vcombine.low %v6720_v35, %v6730_v27  ;;  %8738 = vmatmul.mubr.bf16.gmra.mxu1 %v7803_v15  ;;  %v6739_v0 = vrot.slane %v6738_v44, 4  ;;  %v6767_v36 = vrot.slane %v6765_v42, 5  ;;  %v6771_v34 = vrot.slane %v6769_v11, 4 }
 0x2b6   : > { %v6749_v20 = vrot.slane %v6748_v18, 4  ;;  %v6775_v3 = vshll.u32 %v6586_v57, 16  ;;  %v6762_v17 = vor.u32 %v6761_v29, %v6758_v30  ;;  %v7804_v62 = vcombine.low %v11117_v24, %v11119_v4 }
 0x2b7   : > { %8770 = vmatmul.mubr.bf16.gmra.mxu0 %v7819_v26  ;;  %v6744_v9 = vsel %vm9415_vm2, %v6739_v0, %v6743_v32  ;;  %v6772_v52 = vor.u32 %v6771_v34, %v6767_v36  ;;  %v7805_v7 = vcombine.low %v11127_v43, %v11131_v2 }
 0x2b8   : > { %v6754_v58 = vsel %vm9415_vm2, %v6749_v20, %v6753_v8  ;;  %v6777_v55 = vrot.slane %v6775_v3, 5  ;;  %v6763_v10 = vrot.slane %v6762_v17, 4  ;;  %8741 = vmatprep.mubr.bf16.mxu1 %v7804_v62 }
 0x2b9   : > { %v7820_v31 = vcombine.low %v6744_v9, %v6754_v58  ;;  %v6773_v54 = vrot.slane %v6772_v52, 4 }
 0x2ba   : > { %v6768_v47 = vsel %vm9415_vm2, %v6763_v10, %v6767_v36 }
 0x2bb   : > { %8773 = vmatprep.mubr.bf16.mxu0 %v7820_v31  ;;  %v6778_v46 = vsel %vm9415_vm2, %v6773_v54, %v6777_v55 }
 0x2bc   : > { %v7821_v24 = vcombine.low %v6768_v47, %v6778_v46 }
 0x2bd   : > { %8742 = vmatmul.mubr.bf16.gmra.mxu1 %v7805_v7 }
 0x2bf   : > { %8774 = vmatmul.mubr.bf16.gmra.mxu0 %v7821_v24 }
 0x2cd   : > { %v8507_v4 = vpop.f32.mrf.mxu1 }
 0x2cf   : > { %v4197_v23 = vpop.f32.mrf.mxu1 }
 0x2d1   : > { %v8508_v12 = vpop.f32.mrf.mxu1 }
 0x2d3   : > { %v4200_v14 = vpop.f32.mrf.mxu1 }
 0x2d5   : > { %v8511_v41 = vpop.f32.mrf.mxu1 }
 0x2d7   : > { %v4213_v48 = vpop.f32.mrf.mxu1 }
 0x2d9   : > { %v8512_v15 = vpop.f32.mrf.mxu1 }
 0x2db   : > { %v4216_v6 = vpop.f32.mrf.mxu1 }
 0x2dd   : > { %v8515_v43 = vpop.f32.mrf.mxu1  ;;  %v8571_v59 = vpop.f32.mrf.mxu0 }
 0x2df   : > { %v4229_v2 = vpop.f32.mrf.mxu1  ;;  %v4784_v61 = vpop.f32.mrf.mxu0 }
 0x2e1   : > { %v8516_v5 = vpop.f32.mrf.mxu1  ;;  %v8572_v19 = vpop.f32.mrf.mxu0 }
 0x2e3   : > { %v4232_v21 = vpop.f32.mrf.mxu1  ;;  %v4787_v13 = vpop.f32.mrf.mxu0 }
 0x2e5   : > { %v8519_v53 = vpop.f32.mrf.mxu1 }
 0x2e7   : > { %v4245_v49 = vpop.f32.mrf.mxu1 }
 0x2e8   : > { %v8575_v56 = vpop.f32.mrf.mxu0 }
 0x2e9   : > { %v8520_v38 = vpop.f32.mrf.mxu1 }
 0x2ea   : > { %v4800_v25 = vpop.f32.mrf.mxu0 }
 0x2eb   : > { %v4248_v33 = vpop.f32.mrf.mxu1 }
 0x2ec   : > { %v8576_v39 = vpop.f32.mrf.mxu0 }
 0x2ed   : > { %v8539_v63 = vpop.f32.mrf.mxu1 }
 0x2ee   : > { %v4383_v45 = vadd.f32 %v8539_v63, %v8507_v4  ;;  %v4803_v60 = vpop.f32.mrf.mxu0 }
 0x2ef   : > { %v4374_v51 = vpop.f32.mrf.mxu1 }
 0x2f0   : > { %v4375_v37 = vadd.f32 %v4374_v51, %v4197_v23  ;;  %v11206_v35 = vadd.f32 %v8571_v59, %v4383_v45 }
 0x2f1   : > { %v8540_v40 = vpop.f32.mrf.mxu1 }
 0x2f2   : > { %v4386_v1 = vadd.f32 %v8540_v40, %v8508_v12  ;;  %v11208_v32 = vadd.f32 %v4784_v61, %v4375_v37  ;;  %v8579_v28 = vpop.f32.mrf.mxu0 }
 0x2f3   : > { %v4377_v16 = vpop.f32.mrf.mxu1 }
 0x2f4   : > { %v4378_v50 = vadd.f32 %v4377_v16, %v4200_v14  ;;  %v11210_v44 = vadd.f32 %v8572_v19, %v4386_v1  ;;  %v4816_v18 = vpop.f32.mrf.mxu0 }
 0x2f5   : > { %v8543_v57 = vpop.f32.mrf.mxu1 }
 0x2f6   : > { %v4399_v22 = vadd.f32 %v8543_v57, %v8511_v41  ;;  %v11212_v42 = vadd.f32 %v4787_v13, %v4378_v50  ;;  %v8580_v0 = vpop.f32.mrf.mxu0 }
 0x2f7   : > { %v4390_v27 = vpop.f32.mrf.mxu1 }
 0x2f8   : > { %v4391_v8 = vadd.f32 %v4390_v27, %v4213_v48  ;;  %v11214_v11 = vadd.f32 %v8575_v56, %v4399_v22  ;;  %v4819_v34 = vpop.f32.mrf.mxu0 }
 0x2f9   : > { %v8544_v26 = vpop.f32.mrf.mxu1 }
 0x2fa   : > { %v4402_v30 = vadd.f32 %v8544_v26, %v8512_v15  ;;  %v11216_v29 = vadd.f32 %v4800_v25, %v4391_v8 }
 0x2fb   : > { %v4393_v20 = vpop.f32.mrf.mxu1 }
 0x2fc   : > { %v4394_v36 = vadd.f32 %v4393_v20, %v4216_v6  ;;  %v11218_v3 = vadd.f32 %v8576_v39, %v4402_v30 }
 0x2fd   : > { %v8547_v9 = vpop.f32.mrf.mxu1  ;;  %v8583_v55 = vpop.f32.mrf.mxu0 }
 0x2fe   : > { %v4415_v17 = vadd.f32 %v8547_v9, %v8515_v43  ;;  %v11220_v62 = vadd.f32 %v4803_v60, %v4394_v36 }
 0x2ff   : > { %v4406_v58 = vpop.f32.mrf.mxu1  ;;  %v4832_v54 = vpop.f32.mrf.mxu0 }
 0x300   : > { %v4407_v52 = vadd.f32 %v4406_v58, %v4229_v2  ;;  %v11222_v31 = vadd.f32 %v8579_v28, %v4415_v17 }
 0x301   : > { %v8548_v10 = vpop.f32.mrf.mxu1  ;;  %v8584_v4 = vpop.f32.mrf.mxu0 }
 0x302   : > { %v4418_v7 = vadd.f32 %v8548_v10, %v8516_v5  ;;  %v11224_v47 = vadd.f32 %v4816_v18, %v4407_v52 }
 0x303   : > { %v4409_v46 = vpop.f32.mrf.mxu1  ;;  %v4835_v41 = vpop.f32.mrf.mxu0 }
 0x304   : > { %v4410_v24 = vadd.f32 %v4409_v46, %v4232_v21  ;;  %v11226_v23 = vadd.f32 %v8580_v0, %v4418_v7 }
 0x305   : > { %v8551_v12 = vpop.f32.mrf.mxu1  ;;  %v11230_v43 = vpop.f32.mrf.mxu0 }
 0x306   : > { %v4431_v14 = vadd.f32 %v8551_v12, %v8519_v53  ;;  %v11228_v48 = vadd.f32 %v4819_v34, %v4410_v24 }
 0x307   : > { %v4422_v15 = vpop.f32.mrf.mxu1  ;;  %v11234_v61 = vpop.f32.mrf.mxu0 }
 0x308   : > { %v4423_v6 = vadd.f32 %v4422_v15, %v4245_v49  ;;  %v11232_v2 = vadd.f32 %v8583_v55, %v4431_v14 }
 0x309   : > { %v8552_v59 = vpop.f32.mrf.mxu1  ;;  %v11238_v56 = vpop.f32.mrf.mxu0 }
 0x30a   : > { %v4434_v5 = vadd.f32 %v8552_v59, %v8520_v38  ;;  %v11236_v19 = vadd.f32 %v4832_v54, %v4423_v6 }
 0x30b   : > { %v4425_v21 = vpop.f32.mrf.mxu1  ;;  %v11242_v63 = vpop.f32.mrf.mxu0 }
 0x30c   : > { %v4426_v13 = vadd.f32 %v4425_v21, %v4248_v33  ;;  %v11240_v53 = vadd.f32 %v8584_v4, %v4434_v5 }
 0x30d   : > { %v8603_v25 = vpop.f32.mrf.mxu1  ;;  %v11246_v39 = vpop.f32.mrf.mxu0 }
 0x30e   : > { %v11244_v49 = vadd.f32 %v4835_v41, %v4426_v13 }
 0x30f   : > { %v5195_v45 = vpop.f32.mrf.mxu1  ;;  %v11248_v38 = vpop.f32.mrf.mxu0 }
 0x310   : > { %11549 = vst [vmem:[#allocation12_spill] sm:$0xff] %v11244_v49 }
 0x311   : > { %v8604_v51 = vpop.f32.mrf.mxu1  ;;  %v11250_v40 = vpop.f32.mrf.mxu0 }
 0x313   : > { %v5198_v37 = vpop.f32.mrf.mxu1  ;;  %v11252_v33 = vpop.f32.mrf.mxu0 }
 0x315   : > { %v8607_v60 = vpop.f32.mrf.mxu1  ;;  %v11254_v16 = vpop.f32.mrf.mxu0 }
 0x317   : > { %v5211_v1 = vpop.f32.mrf.mxu1  ;;  %v11256_v57 = vpop.f32.mrf.mxu0 }
 0x319   : > { %v8608_v50 = vpop.f32.mrf.mxu1  ;;  %v11258_v22 = vpop.f32.mrf.mxu0 }
 0x31b   : > { %v5214_v28 = vpop.f32.mrf.mxu1  ;;  %v11260_v18 = vpop.f32.mrf.mxu0 }
 0x31d   : > { %v8611_v27 = vpop.f32.mrf.mxu1  ;;  %v11262_v26 = vpop.f32.mrf.mxu0 }
 0x31f   : > { %v5227_v8 = vpop.f32.mrf.mxu1  ;;  %v11264_v30 = vpop.f32.mrf.mxu0 }
 0x321   : > { %v8612_v0 = vpop.f32.mrf.mxu1  ;;  %v11266_v36 = vpop.f32.mrf.mxu0 }
 0x322   : > { %11550 = vst [vmem:[#allocation17_spill] sm:$0xff] %v11266_v36 }
 0x323   : > { %v5230_v20 = vpop.f32.mrf.mxu1  ;;  %v11268_v9 = vpop.f32.mrf.mxu0 }
 0x324   : > { %11551 = vst [vmem:[#allocation20_spill] sm:$0xff] %v11268_v9 }
 0x325   : > { %v8615_v34 = vpop.f32.mrf.mxu1 }
 0x326   : > { %v8699_v58 = vpop.f32.mrf.mxu0 }
 0x327   : > { %v5243_v17 = vpop.f32.mrf.mxu1 }
 0x328   : > { %v6258_v55 = vpop.f32.mrf.mxu0 }
 0x329   : > { %v11270_v52 = vpop.f32.mrf.mxu1 }
 0x32a   : > { %v11274_v7 = vpop.f32.mrf.mxu0 }
 0x32b   : > { %v11272_v10 = vpop.f32.mrf.mxu1 }
 0x32c   : > { %11552 = vst [vmem:[#allocation13_spill] sm:$0xff] %v11272_v10  ;;  %v11276_v24 = vpop.f32.mrf.mxu0 }
 0x32d   : > { %11553 = vst [vmem:[#allocation14_spill] sm:$0xff] %v11276_v24 }
 0x32f   : > { %v8667_v54 = vpop.f32.mrf.mxu1 }
 0x331   : > { %v5847_v46 = vpop.f32.mrf.mxu1 }
 0x333   : > { %v8668_v4 = vpop.f32.mrf.mxu1 }
 0x335   : > { %v11278_v12 = vpop.f32.mrf.mxu0  ;;  %v5850_v14 = vpop.f32.mrf.mxu1 }
 0x336   : > { %11554 = vst [vmem:[#allocation15_spill] sm:$0xff] %v11278_v12 }
 0x337   : > { %v11280_v41 = vpop.f32.mrf.mxu0 }
 0x338   : > { %11555 = vst [vmem:[#allocation16_spill] sm:$0xff] %v11280_v41 }
 0x339   : > { %v11282_v6 = vpop.f32.mrf.mxu0 }
 0x33a   : > { %11556 = vst [vmem:[#allocation18_spill] sm:$0xff] %v11282_v6 }
 0x33b   : > { %v11284_v5 = vpop.f32.mrf.mxu0 }
 0x33c   : > { %11557 = vst [vmem:[#allocation19_spill] sm:$0xff] %v11284_v5 }
 0x33d   : > { %v8671_v15 = vpop.f32.mrf.mxu1 }
 0x33f   : > { %v5863_v59 = vpop.f32.mrf.mxu1 }
 0x341   : > { %v11286_v21 = vpop.f32.mrf.mxu1 }
 0x342   : > { %11558 = vst [vmem:[#allocation21_spill] sm:$0xff] %v11286_v21 }
 0x343   : > { %v11290_v9 = vpop.f32.mrf.mxu1 }
 0x344   : > { %v11288_v13 = vpop.f32.mrf.mxu0  ;;  %11560 = vst [vmem:[#allocation11_spill] sm:$0xff] %v11290_v9 }
 0x345   : > { %11559 = vst [vmem:[#allocation10_spill] sm:$0xff] %v11288_v13  ;;  %v5260_v13 = vadd.f32 %v8603_v25, %v11206_v35  ;;  %v5262_v35 = vadd.f32 %v5211_v1, %v11216_v29  ;;  %v5269_v29 = vadd.f32 %v8612_v0, %v11226_v23 }
 0x346   : > { %v11292_v36 = vpop.f32.mrf.mxu0 }
 0x347   : > { %11561 = vst [vmem:[#allocation22_spill] sm:$0xff] %v11292_v36  ;;  %v5258_v36 = vadd.f32 %v5195_v45, %v11208_v32  ;;  %v5265_v32 = vadd.f32 %v8608_v50, %v11218_v3  ;;  %v5267_v50 = vadd.f32 %v5230_v20, %v11228_v48 }
 0x348   : > { %v11296_v12 = vpop.f32.mrf.mxu0 }
 0x349   : > { %11563 = vst [vmem:[#allocation23_spill] sm:$0xff] %v11296_v12  ;;  %v5261_v12 = vadd.f32 %v8604_v51, %v11210_v44  ;;  %v5263_v44 = vadd.f32 %v5214_v28, %v11220_v62  ;;  %v5268_v51 = vadd.f32 %v8611_v27, %v11222_v31  ;;  %v5272_v62 = vadd.f32 %v8615_v34, %v11232_v2  ;;  %v11349_v2 = vld [vmem:[%s11493_s4] ss:$0 sm:$0xff] }
 0x34a   : > { %v11300_v41 = vpop.f32.mrf.mxu0  ;;  %v5491_v31 = vadd.f32 %v11250_v40, %v5265_v32  ;;  %v5495_v40 = vadd.f32 %v11258_v22, %v5269_v29  ;;  %v5273_v34 = vadd.f32 %v11270_v52, %v11240_v53  ;;  %v11572_v53 = vld [vmem:[#allocation21_spill] sm:$0xff] }
 0x34b   : > { %11565 = vst [vmem:[#allocation25_spill] sm:$0xff] %v11300_v41  ;;  %v5486_v41 = vadd.f32 %v11230_v43, %v5260_v13  ;;  %v5489_v27 = vadd.f32 %v11252_v33, %v5263_v44  ;;  %v11575_v13 = vld [vmem:[#allocation11_spill] sm:$0xff] }
 0x34c   : > { %v5917_v52 = vadd.f32 %v11572_v53, %v5491_v31 }
 0x34d   : > { %v11294_v24 = vpop.f32.mrf.mxu1 }
 0x34e   : > { %11562 = vst [vmem:[#allocation9_spill] sm:$0xff] %v11294_v24 }
 0x34f   : > { %v11298_v10 = vpop.f32.mrf.mxu1 }
 0x350   : > { %11564 = vst [vmem:[#allocation24_spill] sm:$0xff] %v11298_v10 }
 0x351   : > { %v11302_v6 = vpop.f32.mrf.mxu1 }
 0x352   : > { %11566 = vst [vmem:[#allocation26_spill] sm:$0xff] %v11302_v6  ;;  %v11304_v49 = vpop.f32.mrf.mxu0  ;;  %v5259_v6 = vadd.f32 %v5198_v37, %v11212_v42  ;;  %v5487_v42 = vadd.f32 %v11238_v56, %v5261_v12  ;;  %v5488_v56 = vadd.f32 %v11248_v38, %v5262_v35  ;;  %v11570_v12 = vld [vmem:[#allocation12_spill] sm:$0xff]  ;;  %v5915_v35 = vadd.f32 %v11575_v13, %v5489_v27 }
 0x353   : > { %11567 = vst [vmem:[#allocation27_spill] sm:$0xff] %v11304_v49  ;;  %v11306_v5 = vpop.f32.mrf.mxu1  ;;  %v5264_v49 = vadd.f32 %v8607_v60, %v11214_v11  ;;  %v5266_v11 = vadd.f32 %v5227_v8, %v11224_v47 }
 0x354   : > { %11568 = vst [vmem:[#allocation28_spill] sm:$0xff] %v11306_v5  ;;  %v11308_v21 = vpop.f32.mrf.mxu0  ;;  %v5912_v5 = vadd.f32 %v8667_v54, %v5486_v41  ;;  %v5485_v37 = vadd.f32 %v11242_v63, %v5259_v6  ;;  %v5913_v3 = vadd.f32 %v8668_v4, %v5487_v42  ;;  %v5270_v63 = vadd.f32 %v5243_v17, %v11236_v19  ;;  %v11574_v6 = vld [vmem:[#allocation15_spill] sm:$0xff] }
 0x355   : > { %11569 = vst [vmem:[#allocation29_spill] sm:$0xff] %v11308_v21  ;;  %v5484_v21 = vadd.f32 %v11234_v61, %v5258_v36  ;;  %v5490_v60 = vadd.f32 %v11246_v39, %v5264_v49  ;;  %v5494_v49 = vadd.f32 %v11254_v16, %v5268_v51  ;;  %v5492_v48 = vadd.f32 %v11256_v57, %v5266_v11  ;;  %v11576_v32 = vld [vmem:[#allocation9_spill] sm:$0xff]  ;;  %v11577_v11 = vld [vmem:[#allocation16_spill] sm:$0xff] }
 0x356   : > { %v11314_v24 = vpop.f32.mrf.mxu0  ;;  %v6323_v1 = vadd.f32 %v8699_v58, %v5912_v5  ;;  %v5911_v0 = vadd.f32 %v5850_v14, %v5485_v37  ;;  %v6324_v33 = vadd.f32 %v11274_v7, %v5913_v3  ;;  %v5914_v17 = vadd.f32 %v5863_v59, %v5488_v56  ;;  %v11571_v7 = vld [vmem:[#allocation13_spill] sm:$0xff] }
 0x357   : > { %v5910_v43 = vadd.f32 %v5847_v46, %v5484_v21  ;;  %v5916_v36 = vadd.f32 %v8671_v15, %v5490_v60  ;;  %v5493_v16 = vadd.f32 %v11260_v18, %v5267_v50  ;;  %v11357_v57 = vadd.f32 %v11262_v26, %v5272_v62  ;;  %v11573_v18 = vld [vmem:[#allocation14_spill] sm:$0xff] }
 0x358   : > { %v11325_v25 = vpop.f32.mrf.mxu0  ;;  %v11360_v54 = vadd.f32 %v11264_v30, %v5270_v63  ;;  %v11365_v14 = vadd.f32 %v11571_v7, %v11570_v12  ;;  %v6322_v15 = vadd.f32 %v11573_v18, %v5911_v0  ;;  %v5920_v44 = vadd.f32 %v11576_v32, %v5494_v49  ;;  %v11580_v0 = vld [vmem:[#allocation17_spill] sm:$0xff] }
 0x359   : > { %v6321_v23 = vadd.f32 %v6258_v55, %v5910_v43  ;;  %v6327_v59 = vadd.f32 %v11574_v6, %v5916_v36  ;;  %v6325_v37 = vadd.f32 %v11577_v11, %v5914_v17  ;;  %v5499_v36 = vadd.f32 %v11580_v0, %v5273_v34 }
 0x35b   : > { %v11585_v6 = vld [vmem:[#allocation28_spill] sm:$0xff] }
 0x35d   : > { %v11312_v9 = vpop.f32.mrf.mxu1 }
 0x35e   : > { %v5924_v32 = vadd.f32 %v11312_v9, %v11357_v57 }
 0x35f   : > { %v11319_v10 = vpop.f32.mrf.mxu1 }
 0x361   : > { %v11327_v45 = vpop.f32.mrf.mxu1 }
 0x363   : > { %v11334_v61 = vpop.f32.mrf.mxu1 }
 0x365   : > { %v8763_v28 = vpop.f32.mrf.mxu0  ;;  %v8731_v47 = vpop.f32.mrf.mxu1 }
 0x366   : > { %v6549_v8 = vadd.f32 %v8731_v47, %v6323_v1  ;;  %v11578_v1 = vld [vmem:[#allocation24_spill] sm:$0xff]  ;;  %v11579_v47 = vld [vmem:[#allocation18_spill] sm:$0xff] }
 0x367   : > { %v6910_v39 = vpop.f32.mrf.mxu0  ;;  %v6484_v38 = vpop.f32.mrf.mxu1  ;;  %v5918_v50 = vadd.f32 %v11578_v1, %v5492_v48  ;;  %v6328_v63 = vadd.f32 %v11579_v47, %v5917_v52 }
 0x368   : > { %v6975_v19 = vadd.f32 %v8763_v28, %v6549_v8  ;;  %v6547_v20 = vadd.f32 %v6484_v38, %v6321_v23 }
 0x369   : > { %v8764_v58 = vpop.f32.mrf.mxu0  ;;  %v8732_v55 = vpop.f32.mrf.mxu1 }
 0x36a   : > { %v6998_v22 = vadd.f32 %v11349_v2, %v6975_v19  ;;  %v6973_v46 = vadd.f32 %v6910_v39, %v6547_v20  ;;  %v6550_v4 = vadd.f32 %v8732_v55, %v6324_v33  ;;  %v11581_v19 = vld [vmem:[#allocation19_spill] sm:$0xff]  ;;  %v11582_v55 = vld [vmem:[#allocation10_spill] sm:$0xff] }
 0x36b   : > { %v6913_v41 = vpop.f32.mrf.mxu0  ;;  %v6487_v26 = vpop.f32.mrf.mxu1  ;;  %v6326_v20 = vadd.f32 %v11581_v19, %v5915_v35 }
 0x36c   : > { %vm7014_vm2 = vcmp.ge.f32.partialorder %v6998_v22, 0.0  ;;  %v7030_v30 = vmul.f32 0.2, %v6998_v22  ;;  %v6996_v5 = vadd.f32 %v11349_v2, %v6973_v46  ;;  %v6976_v21 = vadd.f32 %v8764_v58, %v6550_v4  ;;  %v11583_v46 = vld [vmem:[#allocation26_spill] sm:$0xff] }
 0x36d   : > { %v8767_v43 = vpop.f32.mrf.mxu0  ;;  %v6548_v42 = vadd.f32 %v6487_v26, %v6322_v15  ;;  %v8735_v51 = vpop.f32.mrf.mxu1  ;;  %v5921_v4 = vadd.f32 %v11583_v46, %v5495_v40  ;;  %v11584_v15 = vld [vmem:[#allocation22_spill] sm:$0xff] }
 0x36e   : > { %v7046_v29 = vsel %vm7014_vm2, %v6998_v22, %v7030_v30  ;;  %vm7012_vm14 = vcmp.ge.f32.partialorder %v6996_v5, 0.0  ;;  %v7028_v3 = vmul.f32 0.2, %v6996_v5  ;;  %v6999_v60 = vadd.f32 %v11349_v2, %v6976_v21 }
 0x36f   : > { %7062 = vst [vmem:[%s10661_s6 + $0x10] sm:$0xff] %v7046_v29  ;;  %v6974_v62 = vadd.f32 %v6913_v41, %v6548_v42  ;;  %v6926_v56 = vpop.f32.mrf.mxu0  ;;  %v6553_v31 = vadd.f32 %v8735_v51, %v6327_v59  ;;  %v6500_v28 = vpop.f32.mrf.mxu1  ;;  %v6331_v22 = vadd.f32 %v11582_v55, %v5920_v44  ;;  %v6329_v26 = vadd.f32 %v11584_v15, %v5918_v50 }
 0x370   : > { %v7044_v27 = vsel %vm7012_vm14, %v6996_v5, %v7028_v3  ;;  %vm7015_vm15 = vcmp.ge.f32.partialorder %v6999_v60, 0.0  ;;  %v7031_v8 = vmul.f32 0.2, %v6999_v60  ;;  %v6551_v23 = vadd.f32 %v6500_v28, %v6325_v37 }
 0x371   : > { %7060 = vst [vmem:[%s10661_s6] sm:$0xff] %v7044_v27  ;;  %v6997_v49 = vadd.f32 %v11349_v2, %v6974_v62  ;;  %v6979_v39 = vadd.f32 %v8767_v43, %v6553_v31  ;;  %v8768_v38 = vpop.f32.mrf.mxu0  ;;  %v8736_v48 = vpop.f32.mrf.mxu1  ;;  %v5919_v59 = vadd.f32 %v11585_v6, %v5493_v16  ;;  %v11586_v16 = vld [vmem:[#allocation23_spill] sm:$0xff]  ;;  %v5922_v27 = vadd.f32 %v11319_v10, %v11360_v54 }
 0x372   : > { %v7047_v33 = vsel %vm7015_vm15, %v6999_v60, %v7031_v8  ;;  %v6977_v17 = vadd.f32 %v6926_v56, %v6551_v23  ;;  %v6554_v58 = vadd.f32 %v8736_v48, %v6328_v63  ;;  %v6332_v11 = vadd.f32 %v11586_v16, %v5921_v4  ;;  %v11587_v60 = vld [vmem:[#allocation20_spill] sm:$0xff]  ;;  %v11588_v56 = vld [vmem:[#allocation25_spill] sm:$0xff] }
 0x373   : > { %7063 = vst [vmem:[%s10661_s6 + $0x18] sm:$0xff] %v7047_v33  ;;  %vm7013_vm0 = vcmp.ge.f32.partialorder %v6997_v49, 0.0  ;;  %v7029_v12 = vmul.f32 0.2, %v6997_v49  ;;  %v7002_v34 = vadd.f32 %v11349_v2, %v6979_v39  ;;  %v6929_v7 = vpop.f32.mrf.mxu0  ;;  %v6503_v53 = vpop.f32.mrf.mxu1  ;;  %v5497_v1 = vadd.f32 %v11587_v60, %v11365_v14 }
 0x374   : > { %v7000_v52 = vadd.f32 %v11349_v2, %v6977_v17  ;;  %v6980_v41 = vadd.f32 %v8768_v38, %v6554_v58  ;;  %v6552_v18 = vadd.f32 %v6503_v53, %v6326_v20  ;;  %v6330_v31 = vadd.f32 %v11588_v56, %v5919_v59 }
 0x375   : > { %v7045_v30 = vsel %vm7013_vm0, %v6997_v49, %v7029_v12  ;;  %vm7018_vm1 = vcmp.ge.f32.partialorder %v7002_v34, 0.0  ;;  %v7034_v40 = vmul.f32 0.2, %v7002_v34  ;;  %v8739_v5 = vpop.f32.mrf.mxu1  ;;  %v11589_v49 = vld [vmem:[#allocation27_spill] sm:$0xff]  ;;  %v5925_v38 = vadd.f32 %v11327_v45, %v5499_v36  ;;  %v11590_v12 = vld [vmem:[#allocation29_spill] sm:$0xff] }
 0x376   : > { %7061 = vst [vmem:[%s10661_s6 + $0x8] sm:$0xff] %v7045_v30  ;;  %vm7016_vm3 = vcmp.ge.f32.partialorder %v7000_v52, 0.0  ;;  %v7032_v21 = vmul.f32 0.2, %v7000_v52  ;;  %v7003_v13 = vadd.f32 %v11349_v2, %v6980_v41  ;;  %v6978_v35 = vadd.f32 %v6929_v7, %v6552_v18 }
 0x377   : > { %v7050_v44 = vsel %vm7018_vm1, %v7002_v34, %v7034_v40  ;;  %v8771_v43 = vpop.f32.mrf.mxu0  ;;  %v6557_v42 = vadd.f32 %v8739_v5, %v6331_v22  ;;  %v6516_v51 = vpop.f32.mrf.mxu1  ;;  %v6335_v39 = vadd.f32 %v11589_v49, %v5924_v32  ;;  %v5923_v33 = vadd.f32 %v11334_v61, %v5497_v1 }
 0x378   : > { %7066 = vst [vmem:[%s10661_s6 + $0x30] sm:$0xff] %v7050_v44  ;;  %v7048_v37 = vsel %vm7016_vm3, %v7000_v52, %v7032_v21  ;;  %vm7019_vm4 = vcmp.ge.f32.partialorder %v7003_v13, 0.0  ;;  %v7035_v29 = vmul.f32 0.2, %v7003_v13  ;;  %v7001_v3 = vadd.f32 %v11349_v2, %v6978_v35 }
 0x379   : > { %7064 = vst [vmem:[%s10661_s6 + $0x20] sm:$0xff] %v7048_v37  ;;  %v6942_v50 = vpop.f32.mrf.mxu0  ;;  %v6983_v62 = vadd.f32 %v8771_v43, %v6557_v42  ;;  %v6555_v9 = vadd.f32 %v6516_v51, %v6329_v26  ;;  %v8740_v57 = vpop.f32.mrf.mxu1  ;;  %v6333_v34 = vadd.f32 %v11590_v12, %v5922_v27  ;;  %v6336_v26 = vadd.f32 %v11314_v24, %v5925_v38 }
 0x37a   : > { %v7051_v28 = vsel %vm7019_vm4, %v7003_v13, %v7035_v29  ;;  %vm7017_vm5 = vcmp.ge.f32.partialorder %v7001_v3, 0.0  ;;  %v7033_v47 = vmul.f32 0.2, %v7001_v3  ;;  %v6558_v63 = vadd.f32 %v8740_v57, %v6332_v11 }
 0x37b   : > { %7067 = vst [vmem:[%s10661_s6 + $0x38] sm:$0xff] %v7051_v28  ;;  %v7006_v8 = vadd.f32 %v11349_v2, %v6983_v62  ;;  %v8772_v23 = vpop.f32.mrf.mxu0  ;;  %v6981_v14 = vadd.f32 %v6942_v50, %v6555_v9  ;;  %v6519_v0 = vpop.f32.mrf.mxu1  ;;  %v6334_v59 = vadd.f32 %v11325_v25, %v5923_v33 }
 0x37c   : > { %v7049_v48 = vsel %vm7017_vm5, %v7001_v3, %v7033_v47  ;;  %v6984_v19 = vadd.f32 %v8772_v23, %v6558_v63  ;;  %v6556_v20 = vadd.f32 %v6519_v0, %v6330_v31 }
 0x37d   : > { %7065 = vst [vmem:[%s10661_s6 + $0x28] sm:$0xff] %v7049_v48  ;;  %vm7022_vm6 = vcmp.ge.f32.partialorder %v7006_v8, 0.0  ;;  %v7038_v17 = vmul.f32 0.2, %v7006_v8  ;;  %v7004_v10 = vadd.f32 %v11349_v2, %v6981_v14  ;;  %v6945_v54 = vpop.f32.mrf.mxu0  ;;  %v8743_v58 = vpop.f32.mrf.mxu1 }
 0x37e   : > { %v7007_v55 = vadd.f32 %v11349_v2, %v6984_v19  ;;  %v6982_v22 = vadd.f32 %v6945_v54, %v6556_v20  ;;  %v6561_v46 = vadd.f32 %v8743_v58, %v6335_v39 }
 0x37f   : > { %v7054_v4 = vsel %vm7022_vm6, %v7006_v8, %v7038_v17  ;;  %vm7020_vm7 = vcmp.ge.f32.partialorder %v7004_v10, 0.0  ;;  %v7036_v45 = vmul.f32 0.2, %v7004_v10  ;;  %v8775_v36 = vpop.f32.mrf.mxu0  ;;  %v6532_v61 = vpop.f32.mrf.mxu1 }
 0x380   : > { %7070 = vst [vmem:[%s10661_s6 + $0x50] sm:$0xff] %v7054_v4  ;;  %vm7023_vm8 = vcmp.ge.f32.partialorder %v7007_v55, 0.0  ;;  %v7039_v7 = vmul.f32 0.2, %v7007_v55  ;;  %v7005_v53 = vadd.f32 %v11349_v2, %v6982_v22  ;;  %v6987_v52 = vadd.f32 %v8775_v36, %v6561_v46 }
 0x381   : > { %v7052_v41 = vsel %vm7020_vm7, %v7004_v10, %v7036_v45  ;;  %v6958_v18 = vpop.f32.mrf.mxu0  ;;  %v6559_v15 = vadd.f32 %v6532_v61, %v6333_v34  ;;  %v8744_v6 = vpop.f32.mrf.mxu1 }
 0x382   : > { %7068 = vst [vmem:[%s10661_s6 + $0x40] sm:$0xff] %v7052_v41  ;;  %v7055_v30 = vsel %vm7023_vm8, %v7007_v55, %v7039_v7  ;;  %vm7021_vm9 = vcmp.ge.f32.partialorder %v7005_v53, 0.0  ;;  %v7037_v40 = vmul.f32 0.2, %v7005_v53  ;;  %v7010_v5 = vadd.f32 %v11349_v2, %v6987_v52 }
 0x383   : > { %7071 = vst [vmem:[%s10661_s6 + $0x58] sm:$0xff] %v7055_v30  ;;  %v8776_v21 = vpop.f32.mrf.mxu0  ;;  %v6985_v13 = vadd.f32 %v6958_v18, %v6559_v15  ;;  %v6562_v35 = vadd.f32 %v8744_v6, %v6336_v26  ;;  %v6535_v32 = vpop.f32.mrf.mxu1 }
 0x384   : > { %v7053_v24 = vsel %vm7021_vm9, %v7005_v53, %v7037_v40  ;;  %vm7026_vm10 = vcmp.ge.f32.partialorder %v7010_v5, 0.0  ;;  %v7042_v44 = vmul.f32 0.2, %v7010_v5  ;;  %v6560_v25 = vadd.f32 %v6535_v32, %v6334_v59 }
 0x385   : > { %7069 = vst [vmem:[%s10661_s6 + $0x48] sm:$0xff] %v7053_v24  ;;  %v7008_v43 = vadd.f32 %v11349_v2, %v6985_v13  ;;  %v6961_v42 = vpop.f32.mrf.mxu0  ;;  %v6988_v51 = vadd.f32 %v8776_v21, %v6562_v35 }
 0x386   : > { %v7058_v16 = vsel %vm7026_vm10, %v7010_v5, %v7042_v44  ;;  %v6986_v11 = vadd.f32 %v6961_v42, %v6560_v25 }
 0x387   : > { %7074 = vst [vmem:[%s10661_s6 + $0x70] sm:$0xff] %v7058_v16  ;;  %vm7024_vm11 = vcmp.ge.f32.partialorder %v7008_v43, 0.0  ;;  %v7040_v37 = vmul.f32 0.2, %v7008_v43  ;;  %v7011_v29 = vadd.f32 %v11349_v2, %v6988_v51 }
 0x388   : > { %v7009_v3 = vadd.f32 %v11349_v2, %v6986_v11 }
 0x389   : > { %v7056_v60 = vsel %vm7024_vm11, %v7008_v43, %v7040_v37  ;;  %vm7027_vm12 = vcmp.ge.f32.partialorder %v7011_v29, 0.0  ;;  %v7043_v1 = vmul.f32 0.2, %v7011_v29 }
 0x38a   : > { %7072 = vst [vmem:[%s10661_s6 + $0x60] sm:$0xff] %v7056_v60  ;;  %vm7025_vm13 = vcmp.ge.f32.partialorder %v7009_v3, 0.0  ;;  %v7041_v50 = vmul.f32 0.2, %v7009_v3 }
 0x38b   : > { %v7059_v62 = vsel %vm7027_vm12, %v7011_v29, %v7043_v1 }
 0x38c   : > { %7075 = vst [vmem:[%s10661_s6 + $0x78] sm:$0xff] %v7059_v62  ;;  %v7057_v2 = vsel %vm7025_vm13, %v7009_v3, %v7041_v50 }
 0x38d   : > { %7073 = vst [vmem:[%s10661_s6 + $0x68] sm:$0xff] %v7057_v2 }
 0x38e   : > { %9105 = shalt.err (!%p9102_p9)
}
 0x38f   : > { %s9106_s6 = scalar_lea.hbm %s11432_s11, 2048  ;;  %s9110_s30 = scalar_lea.hbm %s11494_s5, 8192 }
 0x390   : > { %p9107_p11 = scmp.ne.s32.totalorder %s11432_s11, %s9106_s6  ;;  %p9111_p13 = scmp.lt.s32.totalorder %s11432_s11, %s11494_s5 }
 0x391   : > { %p9112_p0 = scmp.lt.s32.totalorder %s9110_s30, %s9106_s6 }
 0x392   : > { %p9108_p10 = pnand %p9107_p11, %p9281_p3 }
 0x393   : > { %p9113_p1 = por %p9112_p0, %p9111_p13 }
 0x394   : > { %p9109_p12 = pneg %p9108_p10 }
 0x396   : > { %p9114_p2 = pnand %p9113_p1, %p9109_p12 }
 0x398   : > { %9117 = shalt.err (!%p9114_p2)
}
 0x399   : > { %s9197_s17 = smov 128   ;;  %s9198_s27 = smov 8  }
 0x39a   : > { %8783 = dma.vmem_to_hbm [thread:$0]  (%p9281_p3), %s11427_s21, 2048, %s11432_s11, %s11438_s9, %s9197_s17, %s9197_s17, %s9198_s27  }
 0x39b PF: > { %p8795_p4 = scmp.ge.s32.totalorder %s9188_s25, 2  ;;  %s7108_s26 = sand.u32 1, %s9160_s18  }
 0x39c   : > { %s7109_s12 = scalar_lea.sflag [#allocation5], %s7108_s26 }
 0x39d   : > { %p8790_p5 = pnand %p8795_p4, %p9290_p8 }
 0x39f   : > { %p8791_p6 = pneg %p8790_p5 }
 0x3a1   : > { %9155 = dma.done.wait (%p8791_p6), %s7109_s12, 2048  }
 0x3a2   : > { %9157 = vsyncadd (%p8791_p6), %s7109_s12, 4294965248  ;;  %s19_s25 = sadd.s32 1, %s9188_s25   ;;  %s11592_s18 = smov %s9164_s19 }
 0x3a3   : > { %p16_p7 = scmp.ge.s32.totalorder %s19_s25, 6   ;;  %s11593_s19 = smov %s9168_s20 }
 0x3a4   : > { %s11594_s20 = smov %s9308_s13  ;;  %s11595_s21 = smov %s9180_s23 }
 0x3a5   : > { %s11596_s22 = smov %s9184_s24  ;;  %s11597_s23 = smov %s11600_s28 }
 0x3a6   : > { %s11598_s24 = smov %s11604_s29  ;;  %18 = sbr.rel (!%p16_p7) target bundleno = 8 (0x8), region = 109 }
 0x3ab   :  { %7114 = vsyncpa [#allocation4], 1 }
 0x3ac   :  { %7116 = vsyncpa [#allocation4 + $0x1], 1 }
 0x3ad   :  { %7117 = vsyncpa [#allocation5], 1 }
 0x3ae   :  { %7119 = vsyncpa [#allocation5 + $0x1], 1 }

</bundles_post_ra>
